<compile_context>
chip_gen: v6e
topology: v6e:2x2x1
jax: 0.10.0
libtpu: 0.0.40
codegen_flags: <defaults>
</compile_context>

<pallas_src>
import functools

import jax
import jax.numpy as jnp
from jax.experimental import pallas as pl
from jax.experimental.pallas import tpu as pltpu


def _round_up(x, m):
    return (x + m - 1) // m * m


def _pick_tile(size, candidates):
    """Largest candidate that divides `size` (size is a multiple of 8/128)."""
    for c in candidates:
        if c <= size and size % c == 0:
            return c
    return size


# ---------------------------------------------------------------------------
# Pallas kernel 1: tiled matmul (f32 accumulation in o_ref) + optional
# per-channel sum / sum-of-squares epilogue for BatchNorm statistics.
# ---------------------------------------------------------------------------
def _matmul_kernel(a_ref, b_ref, o_ref, *stats_refs, emit_stats):
    k = pl.program_id(2)
    prod = jnp.dot(a_ref[...], b_ref[...], preferred_element_type=jnp.float32)

    @pl.when(k == 0)
    def _():
        o_ref[...] = prod

    @pl.when(k > 0)
    def _():
        o_ref[...] += prod

    if emit_stats:
        stats_ref = stats_refs[0]

        @pl.when(k == pl.num_programs(2) - 1)
        def _():
            y = o_ref[...]                                   # (tm, tn) f32
            s = jnp.sum(y, axis=0, keepdims=True)            # (1, tn)
            q = jnp.sum(y * y, axis=0, keepdims=True)        # (1, tn)
            z = jnp.zeros((6, y.shape[1]), jnp.float32)
            stats_ref[...] = jnp.concatenate([s, q, z], axis=0)[None]


def matmul_pallas(a, b, *, emit_stats=False):
    """(M,K) @ (K,N) -> (Mp,Np) f32 on the MXU (bf16 inputs, f32 accumulation).

    If emit_stats, also returns a (Mp//tm, 8, Np) array whose rows 0/1 hold the
    per-M-tile column sums / sums-of-squares of the (unbiased-by-conv-bias)
    output (used for BatchNorm batch statistics).
    """
    M, K = a.shape
    Kb, N = b.shape
    assert K == Kb
    a = a.astype(jnp.bfloat16)
    b = b.astype(jnp.bfloat16)

    Mp = _round_up(M, 8)
    Np = _round_up(N, 128)
    if K <= 2048:
        Kp = _round_up(K, 16)           # single full-K step, minimal padding
        tk = Kp
    else:
        tk = 256                         # large-K fallback: tiled reduction
        Kp = _round_up(K, tk)
    nk = Kp // tk

    if (Mp, Kp) != (M, K):
        a = jnp.pad(a, ((0, Mp - M), (0, Kp - K)))
    if (Kp, Np) != (K, N):
        b = jnp.pad(b, ((0, Kp - K), (0, Np - N)))

    tm = _pick_tile(Mp, (512, 256, 128, 64, 32, 16, 8))
    tn = _pick_tile(Np, (512, 384, 256, 128))
    nmt = Mp // tm

    if emit_stats:
        out_shape = (jax.ShapeDtypeStruct((Mp, Np), jnp.float32),
                     jax.ShapeDtypeStruct((nmt, 8, Np), jnp.float32))
        out_specs = (pl.BlockSpec((tm, tn), lambda i, j, k: (i, j)),
                     pl.BlockSpec((1, 8, tn), lambda i, j, k: (i, 0, j)))
    else:
        out_shape = jax.ShapeDtypeStruct((Mp, Np), jnp.float32)
        out_specs = pl.BlockSpec((tm, tn), lambda i, j, k: (i, j))

    kernel = functools.partial(_matmul_kernel, emit_stats=emit_stats)

    return pl.pallas_call(
        kernel,
        out_shape=out_shape,
        grid=(Mp // tm, Np // tn, nk),
        in_specs=[
            pl.BlockSpec((tm, tk), lambda i, j, k: (i, k)),
            pl.BlockSpec((tk, tn), lambda i, j, k: (k, j)),
        ],
        out_specs=out_specs,
        compiler_params=pltpu.CompilerParams(
            dimension_semantics=("parallel", "parallel", "arbitrary"),
            vmem_limit_bytes=32 * 1024 * 1024,
        ),
    )(a, b)


# ---------------------------------------------------------------------------
# Pallas kernel 2: tiled fused  y * scale + shift  ->  ReLU  ->  bf16
# (scale/shift fold the BatchNorm mean/var/gamma/beta, computed from kernel-1
#  statistics in a tiny per-channel JAX op).
# ---------------------------------------------------------------------------
def _bn_scale_shift_relu_kernel(y_ref, scale_ref, shift_ref, o_ref):
    y = y_ref[...]
    out = jnp.maximum(y * scale_ref[...] + shift_ref[...], 0.0)
    o_ref[...] = out.astype(o_ref.dtype)


def bn_relu_apply(y, scale, shift, out_dtype=jnp.bfloat16):
    Mp, Np = y.shape
    tm = _pick_tile(Mp, (512, 256, 128, 64, 32, 16, 8))
    return pl.pallas_call(
        _bn_scale_shift_relu_kernel,
        out_shape=jax.ShapeDtypeStruct((Mp, Np), out_dtype),
        grid=(Mp // tm,),
        in_specs=[
            pl.BlockSpec((tm, Np), lambda i: (i, 0)),
            pl.BlockSpec((1, Np), lambda i: (0, 0)),
            pl.BlockSpec((1, Np), lambda i: (0, 0)),
        ],
        out_specs=pl.BlockSpec((tm, Np), lambda i: (i, 0)),
        compiler_params=pltpu.CompilerParams(
            dimension_semantics=("parallel",),
            vmem_limit_bytes=32 * 1024 * 1024,
        ),
    )(y, scale, shift)


# ---------------------------------------------------------------------------
# JAX glue: im2col, conv+BN+ReLU layer, transposed conv (parity col2im)
# ---------------------------------------------------------------------------
def _im2col(x_nhwc, kh, kw, stride, pad):
    N, H, W, C = x_nhwc.shape
    xp = jnp.pad(x_nhwc, ((0, 0), (pad, pad), (pad, pad), (0, 0)))
    Ho = (H + 2 * pad - kh) // stride + 1
    Wo = (W + 2 * pad - kw) // stride + 1
    cols = []
    for i in range(kh):
        for j in range(kw):
            cols.append(xp[:, i:i + stride * Ho:stride,
                           j:j + stride * Wo:stride, :])       # (N,Ho,Wo,C)
    patches = jnp.stack(cols, axis=-2)                          # (N,Ho,Wo,kh*kw,C)
    return patches.reshape(N * Ho * Wo, kh * kw * C), Ho, Wo


def conv_bn_relu(x_nhwc, w, gamma, beta, stride, pad, eps=1e-5):
    """Conv2d (bias cancelled by BN) -> BatchNorm2d (batch stats) -> ReLU."""
    cout, cin, kh, kw = w.shape
    cols, Ho, Wo = _im2col(x_nhwc, kh, kw, stride, pad)        # (M, K) bf16
    # K ordering (kh, kw, cin) matches the patch layout above.
    w_mat = jnp.transpose(w, (2, 3, 1, 0)).reshape(kh * kw * cin, cout)
    M = cols.shape[0]

    y, stats = matmul_pallas(cols, w_mat, emit_stats=True)     # y: (Mp, Np) f32
    Np = y.shape[1]

    # Per-channel training-mode BatchNorm statistics (biased variance), from
    # the partial sums emitted by the matmul epilogue (padded rows/cols are 0).
    sum_c = jnp.sum(stats[:, 0, :], axis=0)
    ssq_c = jnp.sum(stats[:, 1, :], axis=0)
    mean = sum_c / M
    var = jnp.maximum(ssq_c / M - mean * mean, 0.0)
    inv = jax.lax.rsqrt(var + eps)
    g = jnp.pad(gamma, (0, Np - cout))
    b = jnp.pad(beta, (0, Np - cout))
    scale = (g * inv).reshape(1, Np)
    shift = (b - mean * g * inv).reshape(1, Np)

    act = bn_relu_apply(y, scale, shift)                       # (Mp, Np) bf16
    N = x_nhwc.shape[0]
    return act[:M, :cout].reshape(N, Ho, Wo, cout)


def _shift0(t, axis, d):
    """t shifted by d along `axis` with zero fill (u[i] = t[i+d])."""
    if d == 0:
        return t
    pads = [(0, 0)] * t.ndim
    pads[axis] = (max(-d, 0), max(d, 0))
    tp = jnp.pad(t, pads)
    start = [0] * t.ndim
    start[axis] = max(d, 0)
    return jax.lax.dynamic_slice(tp, start, t.shape)


def conv_transpose_s2_k4_p1(x_nhwc, w, bias):
    """PyTorch ConvTranspose2d(Cin, Cout, 4, stride=2, padding=1)."""
    N, H, W, Cin = x_nhwc.shape
    Cout = w.shape[1]
    w_mat = w.reshape(Cin, Cout * 16)                          # (Cin, Cout*4*4)
    M = N * H * W
    y = matmul_pallas(x_nhwc.reshape(M, Cin), w_mat)           # (Mp, Np) f32
    contrib = y[:M, :Cout * 16].reshape(N, H, W, Cout, 4, 4)

    # col2im by output parity: out[2i+r, 2j+s] receives exactly
    #   r=0: (kh=1, ih=i) + (kh=3, ih=i-1)     r=1: (kh=2, ih=i) + (kh=0, ih=i+1)
    # (and the analogous terms along width) -> 4 strided interleaves, no
    # read-modify-write scatter-adds.
    terms = {0: ((1, 0), (3, -1)), 1: ((2, 0), (0, +1))}
    parts = {}
    for r in (0, 1):
        for s in (0, 1):
            acc = jnp.zeros((N, H, W, Cout), jnp.float32)
            for kh, di in terms[r]:
                for kw, dj in terms[s]:
                    t = contrib[:, :, :, :, kh, kw]
                    acc = acc + _shift0(_shift0(t, 1, di), 2, dj)
            parts[(r, s)] = acc

    row0 = jnp.stack([parts[(0, 0)], parts[(0, 1)]], axis=3)   # (N,H,W,2,C)
    row1 = jnp.stack([parts[(1, 0)], parts[(1, 1)]], axis=3)   # (N,H,W,2,C)
    out = jnp.stack([row0, row1], axis=2)                      # (N,H,2,W,2,C)
    out = out.reshape(N, 2 * H, 2 * W, Cout)
    return out + bias.reshape(1, 1, 1, Cout)


@jax.jit
def simple_pose_net(x_nchw, params):
    x = jnp.transpose(x_nchw, (0, 2, 3, 1)).astype(jnp.bfloat16)   # NCHW->NHWC
    x = conv_bn_relu(x, params["w1"], params["g1"], params["be1"], stride=2, pad=3)
    x = conv_bn_relu(x, params["w2"], params["g2"], params["be2"], stride=2, pad=1)
    x = conv_bn_relu(x, params["w3"], params["g3"], params["be3"], stride=2, pad=1)
    heat = conv_transpose_s2_k4_p1(x, params["wd"], params["bd"])
    return jnp.transpose(heat, (0, 3, 1, 2))                       # NHWC->NCHW


def init_params(key, num_keypoints=17):
    ks = jax.random.split(key, 12)

    def conv_w(k, cout, cin, ksz):
        fan = cin * ksz * ksz
        return jax.random.normal(k, (cout, cin, ksz, ksz),
                                 jnp.float32) / jnp.sqrt(fan)

    params = {
        "w1": conv_w(ks[0], 64, 3, 7),
        # Conv biases are kept for interface fidelity but are mathematically
        # cancelled by the following training-mode BatchNorm, so unused.
        "b1": 0.01 * jax.random.normal(ks[1], (64,), jnp.float32),
        "g1": 1.0 + 0.1 * jax.random.normal(ks[2], (64,), jnp.float32),
        "be1": 0.1 * jax.random.normal(ks[3], (64,), jnp.float32),
        "w2": conv_w(ks[4], 128, 64, 3),
        "b2": 0.01 * jax.random.normal(ks[5], (128,), jnp.float32),
        "g2": 1.0 + 0.1 * jax.random.normal(ks[6], (128,), jnp.float32),
        "be2": 0.1 * jax.random.normal(ks[7], (128,), jnp.float32),
        "w3": conv_w(ks[8], 256, 128, 3),
        "b3": 0.01 * jax.random.normal(ks[9], (256,), jnp.float32),
        "g3": 1.0 + 0.1 * jax.random.normal(ks[10], (256,), jnp.float32),
        "be3": 0.1 * jax.random.normal(ks[11], (256,), jnp.float32),
        # ConvTranspose2d(256, 17, 4, 2, 1): weight layout (Cin, Cout, kh, kw)
        "wd": jax.random.normal(jax.random.PRNGKey(42),
                                (256, num_keypoints, 4, 4),
                                jnp.float32) / jnp.sqrt(256 * 16),
        "bd": 0.01 * jax.random.normal(jax.random.PRNGKey(43),
                                       (num_keypoints,), jnp.float32),
    }
    return params


if __name__ == "__main__":
    key = jax.random.PRNGKey(0)
    kx, kp = jax.random.split(key)
    # small input consistent with the module: N=2, C=3 (conv1 requires 3), 32x32
    x = jax.random.normal(kx, (2, 3, 32, 32), jnp.float32)
    params = init_params(kp)

    heatmaps = jax.block_until_ready(simple_pose_net(x, params))
    assert heatmaps.shape == (2, 17, 8, 8), heatmaps.shape
    assert heatmaps.dtype == jnp.float32
    assert bool(jnp.all(jnp.isfinite(heatmaps)))
    print("KERNEL_OK")
</pallas_src>

<mosaic_0001>
module attributes {stable_mosaic.version = 11 : i64} {
  func.func @_matmul_kernel(%arg0: i32, %arg1: i32, %arg2: i32, %arg3: memref<512x160xbf16, #tpu.memory_space<vmem>>, %arg4: memref<160x128xbf16, #tpu.memory_space<vmem>>, %arg5: memref<512x128xf32, #tpu.memory_space<vmem>>, %arg6: memref<1x8x128xf32, #tpu.memory_space<vmem>>) attributes {dimension_semantics = [#tpu.dimension_semantics<parallel>, #tpu.dimension_semantics<parallel>, #tpu.dimension_semantics<arbitrary>], iteration_bounds = array<i64: 1, 1, 1>, scalar_prefetch = 0 : i64, scratch_operands = 0 : i64, tpu.core_type = #tpu.core_type<tc>, window_params = [{transform_indices = @transform_0, window_bounds = array<i64: 512, 160>}, {transform_indices = @transform_1, window_bounds = array<i64: 160, 128>}, {transform_indices = @transform_2, window_bounds = array<i64: 512, 128>}, {transform_indices = @transform_3, window_bounds = array<i64: 1, 8, 128>}]} {
    %c0 = arith.constant 0 : index
    %c0_0 = arith.constant 0 : index
    %0 = vector.load %arg3[%c0, %c0_0] : memref<512x160xbf16, #tpu.memory_space<vmem>>, vector<512x160xbf16>
    %c0_1 = arith.constant 0 : index
    %c0_2 = arith.constant 0 : index
    %1 = vector.load %arg4[%c0_1, %c0_2] : memref<160x128xbf16, #tpu.memory_space<vmem>>, vector<160x128xbf16>
    %cst = arith.constant dense<0.000000e+00> : vector<512x128xf32>
    %2 = tpu.matmul %0, %1, %cst {dimension_numbers = #tpu.dot_dimension_numbers<[1], [0], [0], [1], [0, 0, 1, 1], [], []>} : vector<512x160xbf16>, vector<160x128xbf16>, vector<512x128xf32> -> vector<512x128xf32>
    %c0_i32 = arith.constant 0 : i32
    %3 = arith.cmpi eq, %arg2, %c0_i32 : i32
    %4 = arith.extui %3 : i1 to i32
    %c0_i32_3 = arith.constant 0 : i32
    %5 = arith.cmpi ne, %4, %c0_i32_3 : i32
    scf.if %5 {
      %c0_8 = arith.constant 0 : index
      %c0_9 = arith.constant 0 : index
      %12 = vector.load %arg5[%c0_8, %c0_9] : memref<512x128xf32, #tpu.memory_space<vmem>>, vector<512x128xf32>
      tpu.vector_store %arg5[%c0_8, %c0_9], %2 {strides = array<i32>} : memref<512x128xf32, #tpu.memory_space<vmem>>, vector<512x128xf32>,
    } else {
    }
    %c0_i32_4 = arith.constant 0 : i32
    %6 = arith.cmpi sgt, %arg2, %c0_i32_4 : i32
    %7 = arith.extui %6 : i1 to i32
    %c0_i32_5 = arith.constant 0 : i32
    %8 = arith.cmpi ne, %7, %c0_i32_5 : i32
    scf.if %8 {
      %c0_8 = arith.constant 0 : index
      %c0_9 = arith.constant 0 : index
      %12 = vector.load %arg5[%c0_8, %c0_9] : memref<512x128xf32, #tpu.memory_space<vmem>>, vector<512x128xf32>
      %13 = arith.addf %12, %2 : vector<512x128xf32>
      %c0_10 = arith.constant 0 : index
      %c0_11 = arith.constant 0 : index
      %14 = vector.load %arg5[%c0_10, %c0_11] : memref<512x128xf32, #tpu.memory_space<vmem>>, vector<512x128xf32>
      tpu.vector_store %arg5[%c0_10, %c0_11], %13 {strides = array<i32>} : memref<512x128xf32, #tpu.memory_space<vmem>>, vector<512x128xf32>,
    } else {
    }
    %c0_i32_6 = arith.constant 0 : i32
    %9 = arith.cmpi eq, %arg2, %c0_i32_6 : i32
    %10 = arith.extui %9 : i1 to i32
    %c0_i32_7 = arith.constant 0 : i32
    %11 = arith.cmpi ne, %10, %c0_i32_7 : i32
    scf.if %11 {
      %c0_8 = arith.constant 0 : index
      %c0_9 = arith.constant 0 : index
      %12 = vector.load %arg5[%c0_8, %c0_9] : memref<512x128xf32, #tpu.memory_space<vmem>>, vector<512x128xf32>
      %cst_10 = arith.constant dense<0.000000e+00> : vector<128xf32>
      %13 = vector.multi_reduction <add>, %12, %cst_10 [0] : vector<512x128xf32> to vector<128xf32>
      %14 = vector.shape_cast %13 : vector<128xf32> to vector<1x128xf32>
      %15 = arith.mulf %12, %12 : vector<512x128xf32>
      %cst_11 = arith.constant dense<0.000000e+00> : vector<128xf32>
      %16 = vector.multi_reduction <add>, %15, %cst_11 [0] : vector<512x128xf32> to vector<128xf32>
      %17 = vector.shape_cast %16 : vector<128xf32> to vector<1x128xf32>
      %cst_12 = arith.constant 0.000000e+00 : f32
      %18 = vector.broadcast %cst_12 : f32 to vector<6x128xf32>
      %19 = tpu.concatenate %14, %17, %18 in 0 : vector<1x128xf32>, vector<1x128xf32>, vector<6x128xf32> -> vector<8x128xf32>
      %20 = vector.shape_cast %19 : vector<8x128xf32> to vector<1x8x128xf32>
      %c0_13 = arith.constant 0 : index
      %c0_14 = arith.constant 0 : index
      %c0_15 = arith.constant 0 : index
      %21 = vector.load %arg6[%c0_13, %c0_14, %c0_15] : memref<1x8x128xf32, #tpu.memory_space<vmem>>, vector<1x8x128xf32>
      tpu.vector_store %arg6[%c0_13, %c0_14, %c0_15], %20 {strides = array<i32>} : memref<1x8x128xf32, #tpu.memory_space<vmem>>, vector<1x8x128xf32>,
    } else {
    }
    return
  }
  func.func @transform_0(%arg0: i32, %arg1: i32, %arg2: i32) -> (i32, i32) {
    %c0_i32 = arith.constant 0 : i32
    return %arg0, %arg2 : i32, i32
  }
  func.func @transform_1(%arg0: i32, %arg1: i32, %arg2: i32) -> (i32, i32) {
    %c0_i32 = arith.constant 0 : i32
    return %arg2, %arg1 : i32, i32
  }
  func.func @transform_2(%arg0: i32, %arg1: i32, %arg2: i32) -> (i32, i32) {
    %c0_i32 = arith.constant 0 : i32
    return %arg0, %arg1 : i32, i32
  }
  func.func @transform_3(%arg0: i32, %arg1: i32, %arg2: i32) -> (i32, i32, i32) {
    %c0_i32 = arith.constant 0 : i32
    %c0_i32_0 = arith.constant 0 : i32
    return %arg0, %c0_i32, %arg1 : i32, i32, i32
  }
}

module attributes {stable_mosaic.version = 11 : i64} {
  func.func @_bn_scale_shift_relu_kernel(%arg0: i32, %arg1: memref<512x128xf32, #tpu.memory_space<vmem>>, %arg2: memref<1x128xf32, #tpu.memory_space<vmem>>, %arg3: memref<1x128xf32, #tpu.memory_space<vmem>>, %arg4: memref<512x128xbf16, #tpu.memory_space<vmem>>) attributes {dimension_semantics = [#tpu.dimension_semantics<parallel>], iteration_bounds = array<i64: 1>, scalar_prefetch = 0 : i64, scratch_operands = 0 : i64, tpu.core_type = #tpu.core_type<tc>, window_params = [{transform_indices = @transform_0, window_bounds = array<i64: 512, 128>}, {pipeline_mode = #tpu.pipeline_mode<synchronous>, transform_indices = @transform_1, window_bounds = array<i64: 1, 128>}, {pipeline_mode = #tpu.pipeline_mode<synchronous>, transform_indices = @transform_2, window_bounds = array<i64: 1, 128>}, {transform_indices = @transform_3, window_bounds = array<i64: 512, 128>}]} {
    %c0 = arith.constant 0 : index
    %c0_0 = arith.constant 0 : index
    %0 = vector.load %arg1[%c0, %c0_0] : memref<512x128xf32, #tpu.memory_space<vmem>>, vector<512x128xf32>
    %c0_1 = arith.constant 0 : index
    %c0_2 = arith.constant 0 : index
    %1 = vector.load %arg2[%c0_1, %c0_2] : memref<1x128xf32, #tpu.memory_space<vmem>>, vector<1x128xf32>
    %2 = vector.broadcast %1 : vector<1x128xf32> to vector<512x128xf32>
    %3 = arith.mulf %0, %2 : vector<512x128xf32>
    %c0_3 = arith.constant 0 : index
    %c0_4 = arith.constant 0 : index
    %4 = vector.load %arg3[%c0_3, %c0_4] : memref<1x128xf32, #tpu.memory_space<vmem>>, vector<1x128xf32>
    %5 = vector.broadcast %4 : vector<1x128xf32> to vector<512x128xf32>
    %6 = arith.addf %3, %5 : vector<512x128xf32>
    %cst = arith.constant 0.000000e+00 : f32
    %7 = vector.broadcast %cst : f32 to vector<512x128xf32>
    %8 = arith.maximumf %6, %7 : vector<512x128xf32>
    %9 = arith.truncf %8 : vector<512x128xf32> to vector<512x128xbf16>
    %c0_5 = arith.constant 0 : index
    %c0_6 = arith.constant 0 : index
    %10 = vector.load %arg4[%c0_5, %c0_6] : memref<512x128xbf16, #tpu.memory_space<vmem>>, vector<512x128xbf16>
    tpu.vector_store %arg4[%c0_5, %c0_6], %9 {strides = array<i32>} : memref<512x128xbf16, #tpu.memory_space<vmem>>, vector<512x128xbf16>,
    return
  }
  func.func @transform_0(%arg0: i32) -> (i32, i32) {
    %c0_i32 = arith.constant 0 : i32
    %c0_i32_0 = arith.constant 0 : i32
    return %arg0, %c0_i32 : i32, i32
  }
  func.func @transform_1(%arg0: i32) -> (i32, i32) {
    %c0_i32 = arith.constant 0 : i32
    %c0_i32_0 = arith.constant 0 : i32
    %c0_i32_1 = arith.constant 0 : i32
    return %c0_i32, %c0_i32_0 : i32, i32
  }
  func.func @transform_2(%arg0: i32) -> (i32, i32) {
    %c0_i32 = arith.constant 0 : i32
    %c0_i32_0 = arith.constant 0 : i32
    %c0_i32_1 = arith.constant 0 : i32
    return %c0_i32, %c0_i32_0 : i32, i32
  }
  func.func @transform_3(%arg0: i32) -> (i32, i32) {
    %c0_i32 = arith.constant 0 : i32
    %c0_i32_0 = arith.constant 0 : i32
    return %arg0, %c0_i32 : i32, i32
  }
}

module attributes {stable_mosaic.version = 11 : i64} {
  func.func @_matmul_kernel(%arg0: i32, %arg1: i32, %arg2: i32, %arg3: memref<128x576xbf16, #tpu.memory_space<vmem>>, %arg4: memref<576x128xbf16, #tpu.memory_space<vmem>>, %arg5: memref<128x128xf32, #tpu.memory_space<vmem>>, %arg6: memref<1x8x128xf32, #tpu.memory_space<vmem>>) attributes {dimension_semantics = [#tpu.dimension_semantics<parallel>, #tpu.dimension_semantics<parallel>, #tpu.dimension_semantics<arbitrary>], iteration_bounds = array<i64: 1, 1, 1>, scalar_prefetch = 0 : i64, scratch_operands = 0 : i64, tpu.core_type = #tpu.core_type<tc>, window_params = [{transform_indices = @transform_0, window_bounds = array<i64: 128, 576>}, {transform_indices = @transform_1, window_bounds = array<i64: 576, 128>}, {transform_indices = @transform_2, window_bounds = array<i64: 128, 128>}, {transform_indices = @transform_3, window_bounds = array<i64: 1, 8, 128>}]} {
    %c0 = arith.constant 0 : index
    %c0_0 = arith.constant 0 : index
    %0 = vector.load %arg3[%c0, %c0_0] : memref<128x576xbf16, #tpu.memory_space<vmem>>, vector<128x576xbf16>
    %c0_1 = arith.constant 0 : index
    %c0_2 = arith.constant 0 : index
    %1 = vector.load %arg4[%c0_1, %c0_2] : memref<576x128xbf16, #tpu.memory_space<vmem>>, vector<576x128xbf16>
    %cst = arith.constant dense<0.000000e+00> : vector<128x128xf32>
    %2 = tpu.matmul %0, %1, %cst {dimension_numbers = #tpu.dot_dimension_numbers<[1], [0], [0], [1], [0, 0, 1, 1], [], []>} : vector<128x576xbf16>, vector<576x128xbf16>, vector<128x128xf32> -> vector<128x128xf32>
    %c0_i32 = arith.constant 0 : i32
    %3 = arith.cmpi eq, %arg2, %c0_i32 : i32
    %4 = arith.extui %3 : i1 to i32
    %c0_i32_3 = arith.constant 0 : i32
    %5 = arith.cmpi ne, %4, %c0_i32_3 : i32
    scf.if %5 {
      %c0_8 = arith.constant 0 : index
      %c0_9 = arith.constant 0 : index
      %12 = vector.load %arg5[%c0_8, %c0_9] : memref<128x128xf32, #tpu.memory_space<vmem>>, vector<128x128xf32>
      tpu.vector_store %arg5[%c0_8, %c0_9], %2 {strides = array<i32>} : memref<128x128xf32, #tpu.memory_space<vmem>>, vector<128x128xf32>,
    } else {
    }
    %c0_i32_4 = arith.constant 0 : i32
    %6 = arith.cmpi sgt, %arg2, %c0_i32_4 : i32
    %7 = arith.extui %6 : i1 to i32
    %c0_i32_5 = arith.constant 0 : i32
    %8 = arith.cmpi ne, %7, %c0_i32_5 : i32
    scf.if %8 {
      %c0_8 = arith.constant 0 : index
      %c0_9 = arith.constant 0 : index
      %12 = vector.load %arg5[%c0_8, %c0_9] : memref<128x128xf32, #tpu.memory_space<vmem>>, vector<128x128xf32>
      %13 = arith.addf %12, %2 : vector<128x128xf32>
      %c0_10 = arith.constant 0 : index
      %c0_11 = arith.constant 0 : index
      %14 = vector.load %arg5[%c0_10, %c0_11] : memref<128x128xf32, #tpu.memory_space<vmem>>, vector<128x128xf32>
      tpu.vector_store %arg5[%c0_10, %c0_11], %13 {strides = array<i32>} : memref<128x128xf32, #tpu.memory_space<vmem>>, vector<128x128xf32>,
    } else {
    }
    %c0_i32_6 = arith.constant 0 : i32
    %9 = arith.cmpi eq, %arg2, %c0_i32_6 : i32
    %10 = arith.extui %9 : i1 to i32
    %c0_i32_7 = arith.constant 0 : i32
    %11 = arith.cmpi ne, %10, %c0_i32_7 : i32
    scf.if %11 {
      %c0_8 = arith.constant 0 : index
      %c0_9 = arith.constant 0 : index
      %12 = vector.load %arg5[%c0_8, %c0_9] : memref<128x128xf32, #tpu.memory_space<vmem>>, vector<128x128xf32>
      %cst_10 = arith.constant dense<0.000000e+00> : vector<128xf32>
      %13 = vector.multi_reduction <add>, %12, %cst_10 [0] : vector<128x128xf32> to vector<128xf32>
      %14 = vector.shape_cast %13 : vector<128xf32> to vector<1x128xf32>
      %15 = arith.mulf %12, %12 : vector<128x128xf32>
      %cst_11 = arith.constant dense<0.000000e+00> : vector<128xf32>
      %16 = vector.multi_reduction <add>, %15, %cst_11 [0] : vector<128x128xf32> to vector<128xf32>
      %17 = vector.shape_cast %16 : vector<128xf32> to vector<1x128xf32>
      %cst_12 = arith.constant 0.000000e+00 : f32
      %18 = vector.broadcast %cst_12 : f32 to vector<6x128xf32>
      %19 = tpu.concatenate %14, %17, %18 in 0 : vector<1x128xf32>, vector<1x128xf32>, vector<6x128xf32> -> vector<8x128xf32>
      %20 = vector.shape_cast %19 : vector<8x128xf32> to vector<1x8x128xf32>
      %c0_13 = arith.constant 0 : index
      %c0_14 = arith.constant 0 : index
      %c0_15 = arith.constant 0 : index
      %21 = vector.load %arg6[%c0_13, %c0_14, %c0_15] : memref<1x8x128xf32, #tpu.memory_space<vmem>>, vector<1x8x128xf32>
      tpu.vector_store %arg6[%c0_13, %c0_14, %c0_15], %20 {strides = array<i32>} : memref<1x8x128xf32, #tpu.memory_space<vmem>>, vector<1x8x128xf32>,
    } else {
    }
    return
  }
  func.func @transform_0(%arg0: i32, %arg1: i32, %arg2: i32) -> (i32, i32) {
    %c0_i32 = arith.constant 0 : i32
    return %arg0, %arg2 : i32, i32
  }
  func.func @transform_1(%arg0: i32, %arg1: i32, %arg2: i32) -> (i32, i32) {
    %c0_i32 = arith.constant 0 : i32
    return %arg2, %arg1 : i32, i32
  }
  func.func @transform_2(%arg0: i32, %arg1: i32, %arg2: i32) -> (i32, i32) {
    %c0_i32 = arith.constant 0 : i32
    return %arg0, %arg1 : i32, i32
  }
  func.func @transform_3(%arg0: i32, %arg1: i32, %arg2: i32) -> (i32, i32, i32) {
    %c0_i32 = arith.constant 0 : i32
    %c0_i32_0 = arith.constant 0 : i32
    return %arg0, %c0_i32, %arg1 : i32, i32, i32
  }
}

module attributes {stable_mosaic.version = 11 : i64} {
  func.func @_bn_scale_shift_relu_kernel(%arg0: i32, %arg1: memref<128x128xf32, #tpu.memory_space<vmem>>, %arg2: memref<1x128xf32, #tpu.memory_space<vmem>>, %arg3: memref<1x128xf32, #tpu.memory_space<vmem>>, %arg4: memref<128x128xbf16, #tpu.memory_space<vmem>>) attributes {dimension_semantics = [#tpu.dimension_semantics<parallel>], iteration_bounds = array<i64: 1>, scalar_prefetch = 0 : i64, scratch_operands = 0 : i64, tpu.core_type = #tpu.core_type<tc>, window_params = [{transform_indices = @transform_0, window_bounds = array<i64: 128, 128>}, {pipeline_mode = #tpu.pipeline_mode<synchronous>, transform_indices = @transform_1, window_bounds = array<i64: 1, 128>}, {pipeline_mode = #tpu.pipeline_mode<synchronous>, transform_indices = @transform_2, window_bounds = array<i64: 1, 128>}, {transform_indices = @transform_3, window_bounds = array<i64: 128, 128>}]} {
    %c0 = arith.constant 0 : index
    %c0_0 = arith.constant 0 : index
    %0 = vector.load %arg1[%c0, %c0_0] : memref<128x128xf32, #tpu.memory_space<vmem>>, vector<128x128xf32>
    %c0_1 = arith.constant 0 : index
    %c0_2 = arith.constant 0 : index
    %1 = vector.load %arg2[%c0_1, %c0_2] : memref<1x128xf32, #tpu.memory_space<vmem>>, vector<1x128xf32>
    %2 = vector.broadcast %1 : vector<1x128xf32> to vector<128x128xf32>
    %3 = arith.mulf %0, %2 : vector<128x128xf32>
    %c0_3 = arith.constant 0 : index
    %c0_4 = arith.constant 0 : index
    %4 = vector.load %arg3[%c0_3, %c0_4] : memref<1x128xf32, #tpu.memory_space<vmem>>, vector<1x128xf32>
    %5 = vector.broadcast %4 : vector<1x128xf32> to vector<128x128xf32>
    %6 = arith.addf %3, %5 : vector<128x128xf32>
    %cst = arith.constant 0.000000e+00 : f32
    %7 = vector.broadcast %cst : f32 to vector<128x128xf32>
    %8 = arith.maximumf %6, %7 : vector<128x128xf32>
    %9 = arith.truncf %8 : vector<128x128xf32> to vector<128x128xbf16>
    %c0_5 = arith.constant 0 : index
    %c0_6 = arith.constant 0 : index
    %10 = vector.load %arg4[%c0_5, %c0_6] : memref<128x128xbf16, #tpu.memory_space<vmem>>, vector<128x128xbf16>
    tpu.vector_store %arg4[%c0_5, %c0_6], %9 {strides = array<i32>} : memref<128x128xbf16, #tpu.memory_space<vmem>>, vector<128x128xbf16>,
    return
  }
  func.func @transform_0(%arg0: i32) -> (i32, i32) {
    %c0_i32 = arith.constant 0 : i32
    %c0_i32_0 = arith.constant 0 : i32
    return %arg0, %c0_i32 : i32, i32
  }
  func.func @transform_1(%arg0: i32) -> (i32, i32) {
    %c0_i32 = arith.constant 0 : i32
    %c0_i32_0 = arith.constant 0 : i32
    %c0_i32_1 = arith.constant 0 : i32
    return %c0_i32, %c0_i32_0 : i32, i32
  }
  func.func @transform_2(%arg0: i32) -> (i32, i32) {
    %c0_i32 = arith.constant 0 : i32
    %c0_i32_0 = arith.constant 0 : i32
    %c0_i32_1 = arith.constant 0 : i32
    return %c0_i32, %c0_i32_0 : i32, i32
  }
  func.func @transform_3(%arg0: i32) -> (i32, i32) {
    %c0_i32 = arith.constant 0 : i32
    %c0_i32_0 = arith.constant 0 : i32
    return %arg0, %c0_i32 : i32, i32
  }
}

module attributes {stable_mosaic.version = 11 : i64} {
  func.func @_matmul_kernel(%arg0: i32, %arg1: i32, %arg2: i32, %arg3: memref<32x1152xbf16, #tpu.memory_space<vmem>>, %arg4: memref<1152x256xbf16, #tpu.memory_space<vmem>>, %arg5: memref<32x256xf32, #tpu.memory_space<vmem>>, %arg6: memref<1x8x256xf32, #tpu.memory_space<vmem>>) attributes {dimension_semantics = [#tpu.dimension_semantics<parallel>, #tpu.dimension_semantics<parallel>, #tpu.dimension_semantics<arbitrary>], iteration_bounds = array<i64: 1, 1, 1>, scalar_prefetch = 0 : i64, scratch_operands = 0 : i64, tpu.core_type = #tpu.core_type<tc>, window_params = [{transform_indices = @transform_0, window_bounds = array<i64: 32, 1152>}, {transform_indices = @transform_1, window_bounds = array<i64: 1152, 256>}, {transform_indices = @transform_2, window_bounds = array<i64: 32, 256>}, {transform_indices = @transform_3, window_bounds = array<i64: 1, 8, 256>}]} {
    %c0 = arith.constant 0 : index
    %c0_0 = arith.constant 0 : index
    %0 = vector.load %arg3[%c0, %c0_0] : memref<32x1152xbf16, #tpu.memory_space<vmem>>, vector<32x1152xbf16>
    %c0_1 = arith.constant 0 : index
    %c0_2 = arith.constant 0 : index
    %1 = vector.load %arg4[%c0_1, %c0_2] : memref<1152x256xbf16, #tpu.memory_space<vmem>>, vector<1152x256xbf16>
    %cst = arith.constant dense<0.000000e+00> : vector<32x256xf32>
    %2 = tpu.matmul %0, %1, %cst {dimension_numbers = #tpu.dot_dimension_numbers<[1], [0], [0], [1], [0, 0, 1, 1], [], []>} : vector<32x1152xbf16>, vector<1152x256xbf16>, vector<32x256xf32> -> vector<32x256xf32>
    %c0_i32 = arith.constant 0 : i32
    %3 = arith.cmpi eq, %arg2, %c0_i32 : i32
    %4 = arith.extui %3 : i1 to i32
    %c0_i32_3 = arith.constant 0 : i32
    %5 = arith.cmpi ne, %4, %c0_i32_3 : i32
    scf.if %5 {
      %c0_8 = arith.constant 0 : index
      %c0_9 = arith.constant 0 : index
      %12 = vector.load %arg5[%c0_8, %c0_9] : memref<32x256xf32, #tpu.memory_space<vmem>>, vector<32x256xf32>
      tpu.vector_store %arg5[%c0_8, %c0_9], %2 {strides = array<i32>} : memref<32x256xf32, #tpu.memory_space<vmem>>, vector<32x256xf32>,
    } else {
    }
    %c0_i32_4 = arith.constant 0 : i32
    %6 = arith.cmpi sgt, %arg2, %c0_i32_4 : i32
    %7 = arith.extui %6 : i1 to i32
    %c0_i32_5 = arith.constant 0 : i32
    %8 = arith.cmpi ne, %7, %c0_i32_5 : i32
    scf.if %8 {
      %c0_8 = arith.constant 0 : index
      %c0_9 = arith.constant 0 : index
      %12 = vector.load %arg5[%c0_8, %c0_9] : memref<32x256xf32, #tpu.memory_space<vmem>>, vector<32x256xf32>
      %13 = arith.addf %12, %2 : vector<32x256xf32>
      %c0_10 = arith.constant 0 : index
      %c0_11 = arith.constant 0 : index
      %14 = vector.load %arg5[%c0_10, %c0_11] : memref<32x256xf32, #tpu.memory_space<vmem>>, vector<32x256xf32>
      tpu.vector_store %arg5[%c0_10, %c0_11], %13 {strides = array<i32>} : memref<32x256xf32, #tpu.memory_space<vmem>>, vector<32x256xf32>,
    } else {
    }
    %c0_i32_6 = arith.constant 0 : i32
    %9 = arith.cmpi eq, %arg2, %c0_i32_6 : i32
    %10 = arith.extui %9 : i1 to i32
    %c0_i32_7 = arith.constant 0 : i32
    %11 = arith.cmpi ne, %10, %c0_i32_7 : i32
    scf.if %11 {
      %c0_8 = arith.constant 0 : index
      %c0_9 = arith.constant 0 : index
      %12 = vector.load %arg5[%c0_8, %c0_9] : memref<32x256xf32, #tpu.memory_space<vmem>>, vector<32x256xf32>
      %cst_10 = arith.constant dense<0.000000e+00> : vector<256xf32>
      %13 = vector.multi_reduction <add>, %12, %cst_10 [0] : vector<32x256xf32> to vector<256xf32>
      %14 = vector.shape_cast %13 : vector<256xf32> to vector<1x256xf32>
      %15 = arith.mulf %12, %12 : vector<32x256xf32>
      %cst_11 = arith.constant dense<0.000000e+00> : vector<256xf32>
      %16 = vector.multi_reduction <add>, %15, %cst_11 [0] : vector<32x256xf32> to vector<256xf32>
      %17 = vector.shape_cast %16 : vector<256xf32> to vector<1x256xf32>
      %cst_12 = arith.constant 0.000000e+00 : f32
      %18 = vector.broadcast %cst_12 : f32 to vector<6x256xf32>
      %19 = tpu.concatenate %14, %17, %18 in 0 : vector<1x256xf32>, vector<1x256xf32>, vector<6x256xf32> -> vector<8x256xf32>
      %20 = vector.shape_cast %19 : vector<8x256xf32> to vector<1x8x256xf32>
      %c0_13 = arith.constant 0 : index
      %c0_14 = arith.constant 0 : index
      %c0_15 = arith.constant 0 : index
      %21 = vector.load %arg6[%c0_13, %c0_14, %c0_15] : memref<1x8x256xf32, #tpu.memory_space<vmem>>, vector<1x8x256xf32>
      tpu.vector_store %arg6[%c0_13, %c0_14, %c0_15], %20 {strides = array<i32>} : memref<1x8x256xf32, #tpu.memory_space<vmem>>, vector<1x8x256xf32>,
    } else {
    }
    return
  }
  func.func @transform_0(%arg0: i32, %arg1: i32, %arg2: i32) -> (i32, i32) {
    %c0_i32 = arith.constant 0 : i32
    return %arg0, %arg2 : i32, i32
  }
  func.func @transform_1(%arg0: i32, %arg1: i32, %arg2: i32) -> (i32, i32) {
    %c0_i32 = arith.constant 0 : i32
    return %arg2, %arg1 : i32, i32
  }
  func.func @transform_2(%arg0: i32, %arg1: i32, %arg2: i32) -> (i32, i32) {
    %c0_i32 = arith.constant 0 : i32
    return %arg0, %arg1 : i32, i32
  }
  func.func @transform_3(%arg0: i32, %arg1: i32, %arg2: i32) -> (i32, i32, i32) {
    %c0_i32 = arith.constant 0 : i32
    %c0_i32_0 = arith.constant 0 : i32
    return %arg0, %c0_i32, %arg1 : i32, i32, i32
  }
}

module attributes {stable_mosaic.version = 11 : i64} {
  func.func @_bn_scale_shift_relu_kernel(%arg0: i32, %arg1: memref<32x256xf32, #tpu.memory_space<vmem>>, %arg2: memref<1x256xf32, #tpu.memory_space<vmem>>, %arg3: memref<1x256xf32, #tpu.memory_space<vmem>>, %arg4: memref<32x256xbf16, #tpu.memory_space<vmem>>) attributes {dimension_semantics = [#tpu.dimension_semantics<parallel>], iteration_bounds = array<i64: 1>, scalar_prefetch = 0 : i64, scratch_operands = 0 : i64, tpu.core_type = #tpu.core_type<tc>, window_params = [{transform_indices = @transform_0, window_bounds = array<i64: 32, 256>}, {pipeline_mode = #tpu.pipeline_mode<synchronous>, transform_indices = @transform_1, window_bounds = array<i64: 1, 256>}, {pipeline_mode = #tpu.pipeline_mode<synchronous>, transform_indices = @transform_2, window_bounds = array<i64: 1, 256>}, {transform_indices = @transform_3, window_bounds = array<i64: 32, 256>}]} {
    %c0 = arith.constant 0 : index
    %c0_0 = arith.constant 0 : index
    %0 = vector.load %arg1[%c0, %c0_0] : memref<32x256xf32, #tpu.memory_space<vmem>>, vector<32x256xf32>
    %c0_1 = arith.constant 0 : index
    %c0_2 = arith.constant 0 : index
    %1 = vector.load %arg2[%c0_1, %c0_2] : memref<1x256xf32, #tpu.memory_space<vmem>>, vector<1x256xf32>
    %2 = vector.broadcast %1 : vector<1x256xf32> to vector<32x256xf32>
    %3 = arith.mulf %0, %2 : vector<32x256xf32>
    %c0_3 = arith.constant 0 : index
    %c0_4 = arith.constant 0 : index
    %4 = vector.load %arg3[%c0_3, %c0_4] : memref<1x256xf32, #tpu.memory_space<vmem>>, vector<1x256xf32>
    %5 = vector.broadcast %4 : vector<1x256xf32> to vector<32x256xf32>
    %6 = arith.addf %3, %5 : vector<32x256xf32>
    %cst = arith.constant 0.000000e+00 : f32
    %7 = vector.broadcast %cst : f32 to vector<32x256xf32>
    %8 = arith.maximumf %6, %7 : vector<32x256xf32>
    %9 = arith.truncf %8 : vector<32x256xf32> to vector<32x256xbf16>
    %c0_5 = arith.constant 0 : index
    %c0_6 = arith.constant 0 : index
    %10 = vector.load %arg4[%c0_5, %c0_6] : memref<32x256xbf16, #tpu.memory_space<vmem>>, vector<32x256xbf16>
    tpu.vector_store %arg4[%c0_5, %c0_6], %9 {strides = array<i32>} : memref<32x256xbf16, #tpu.memory_space<vmem>>, vector<32x256xbf16>,
    return
  }
  func.func @transform_0(%arg0: i32) -> (i32, i32) {
    %c0_i32 = arith.constant 0 : i32
    %c0_i32_0 = arith.constant 0 : i32
    return %arg0, %c0_i32 : i32, i32
  }
  func.func @transform_1(%arg0: i32) -> (i32, i32) {
    %c0_i32 = arith.constant 0 : i32
    %c0_i32_0 = arith.constant 0 : i32
    %c0_i32_1 = arith.constant 0 : i32
    return %c0_i32, %c0_i32_0 : i32, i32
  }
  func.func @transform_2(%arg0: i32) -> (i32, i32) {
    %c0_i32 = arith.constant 0 : i32
    %c0_i32_0 = arith.constant 0 : i32
    %c0_i32_1 = arith.constant 0 : i32
    return %c0_i32, %c0_i32_0 : i32, i32
  }
  func.func @transform_3(%arg0: i32) -> (i32, i32) {
    %c0_i32 = arith.constant 0 : i32
    %c0_i32_0 = arith.constant 0 : i32
    return %arg0, %c0_i32 : i32, i32
  }
}

module attributes {stable_mosaic.version = 11 : i64} {
  func.func @_matmul_kernel(%arg0: i32, %arg1: i32, %arg2: i32, %arg3: memref<32x256xbf16, #tpu.memory_space<vmem>>, %arg4: memref<256x384xbf16, #tpu.memory_space<vmem>>, %arg5: memref<32x384xf32, #tpu.memory_space<vmem>>) attributes {dimension_semantics = [#tpu.dimension_semantics<parallel>, #tpu.dimension_semantics<parallel>, #tpu.dimension_semantics<arbitrary>], iteration_bounds = array<i64: 1, 1, 1>, scalar_prefetch = 0 : i64, scratch_operands = 0 : i64, tpu.core_type = #tpu.core_type<tc>, window_params = [{transform_indices = @transform_0, window_bounds = array<i64: 32, 256>}, {transform_indices = @transform_1, window_bounds = array<i64: 256, 384>}, {transform_indices = @transform_2, window_bounds = array<i64: 32, 384>}]} {
    %c0 = arith.constant 0 : index
    %c0_0 = arith.constant 0 : index
    %0 = vector.load %arg3[%c0, %c0_0] : memref<32x256xbf16, #tpu.memory_space<vmem>>, vector<32x256xbf16>
    %c0_1 = arith.constant 0 : index
    %c0_2 = arith.constant 0 : index
    %1 = vector.load %arg4[%c0_1, %c0_2] : memref<256x384xbf16, #tpu.memory_space<vmem>>, vector<256x384xbf16>
    %cst = arith.constant dense<0.000000e+00> : vector<32x384xf32>
    %2 = tpu.matmul %0, %1, %cst {dimension_numbers = #tpu.dot_dimension_numbers<[1], [0], [0], [1], [0, 0, 1, 1], [], []>} : vector<32x256xbf16>, vector<256x384xbf16>, vector<32x384xf32> -> vector<32x384xf32>
    %c0_i32 = arith.constant 0 : i32
    %3 = arith.cmpi eq, %arg2, %c0_i32 : i32
    %4 = arith.extui %3 : i1 to i32
    %c0_i32_3 = arith.constant 0 : i32
    %5 = arith.cmpi ne, %4, %c0_i32_3 : i32
    scf.if %5 {
      %c0_6 = arith.constant 0 : index
      %c0_7 = arith.constant 0 : index
      %9 = vector.load %arg5[%c0_6, %c0_7] : memref<32x384xf32, #tpu.memory_space<vmem>>, vector<32x384xf32>
      tpu.vector_store %arg5[%c0_6, %c0_7], %2 {strides = array<i32>} : memref<32x384xf32, #tpu.memory_space<vmem>>, vector<32x384xf32>,
    } else {
    }
    %c0_i32_4 = arith.constant 0 : i32
    %6 = arith.cmpi sgt, %arg2, %c0_i32_4 : i32
    %7 = arith.extui %6 : i1 to i32
    %c0_i32_5 = arith.constant 0 : i32
    %8 = arith.cmpi ne, %7, %c0_i32_5 : i32
    scf.if %8 {
      %c0_6 = arith.constant 0 : index
      %c0_7 = arith.constant 0 : index
      %9 = vector.load %arg5[%c0_6, %c0_7] : memref<32x384xf32, #tpu.memory_space<vmem>>, vector<32x384xf32>
      %10 = arith.addf %9, %2 : vector<32x384xf32>
      %c0_8 = arith.constant 0 : index
      %c0_9 = arith.constant 0 : index
      %11 = vector.load %arg5[%c0_8, %c0_9] : memref<32x384xf32, #tpu.memory_space<vmem>>, vector<32x384xf32>
      tpu.vector_store %arg5[%c0_8, %c0_9], %10 {strides = array<i32>} : memref<32x384xf32, #tpu.memory_space<vmem>>, vector<32x384xf32>,
    } else {
    }
    return
  }
  func.func @transform_0(%arg0: i32, %arg1: i32, %arg2: i32) -> (i32, i32) {
    %c0_i32 = arith.constant 0 : i32
    return %arg0, %arg2 : i32, i32
  }
  func.func @transform_1(%arg0: i32, %arg1: i32, %arg2: i32) -> (i32, i32) {
    %c0_i32 = arith.constant 0 : i32
    return %arg2, %arg1 : i32, i32
  }
  func.func @transform_2(%arg0: i32, %arg1: i32, %arg2: i32) -> (i32, i32) {
    %c0_i32 = arith.constant 0 : i32
    return %arg0, %arg1 : i32, i32
  }
}

</mosaic_0001>

<bundles_post_ra>
// kernel: simple_pose_net.8
= control target key start
LH: loop header
LB: loop body
LE: loop exit
PB: predicated region body
PF: predicated region fallthrough
CT: control target
= control target key end

     0   :  { %s1375_s0 = inlined_call_operand.vmem [shape: f32[512,128], index: 0, kind: input, shape index: {}]   ;;  %s1376_s1 = inlined_call_operand.vmem [shape: f32[1,128], index: 1, kind: input, shape index: {}]   ;;  %s1377_s2 = inlined_call_operand.vmem [shape: f32[1,128], index: 2, kind: input, shape index: {}]   ;;  %s1378_s3 = inlined_call_operand.vmem [shape: bf16[512,128], index: 3, kind: output, shape index: {}]  }
   0x1   :  { %v14_v0 = vld [vmem:[%s1375_s0] sm:$0xff]  ;;  %v15_v1 = vld [vmem:[%s1375_s0 + $0x8] sm:$0xff]  ;;  %v16_v6 = vld [vmem:[%s1375_s0 + $0x10] sm:$0xff] }
   0x2   :  { %v958_v2 = vld [vmem:[%s1376_s1] ss:$0 sm:$0xff]  ;;  %v17_v7 = vld [vmem:[%s1375_s0 + $0x18] sm:$0xff]  ;;  %v19_v11 = vld [vmem:[%s1375_s0 + $0x28] sm:$0xff] }
   0x3   :  { %v85_v3 = vmul.f32 %v958_v2, %v14_v0  ;;  %v86_v4 = vmul.f32 %v958_v2, %v15_v1  ;;  %v965_v5 = vld [vmem:[%s1377_s2] ss:$0 sm:$0xff]  ;;  %v87_v8 = vmul.f32 %v958_v2, %v16_v6  ;;  %v88_v9 = vmul.f32 %v958_v2, %v17_v7  ;;  %v20_v12 = vld [vmem:[%s1375_s0 + $0x30] sm:$0xff]  ;;  %v21_v17 = vld [vmem:[%s1375_s0 + $0x38] sm:$0xff] }
   0x4   :  { %v18_v10 = vld [vmem:[%s1375_s0 + $0x20] sm:$0xff]  ;;  %v90_v16 = vmul.f32 %v958_v2, %v19_v11  ;;  %v91_v20 = vmul.f32 %v958_v2, %v20_v12  ;;  %v92_v21 = vmul.f32 %v958_v2, %v21_v17  ;;  %v23_v27 = vld [vmem:[%s1375_s0 + $0x48] sm:$0xff]  ;;  %v24_v32 = vld [vmem:[%s1375_s0 + $0x50] sm:$0xff] }
   0x5   :  { %v156_v13 = vadd.f32 %v965_v5, %v85_v3  ;;  %v157_v14 = vadd.f32 %v965_v5, %v86_v4  ;;  %v89_v15 = vmul.f32 %v958_v2, %v18_v10  ;;  %v158_v18 = vadd.f32 %v965_v5, %v87_v8  ;;  %v22_v22 = vld [vmem:[%s1375_s0 + $0x40] sm:$0xff]  ;;  %v25_v33 = vld [vmem:[%s1375_s0 + $0x58] sm:$0xff]  ;;  %v27_v39 = vld [vmem:[%s1375_s0 + $0x68] sm:$0xff] }
   0x6   :  { %v159_v19 = vadd.f32 %v965_v5, %v88_v9  ;;  %v161_v26 = vadd.f32 %v965_v5, %v90_v16  ;;  %v162_v30 = vadd.f32 %v965_v5, %v91_v20  ;;  %v163_v31 = vadd.f32 %v965_v5, %v92_v21  ;;  %v26_v38 = vld [vmem:[%s1375_s0 + $0x60] sm:$0xff]  ;;  %v28_v44 = vld [vmem:[%s1375_s0 + $0x70] sm:$0xff]  ;;  %v29_v49 = vld [vmem:[%s1375_s0 + $0x78] sm:$0xff] }
   0x7   :  { %v220_v23 = vmax.f32 %v156_v13, 0.0  ;;  %v221_v24 = vmax.f32 %v157_v14, 0.0  ;;  %v160_v25 = vadd.f32 %v965_v5, %v89_v15  ;;  %v222_v28 = vmax.f32 %v158_v18, 0.0  ;;  %v30_v54 = vld [vmem:[%s1375_s0 + $0x80] sm:$0xff]  ;;  %v31_v63 = vld [vmem:[%s1375_s0 + $0x88] sm:$0xff]  ;;  %v32_v6 = vld [vmem:[%s1375_s0 + $0x90] sm:$0xff] }
   0x8   :  { %v223_v29 = vmax.f32 %v159_v19, 0.0  ;;  %v225_v36 = vmax.f32 %v161_v26, 0.0  ;;  %v93_v37 = vmul.f32 %v958_v2, %v22_v22  ;;  %v226_v41 = vmax.f32 %v162_v30, 0.0  ;;  %v33_v7 = vld [vmem:[%s1375_s0 + $0x98] sm:$0xff]  ;;  %v34_v12 = vld [vmem:[%s1375_s0 + $0xa0] sm:$0xff]  ;;  %v35_v13 = vld [vmem:[%s1375_s0 + $0xa8] sm:$0xff] }
   0x9   :  { %v741_v34 = vpack.c.bf16 %v221_v24, %v220_v23  ;;  %v224_v35 = vmax.f32 %v160_v25, 0.0  ;;  %v227_v42 = vmax.f32 %v163_v31, 0.0  ;;  %v94_v43 = vmul.f32 %v958_v2, %v23_v27  ;;  %v36_v18 = vld [vmem:[%s1375_s0 + $0xb0] sm:$0xff]  ;;  %v37_v23 = vld [vmem:[%s1375_s0 + $0xb8] sm:$0xff] }
   0xa   :  { %v746_v40 = vpack.c.bf16 %v223_v29, %v222_v28  ;;  %v164_v46 = vadd.f32 %v965_v5, %v93_v37  ;;  %v95_v47 = vmul.f32 %v958_v2, %v24_v32  ;;  %v96_v48 = vmul.f32 %v958_v2, %v25_v33  ;;  %v38_v28 = vld [vmem:[%s1375_s0 + $0xc0] sm:$0xff]  ;;  %v39_v37 = vld [vmem:[%s1375_s0 + $0xc8] sm:$0xff] }
   0xb   :  { %742 = vst [vmem:[%s1378_s3] sm:$0xff] %v741_v34   ;;  %v751_v45 = vpack.c.bf16 %v225_v36, %v224_v35  ;;  %v756_v50 = vpack.c.bf16 %v227_v42, %v226_v41  ;;  %v165_v51 = vadd.f32 %v965_v5, %v94_v43  ;;  %v97_v52 = vmul.f32 %v958_v2, %v26_v38  ;;  %v40_v42 = vld [vmem:[%s1375_s0 + $0xd0] sm:$0xff]  ;;  %v41_v43 = vld [vmem:[%s1375_s0 + $0xd8] sm:$0xff] }
   0xc   :  { %898 = vst [vmem:[%s1378_s3 + $0x8] sm:$0xff] %v746_v40   ;;  %v98_v53 = vmul.f32 %v958_v2, %v27_v39  ;;  %v228_v55 = vmax.f32 %v164_v46, 0.0  ;;  %v166_v56 = vadd.f32 %v965_v5, %v95_v47  ;;  %v167_v57 = vadd.f32 %v965_v5, %v96_v48  ;;  %v42_v48 = vld [vmem:[%s1375_s0 + $0xe0] sm:$0xff] }
   0xd   :  { %899 = vst [vmem:[%s1378_s3 + $0x10] sm:$0xff] %v751_v45   ;;  %v99_v58 = vmul.f32 %v958_v2, %v28_v44  ;;  %900 = vst [vmem:[%s1378_s3 + $0x18] sm:$0xff] %v756_v50   ;;  %v229_v59 = vmax.f32 %v165_v51, 0.0  ;;  %v168_v60 = vadd.f32 %v965_v5, %v97_v52  ;;  %v100_v62 = vmul.f32 %v958_v2, %v29_v49  ;;  %v43_v49 = vld [vmem:[%s1375_s0 + $0xe8] sm:$0xff] }
   0xe   :  { %v169_v61 = vadd.f32 %v965_v5, %v98_v53  ;;  %v230_v0 = vmax.f32 %v166_v56, 0.0  ;;  %v231_v1 = vmax.f32 %v167_v57, 0.0  ;;  %v101_v4 = vmul.f32 %v958_v2, %v30_v54  ;;  %v44_v54 = vld [vmem:[%s1375_s0 + $0xf0] sm:$0xff] }
   0xf   :  { %v170_v3 = vadd.f32 %v965_v5, %v99_v58  ;;  %v761_v8 = vpack.c.bf16 %v229_v59, %v228_v55  ;;  %v232_v9 = vmax.f32 %v168_v60, 0.0  ;;  %v171_v11 = vadd.f32 %v965_v5, %v100_v62  ;;  %v45_v59 = vld [vmem:[%s1375_s0 + $0xf8] sm:$0xff] }
  0x10   :  { %v233_v10 = vmax.f32 %v169_v61, 0.0  ;;  %v766_v14 = vpack.c.bf16 %v231_v1, %v230_v0  ;;  %v102_v16 = vmul.f32 %v958_v2, %v31_v63  ;;  %v172_v17 = vadd.f32 %v965_v5, %v101_v4  ;;  %v46_v0 = vld [vmem:[%s1375_s0 + $0x100] sm:$0xff] }
  0x11   :  { %v234_v15 = vmax.f32 %v170_v3, 0.0  ;;  %901 = vst [vmem:[%s1378_s3 + $0x20] sm:$0xff] %v761_v8   ;;  %v235_v20 = vmax.f32 %v171_v11, 0.0  ;;  %v103_v21 = vmul.f32 %v958_v2, %v32_v6  ;;  %v104_v22 = vmul.f32 %v958_v2, %v33_v7  ;;  %v47_v11 = vld [vmem:[%s1375_s0 + $0x108] sm:$0xff] }
  0x12   :  { %v771_v19 = vpack.c.bf16 %v233_v10, %v232_v9  ;;  %902 = vst [vmem:[%s1378_s3 + $0x28] sm:$0xff] %v766_v14   ;;  %v173_v24 = vadd.f32 %v965_v5, %v102_v16  ;;  %v236_v25 = vmax.f32 %v172_v17, 0.0  ;;  %v105_v26 = vmul.f32 %v958_v2, %v34_v12  ;;  %v48_v16 = vld [vmem:[%s1375_s0 + $0x110] sm:$0xff]  ;;  %v49_v17 = vld [vmem:[%s1375_s0 + $0x118] sm:$0xff] }
  0x13   :  { %v106_v27 = vmul.f32 %v958_v2, %v35_v13  ;;  %v776_v29 = vpack.c.bf16 %v235_v20, %v234_v15  ;;  %v174_v30 = vadd.f32 %v965_v5, %v103_v21  ;;  %v175_v31 = vadd.f32 %v965_v5, %v104_v22  ;;  %v50_v22 = vld [vmem:[%s1375_s0 + $0x120] sm:$0xff] }
  0x14   :  { %903 = vst [vmem:[%s1378_s3 + $0x30] sm:$0xff] %v771_v19   ;;  %v107_v32 = vmul.f32 %v958_v2, %v36_v18  ;;  %v237_v33 = vmax.f32 %v173_v24, 0.0  ;;  %v176_v34 = vadd.f32 %v965_v5, %v105_v26  ;;  %v108_v36 = vmul.f32 %v958_v2, %v37_v23  ;;  %v51_v23 = vld [vmem:[%s1375_s0 + $0x128] sm:$0xff] }
  0x15   :  { %v177_v35 = vadd.f32 %v965_v5, %v106_v27  ;;  %904 = vst [vmem:[%s1378_s3 + $0x38] sm:$0xff] %v776_v29   ;;  %v238_v38 = vmax.f32 %v174_v30, 0.0  ;;  %v239_v39 = vmax.f32 %v175_v31, 0.0  ;;  %v109_v41 = vmul.f32 %v958_v2, %v38_v28  ;;  %v52_v28 = vld [vmem:[%s1375_s0 + $0x130] sm:$0xff] }
  0x16   :  { %v178_v40 = vadd.f32 %v965_v5, %v107_v32  ;;  %v781_v44 = vpack.c.bf16 %v237_v33, %v236_v25  ;;  %v240_v45 = vmax.f32 %v176_v34, 0.0  ;;  %v179_v47 = vadd.f32 %v965_v5, %v108_v36  ;;  %v53_v33 = vld [vmem:[%s1375_s0 + $0x138] sm:$0xff] }
  0x17   :  { %v241_v46 = vmax.f32 %v177_v35, 0.0  ;;  %v786_v50 = vpack.c.bf16 %v239_v39, %v238_v38  ;;  %v110_v52 = vmul.f32 %v958_v2, %v39_v37  ;;  %v180_v53 = vadd.f32 %v965_v5, %v109_v41  ;;  %v54_v38 = vld [vmem:[%s1375_s0 + $0x140] sm:$0xff] }
  0x18   :  { %v242_v51 = vmax.f32 %v178_v40, 0.0  ;;  %905 = vst [vmem:[%s1378_s3 + $0x40] sm:$0xff] %v781_v44   ;;  %v243_v56 = vmax.f32 %v179_v47, 0.0  ;;  %v111_v57 = vmul.f32 %v958_v2, %v40_v42  ;;  %v112_v58 = vmul.f32 %v958_v2, %v41_v43  ;;  %v55_v47 = vld [vmem:[%s1375_s0 + $0x148] sm:$0xff] }
  0x19   :  { %v791_v55 = vpack.c.bf16 %v241_v46, %v240_v45  ;;  %906 = vst [vmem:[%s1378_s3 + $0x48] sm:$0xff] %v786_v50   ;;  %v181_v60 = vadd.f32 %v965_v5, %v110_v52  ;;  %v244_v61 = vmax.f32 %v180_v53, 0.0  ;;  %v113_v62 = vmul.f32 %v958_v2, %v42_v48  ;;  %v56_v52 = vld [vmem:[%s1375_s0 + $0x150] sm:$0xff]  ;;  %v57_v53 = vld [vmem:[%s1375_s0 + $0x158] sm:$0xff] }
  0x1a   :  { %v114_v63 = vmul.f32 %v958_v2, %v43_v49  ;;  %v796_v1 = vpack.c.bf16 %v243_v56, %v242_v51  ;;  %v182_v3 = vadd.f32 %v965_v5, %v111_v57  ;;  %v183_v4 = vadd.f32 %v965_v5, %v112_v58  ;;  %v58_v58 = vld [vmem:[%s1375_s0 + $0x160] sm:$0xff] }
  0x1b   :  { %907 = vst [vmem:[%s1378_s3 + $0x50] sm:$0xff] %v791_v55   ;;  %v115_v6 = vmul.f32 %v958_v2, %v44_v54  ;;  %v245_v7 = vmax.f32 %v181_v60, 0.0  ;;  %v184_v8 = vadd.f32 %v965_v5, %v113_v62  ;;  %v116_v10 = vmul.f32 %v958_v2, %v45_v59  ;;  %v59_v59 = vld [vmem:[%s1375_s0 + $0x168] sm:$0xff] }
  0x1c   :  { %v185_v9 = vadd.f32 %v965_v5, %v114_v63  ;;  %908 = vst [vmem:[%s1378_s3 + $0x58] sm:$0xff] %v796_v1   ;;  %v246_v12 = vmax.f32 %v182_v3, 0.0  ;;  %v247_v13 = vmax.f32 %v183_v4, 0.0  ;;  %v117_v15 = vmul.f32 %v958_v2, %v46_v0  ;;  %v60_v0 = vld [vmem:[%s1375_s0 + $0x170] sm:$0xff] }
  0x1d   :  { %v186_v14 = vadd.f32 %v965_v5, %v115_v6  ;;  %v801_v18 = vpack.c.bf16 %v245_v7, %v244_v61  ;;  %v248_v19 = vmax.f32 %v184_v8, 0.0  ;;  %v187_v21 = vadd.f32 %v965_v5, %v116_v10  ;;  %v61_v7 = vld [vmem:[%s1375_s0 + $0x178] sm:$0xff] }
  0x1e   :  { %v249_v20 = vmax.f32 %v185_v9, 0.0  ;;  %v806_v24 = vpack.c.bf16 %v247_v13, %v246_v12  ;;  %v118_v26 = vmul.f32 %v958_v2, %v47_v11  ;;  %v188_v27 = vadd.f32 %v965_v5, %v117_v15  ;;  %v62_v12 = vld [vmem:[%s1375_s0 + $0x180] sm:$0xff] }
  0x1f   :  { %v250_v25 = vmax.f32 %v186_v14, 0.0  ;;  %909 = vst [vmem:[%s1378_s3 + $0x60] sm:$0xff] %v801_v18   ;;  %v251_v30 = vmax.f32 %v187_v21, 0.0  ;;  %v119_v31 = vmul.f32 %v958_v2, %v48_v16  ;;  %v120_v32 = vmul.f32 %v958_v2, %v49_v17  ;;  %v63_v21 = vld [vmem:[%s1375_s0 + $0x188] sm:$0xff] }
  0x20   :  { %v811_v29 = vpack.c.bf16 %v249_v20, %v248_v19  ;;  %910 = vst [vmem:[%s1378_s3 + $0x68] sm:$0xff] %v806_v24   ;;  %v189_v34 = vadd.f32 %v965_v5, %v118_v26  ;;  %v252_v35 = vmax.f32 %v188_v27, 0.0  ;;  %v121_v36 = vmul.f32 %v958_v2, %v50_v22  ;;  %v64_v26 = vld [vmem:[%s1375_s0 + $0x190] sm:$0xff]  ;;  %v65_v27 = vld [vmem:[%s1375_s0 + $0x198] sm:$0xff] }
  0x21   :  { %v122_v37 = vmul.f32 %v958_v2, %v51_v23  ;;  %v816_v39 = vpack.c.bf16 %v251_v30, %v250_v25  ;;  %v190_v40 = vadd.f32 %v965_v5, %v119_v31  ;;  %v191_v41 = vadd.f32 %v965_v5, %v120_v32  ;;  %v66_v32 = vld [vmem:[%s1375_s0 + $0x1a0] sm:$0xff] }
  0x22   :  { %911 = vst [vmem:[%s1378_s3 + $0x70] sm:$0xff] %v811_v29   ;;  %v123_v42 = vmul.f32 %v958_v2, %v52_v28  ;;  %v253_v43 = vmax.f32 %v189_v34, 0.0  ;;  %v192_v44 = vadd.f32 %v965_v5, %v121_v36  ;;  %v124_v46 = vmul.f32 %v958_v2, %v53_v33  ;;  %v67_v33 = vld [vmem:[%s1375_s0 + $0x1a8] sm:$0xff] }
  0x23   :  { %v193_v45 = vadd.f32 %v965_v5, %v122_v37  ;;  %912 = vst [vmem:[%s1378_s3 + $0x78] sm:$0xff] %v816_v39   ;;  %v254_v48 = vmax.f32 %v190_v40, 0.0  ;;  %v255_v49 = vmax.f32 %v191_v41, 0.0  ;;  %v125_v51 = vmul.f32 %v958_v2, %v54_v38  ;;  %v68_v38 = vld [vmem:[%s1375_s0 + $0x1b0] sm:$0xff] }
  0x24   :  { %v194_v50 = vadd.f32 %v965_v5, %v123_v42  ;;  %v821_v54 = vpack.c.bf16 %v253_v43, %v252_v35  ;;  %v256_v55 = vmax.f32 %v192_v44, 0.0  ;;  %v195_v57 = vadd.f32 %v965_v5, %v124_v46  ;;  %v69_v43 = vld [vmem:[%s1375_s0 + $0x1b8] sm:$0xff] }
  0x25   :  { %v257_v56 = vmax.f32 %v193_v45, 0.0  ;;  %v826_v60 = vpack.c.bf16 %v255_v49, %v254_v48  ;;  %v126_v62 = vmul.f32 %v958_v2, %v55_v47  ;;  %v196_v63 = vadd.f32 %v965_v5, %v125_v51  ;;  %v70_v48 = vld [vmem:[%s1375_s0 + $0x1c0] sm:$0xff] }
  0x26   :  { %v258_v61 = vmax.f32 %v194_v50, 0.0  ;;  %913 = vst [vmem:[%s1378_s3 + $0x80] sm:$0xff] %v821_v54   ;;  %v259_v3 = vmax.f32 %v195_v57, 0.0  ;;  %v127_v4 = vmul.f32 %v958_v2, %v56_v52  ;;  %v128_v6 = vmul.f32 %v958_v2, %v57_v53  ;;  %v71_v57 = vld [vmem:[%s1375_s0 + $0x1c8] sm:$0xff] }
  0x27   :  { %v831_v1 = vpack.c.bf16 %v257_v56, %v256_v55  ;;  %914 = vst [vmem:[%s1378_s3 + $0x88] sm:$0xff] %v826_v60   ;;  %v197_v8 = vadd.f32 %v965_v5, %v126_v62  ;;  %v260_v9 = vmax.f32 %v196_v63, 0.0  ;;  %v129_v10 = vmul.f32 %v958_v2, %v58_v58  ;;  %v72_v62 = vld [vmem:[%s1375_s0 + $0x1d0] sm:$0xff]  ;;  %v73_v63 = vld [vmem:[%s1375_s0 + $0x1d8] sm:$0xff] }
  0x28   :  { %v130_v11 = vmul.f32 %v958_v2, %v59_v59  ;;  %v836_v13 = vpack.c.bf16 %v259_v3, %v258_v61  ;;  %v198_v14 = vadd.f32 %v965_v5, %v127_v4  ;;  %v199_v15 = vadd.f32 %v965_v5, %v128_v6  ;;  %v74_v6 = vld [vmem:[%s1375_s0 + $0x1e0] sm:$0xff] }
  0x29   :  { %915 = vst [vmem:[%s1378_s3 + $0x90] sm:$0xff] %v831_v1   ;;  %v131_v16 = vmul.f32 %v958_v2, %v60_v0  ;;  %v261_v17 = vmax.f32 %v197_v8, 0.0  ;;  %v200_v18 = vadd.f32 %v965_v5, %v129_v10  ;;  %v132_v20 = vmul.f32 %v958_v2, %v61_v7  ;;  %v75_v7 = vld [vmem:[%s1375_s0 + $0x1e8] sm:$0xff] }
  0x2a   :  { %v201_v19 = vadd.f32 %v965_v5, %v130_v11  ;;  %916 = vst [vmem:[%s1378_s3 + $0x98] sm:$0xff] %v836_v13   ;;  %v262_v22 = vmax.f32 %v198_v14, 0.0  ;;  %v263_v23 = vmax.f32 %v199_v15, 0.0  ;;  %v133_v25 = vmul.f32 %v958_v2, %v62_v12  ;;  %v76_v12 = vld [vmem:[%s1375_s0 + $0x1f0] sm:$0xff] }
  0x2b   :  { %v202_v24 = vadd.f32 %v965_v5, %v131_v16  ;;  %v841_v28 = vpack.c.bf16 %v261_v17, %v260_v9  ;;  %v264_v29 = vmax.f32 %v200_v18, 0.0  ;;  %v203_v31 = vadd.f32 %v965_v5, %v132_v20  ;;  %v77_v17 = vld [vmem:[%s1375_s0 + $0x1f8] sm:$0xff] }
  0x2c   :  { %v265_v30 = vmax.f32 %v201_v19, 0.0  ;;  %v846_v34 = vpack.c.bf16 %v263_v23, %v262_v22  ;;  %v134_v36 = vmul.f32 %v958_v2, %v63_v21  ;;  %v204_v37 = vadd.f32 %v965_v5, %v133_v25 }
  0x2d   :  { %v266_v35 = vmax.f32 %v202_v24, 0.0  ;;  %917 = vst [vmem:[%s1378_s3 + $0xa0] sm:$0xff] %v841_v28   ;;  %v267_v40 = vmax.f32 %v203_v31, 0.0  ;;  %v135_v41 = vmul.f32 %v958_v2, %v64_v26  ;;  %v136_v42 = vmul.f32 %v958_v2, %v65_v27 }
  0x2e   :  { %v851_v39 = vpack.c.bf16 %v265_v30, %v264_v29  ;;  %918 = vst [vmem:[%s1378_s3 + $0xa8] sm:$0xff] %v846_v34   ;;  %v205_v44 = vadd.f32 %v965_v5, %v134_v36  ;;  %v268_v45 = vmax.f32 %v204_v37, 0.0  ;;  %v137_v46 = vmul.f32 %v958_v2, %v66_v32 }
  0x2f   :  { %v138_v47 = vmul.f32 %v958_v2, %v67_v33  ;;  %v856_v49 = vpack.c.bf16 %v267_v40, %v266_v35  ;;  %v206_v50 = vadd.f32 %v965_v5, %v135_v41  ;;  %v207_v51 = vadd.f32 %v965_v5, %v136_v42 }
  0x30   :  { %919 = vst [vmem:[%s1378_s3 + $0xb0] sm:$0xff] %v851_v39   ;;  %v139_v52 = vmul.f32 %v958_v2, %v68_v38  ;;  %v269_v53 = vmax.f32 %v205_v44, 0.0  ;;  %v208_v54 = vadd.f32 %v965_v5, %v137_v46  ;;  %v140_v56 = vmul.f32 %v958_v2, %v69_v43 }
  0x31   :  { %v209_v55 = vadd.f32 %v965_v5, %v138_v47  ;;  %920 = vst [vmem:[%s1378_s3 + $0xb8] sm:$0xff] %v856_v49   ;;  %v270_v58 = vmax.f32 %v206_v50, 0.0  ;;  %v271_v59 = vmax.f32 %v207_v51, 0.0  ;;  %v141_v61 = vmul.f32 %v958_v2, %v70_v48 }
  0x32   :  { %v210_v60 = vadd.f32 %v965_v5, %v139_v52  ;;  %v861_v0 = vpack.c.bf16 %v269_v53, %v268_v45  ;;  %v272_v1 = vmax.f32 %v208_v54, 0.0  ;;  %v211_v4 = vadd.f32 %v965_v5, %v140_v56 }
  0x33   :  { %v273_v3 = vmax.f32 %v209_v55, 0.0  ;;  %v866_v8 = vpack.c.bf16 %v271_v59, %v270_v58  ;;  %v142_v10 = vmul.f32 %v958_v2, %v71_v57  ;;  %v212_v11 = vadd.f32 %v965_v5, %v141_v61 }
  0x34   :  { %v274_v9 = vmax.f32 %v210_v60, 0.0  ;;  %921 = vst [vmem:[%s1378_s3 + $0xc0] sm:$0xff] %v861_v0   ;;  %v275_v14 = vmax.f32 %v211_v4, 0.0  ;;  %v143_v15 = vmul.f32 %v958_v2, %v72_v62  ;;  %v144_v16 = vmul.f32 %v958_v2, %v73_v63 }
  0x35   :  { %v871_v13 = vpack.c.bf16 %v273_v3, %v272_v1  ;;  %922 = vst [vmem:[%s1378_s3 + $0xc8] sm:$0xff] %v866_v8   ;;  %v213_v18 = vadd.f32 %v965_v5, %v142_v10  ;;  %v276_v19 = vmax.f32 %v212_v11, 0.0  ;;  %v145_v20 = vmul.f32 %v958_v2, %v74_v6 }
  0x36   :  { %v146_v21 = vmul.f32 %v958_v2, %v75_v7  ;;  %v876_v22 = vpack.c.bf16 %v275_v14, %v274_v9  ;;  %v214_v23 = vadd.f32 %v965_v5, %v143_v15  ;;  %v215_v24 = vadd.f32 %v965_v5, %v144_v16 }
  0x37   :  { %923 = vst [vmem:[%s1378_s3 + $0xd0] sm:$0xff] %v871_v13   ;;  %v147_v25 = vmul.f32 %v958_v2, %v76_v12  ;;  %v277_v26 = vmax.f32 %v213_v18, 0.0  ;;  %v216_v27 = vadd.f32 %v965_v5, %v145_v20  ;;  %v148_v29 = vmul.f32 %v958_v2, %v77_v17 }
  0x38   :  { %v217_v28 = vadd.f32 %v965_v5, %v146_v21  ;;  %924 = vst [vmem:[%s1378_s3 + $0xd8] sm:$0xff] %v876_v22   ;;  %v278_v30 = vmax.f32 %v214_v23, 0.0  ;;  %v279_v31 = vmax.f32 %v215_v24, 0.0 }
  0x39   :  { %v218_v32 = vadd.f32 %v965_v5, %v147_v25  ;;  %v881_v33 = vpack.c.bf16 %v277_v26, %v276_v19  ;;  %v280_v34 = vmax.f32 %v216_v27, 0.0  ;;  %v219_v36 = vadd.f32 %v965_v5, %v148_v29 }
  0x3a   :  { %v281_v35 = vmax.f32 %v217_v28, 0.0  ;;  %v886_v37 = vpack.c.bf16 %v279_v31, %v278_v30 }
  0x3b   :  { %v282_v38 = vmax.f32 %v218_v32, 0.0  ;;  %925 = vst [vmem:[%s1378_s3 + $0xe0] sm:$0xff] %v881_v33   ;;  %v283_v39 = vmax.f32 %v219_v36, 0.0 }
  0x3c   :  { %v891_v2 = vpack.c.bf16 %v281_v35, %v280_v34  ;;  %926 = vst [vmem:[%s1378_s3 + $0xe8] sm:$0xff] %v886_v37  }
  0x3d   :  { %v896_v40 = vpack.c.bf16 %v283_v39, %v282_v38 }
  0x3e   :  { %927 = vst [vmem:[%s1378_s3 + $0xf0] sm:$0xff] %v891_v2  }
  0x3f   :  { %928 = vst [vmem:[%s1378_s3 + $0xf8] sm:$0xff] %v896_v40  }

// kernel: simple_pose_net.7
= control target key start
LH: loop header
LB: loop body
LE: loop exit
PB: predicated region body
PF: predicated region fallthrough
CT: control target
= control target key end

     0   :  { %v1611_v0 = vmov 0   ;;  %vm446_vm0 = vcmask 261120   ;;  %vm1365_vm1 = vcmask 1040384   ;;  %vm1367_vm2 = vcmask 1041408   ;;  %s2405_s1 = inlined_call_operand.vmem [shape: bf16[160,128], index: 1, kind: input, shape index: {}]   ;;  %s2406_s0 = inlined_call_operand.vmem [shape: bf16[512,160], index: 0, kind: input, shape index: {}]   ;;  %s2407_s2 = inlined_call_operand.vmem [shape: f32[512,128], index: 2, kind: output, shape index: {0}]   ;;  %s2408_s3 = inlined_call_operand.vmem [shape: f32[1,8,128], index: 3, kind: output, shape index: {1}]  }
   0x1   :  { %543 = vmatprep.subr.bf16.mxu0 %v1611_v0  ;;  %v1505_v1 = vld [vmem:[%s2405_s1 + $0x38] sm:$0xff]   ;;  %1484 = vmatprep.subr.bf16.mxu1 %v1611_v0  ;;  %v1506_v2 = vld [vmem:[%s2405_s1 + $0x30] sm:$0xff]   ;;  %v1507_v3 = vld [vmem:[%s2405_s1 + $0x28] sm:$0xff]  }
   0x2   :  { %544 = vmatpush1.bf16.msra.mxu0 %v1505_v1  ;;  %1494 = vmatpush1.bf16.msra.mxu1 %v1505_v1  ;;  %v1508_v4 = vld [vmem:[%s2405_s1 + $0x20] sm:$0xff]   ;;  %v1509_v6 = vld [vmem:[%s2405_s1 + $0x18] sm:$0xff]   ;;  %v1510_v7 = vld [vmem:[%s2405_s1 + $0x10] sm:$0xff]  }
   0x3   :  { %545 = vmatprep.subr.bf16.mxu0 %v1611_v0  ;;  %1485 = vmatprep.subr.bf16.mxu1 %v1611_v0  ;;  %v1517_v5 = vld [vmem:[%s2406_s0 + $0x4] ss:$8 sps:$4 sm:$0xff]   ;;  %v1515_v13 = vld [vmem:[%s2406_s0] ss:$8 sps:$4 sm:$0xff]   ;;  %v1518_v14 = vld [vmem:[%s2406_s0 + $0x14] ss:$8 sps:$4 sm:$0xff]  }
   0x4   :  { %1452 = vmatprep.mubr.msk.bf16.mxu0 %vm446_vm0, %v1517_v5  ;;  %v1541_v8 = vld [vmem:[%s2406_s0 + $0x104] ss:$8 sps:$4 sm:$0xff]   ;;  %v1539_v15 = vld [vmem:[%s2406_s0 + $0x100] ss:$8 sps:$4 sm:$0xff]   ;;  %v1545_v16 = vld [vmem:[%s2406_s0 + $0x114] ss:$8 sps:$4 sm:$0xff]  }
   0x5   :  { %v1511_v9 = vld [vmem:[%s2405_s1 + $0x8] sm:$0xff]   ;;  %1468 = vmatprep.mubr.msk.bf16.mxu1 %vm446_vm0, %v1541_v8  ;;  %v1512_v10 = vld [vmem:[%s2405_s1] sm:$0xff]   ;;  %v1520_v17 = vld [vmem:[%s2406_s0 + $0x10] ss:$8 sps:$4 sm:$0xff]  }
   0x6   :  { %546 = vmatpush1.bf16.msra.mxu0 %v1506_v2  ;;  %1495 = vmatpush1.bf16.msra.mxu1 %v1506_v2  ;;  %v1513_v11 = vld [vmem:[%s2405_s1 + $0x48] sm:$0xff]   ;;  %v1514_v12 = vld [vmem:[%s2405_s1 + $0x40] sm:$0xff]   ;;  %v1547_v19 = vld [vmem:[%s2406_s0 + $0x110] ss:$8 sps:$4 sm:$0xff]  }
   0x7   :  { %547 = vmatprep.subr.bf16.mxu0 %v1611_v0  ;;  %1486 = vmatprep.subr.bf16.mxu1 %v1611_v0  ;;  %v1521_v18 = vld [vmem:[%s2406_s0 + $0x24] ss:$8 sps:$4 sm:$0xff]   ;;  %v1523_v21 = vld [vmem:[%s2406_s0 + $0x20] ss:$8 sps:$4 sm:$0xff]   ;;  %v1524_v23 = vld [vmem:[%s2406_s0 + $0x34] ss:$8 sps:$4 sm:$0xff]  }
   0x8   :  { %v1551_v20 = vld [vmem:[%s2406_s0 + $0x124] ss:$8 sps:$4 sm:$0xff]   ;;  %v1553_v22 = vld [vmem:[%s2406_s0 + $0x120] ss:$8 sps:$4 sm:$0xff]   ;;  %v1557_v24 = vld [vmem:[%s2406_s0 + $0x134] ss:$8 sps:$4 sm:$0xff]  }
   0x9   :  { %v1526_v25 = vld [vmem:[%s2406_s0 + $0x30] ss:$8 sps:$4 sm:$0xff]   ;;  %v1527_v27 = vld [vmem:[%s2406_s0 + $0x44] ss:$8 sps:$4 sm:$0xff]   ;;  %v1529_v29 = vld [vmem:[%s2406_s0 + $0x40] ss:$8 sps:$4 sm:$0xff]  }
   0xa   :  { %548 = vmatpush1.bf16.msra.mxu0 %v1507_v3  ;;  %1496 = vmatpush1.bf16.msra.mxu1 %v1507_v3  ;;  %v1559_v26 = vld [vmem:[%s2406_s0 + $0x130] ss:$8 sps:$4 sm:$0xff]   ;;  %v1563_v28 = vld [vmem:[%s2406_s0 + $0x144] ss:$8 sps:$4 sm:$0xff]   ;;  %v1565_v30 = vld [vmem:[%s2406_s0 + $0x140] ss:$8 sps:$4 sm:$0xff]  }
   0xb   :  { %549 = vmatprep.subr.bf16.mxu0 %v1611_v0  ;;  %1487 = vmatprep.subr.bf16.mxu1 %v1611_v0  ;;  %v1530_v31 = vld [vmem:[%s2406_s0 + $0x54] ss:$8 sps:$4 sm:$0xff]   ;;  %v1532_v33 = vld [vmem:[%s2406_s0 + $0x50] ss:$8 sps:$4 sm:$0xff]   ;;  %v1533_v35 = vld [vmem:[%s2406_s0 + $0x64] ss:$8 sps:$4 sm:$0xff]  }
   0xc   :  { %v1569_v32 = vld [vmem:[%s2406_s0 + $0x154] ss:$8 sps:$4 sm:$0xff]   ;;  %v1571_v34 = vld [vmem:[%s2406_s0 + $0x150] ss:$8 sps:$4 sm:$0xff]   ;;  %v1575_v36 = vld [vmem:[%s2406_s0 + $0x164] ss:$8 sps:$4 sm:$0xff]  }
   0xd   :  { %v1535_v37 = vld [vmem:[%s2406_s0 + $0x60] ss:$8 sps:$4 sm:$0xff]   ;;  %v1536_v39 = vld [vmem:[%s2406_s0 + $0x74] ss:$8 sps:$4 sm:$0xff]   ;;  %v1538_v41 = vld [vmem:[%s2406_s0 + $0x70] ss:$8 sps:$4 sm:$0xff]  }
   0xe   :  { %550 = vmatpush1.bf16.msra.mxu0 %v1508_v4  ;;  %1497 = vmatpush1.bf16.msra.mxu1 %v1508_v4  ;;  %v1577_v38 = vld [vmem:[%s2406_s0 + $0x160] ss:$8 sps:$4 sm:$0xff]   ;;  %v1581_v40 = vld [vmem:[%s2406_s0 + $0x174] ss:$8 sps:$4 sm:$0xff]   ;;  %v1583_v42 = vld [vmem:[%s2406_s0 + $0x170] ss:$8 sps:$4 sm:$0xff]  }
   0xf   :  { %551 = vmatprep.subr.bf16.mxu0 %v1611_v0  ;;  %1488 = vmatprep.subr.bf16.mxu1 %v1611_v0  ;;  %v1542_v43 = vld [vmem:[%s2406_s0 + $0x84] ss:$8 sps:$4 sm:$0xff]   ;;  %v1544_v45 = vld [vmem:[%s2406_s0 + $0x80] ss:$8 sps:$4 sm:$0xff]   ;;  %v1548_v47 = vld [vmem:[%s2406_s0 + $0x94] ss:$8 sps:$4 sm:$0xff]  }
  0x10   :  { %v1587_v44 = vld [vmem:[%s2406_s0 + $0x184] ss:$8 sps:$4 sm:$0xff]   ;;  %v1589_v46 = vld [vmem:[%s2406_s0 + $0x180] ss:$8 sps:$4 sm:$0xff]   ;;  %v1590_v48 = vld [vmem:[%s2406_s0 + $0x194] ss:$8 sps:$4 sm:$0xff]  }
  0x11   :  { %v1550_v49 = vld [vmem:[%s2406_s0 + $0x90] ss:$8 sps:$4 sm:$0xff]   ;;  %v1554_v51 = vld [vmem:[%s2406_s0 + $0xa4] ss:$8 sps:$4 sm:$0xff]   ;;  %v1556_v53 = vld [vmem:[%s2406_s0 + $0xa0] ss:$8 sps:$4 sm:$0xff]  }
  0x12   :  { %552 = vmatpush1.bf16.msra.mxu0 %v1509_v6  ;;  %1498 = vmatpush1.bf16.msra.mxu1 %v1509_v6  ;;  %v1592_v50 = vld [vmem:[%s2406_s0 + $0x190] ss:$8 sps:$4 sm:$0xff]   ;;  %v1593_v52 = vld [vmem:[%s2406_s0 + $0x1a4] ss:$8 sps:$4 sm:$0xff]   ;;  %v1595_v54 = vld [vmem:[%s2406_s0 + $0x1a0] ss:$8 sps:$4 sm:$0xff]  }
  0x13   :  { %553 = vmatprep.subr.bf16.mxu0 %v1611_v0  ;;  %1489 = vmatprep.subr.bf16.mxu1 %v1611_v0  ;;  %v1560_v55 = vld [vmem:[%s2406_s0 + $0xb4] ss:$8 sps:$4 sm:$0xff]   ;;  %v1562_v57 = vld [vmem:[%s2406_s0 + $0xb0] ss:$8 sps:$4 sm:$0xff]   ;;  %v1566_v59 = vld [vmem:[%s2406_s0 + $0xc4] ss:$8 sps:$4 sm:$0xff]  }
  0x14   :  { %v1596_v56 = vld [vmem:[%s2406_s0 + $0x1b4] ss:$8 sps:$4 sm:$0xff]   ;;  %v1598_v58 = vld [vmem:[%s2406_s0 + $0x1b0] ss:$8 sps:$4 sm:$0xff]   ;;  %v1599_v60 = vld [vmem:[%s2406_s0 + $0x1c4] ss:$8 sps:$4 sm:$0xff]  }
  0x15   :  { %v1568_v61 = vld [vmem:[%s2406_s0 + $0xc0] ss:$8 sps:$4 sm:$0xff]   ;;  %v1572_v63 = vld [vmem:[%s2406_s0 + $0xd4] ss:$8 sps:$4 sm:$0xff]   ;;  %v1574_v1 = vld [vmem:[%s2406_s0 + $0xd0] ss:$8 sps:$4 sm:$0xff]  }
  0x16   :  { %554 = vmatpush1.bf16.msra.mxu0 %v1510_v7  ;;  %1499 = vmatpush1.bf16.msra.mxu1 %v1510_v7  ;;  %v1601_v62 = vld [vmem:[%s2406_s0 + $0x1c0] ss:$8 sps:$4 sm:$0xff]   ;;  %v1604_v2 = vld [vmem:[%s2406_s0 + $0x1d0] ss:$8 sps:$4 sm:$0xff]   ;;  %v1578_v3 = vld [vmem:[%s2406_s0 + $0xe4] ss:$8 sps:$4 sm:$0xff]  }
  0x17   :  { %555 = vmatprep.subr.bf16.mxu0 %v1611_v0  ;;  %1490 = vmatprep.subr.bf16.mxu1 %v1611_v0  ;;  %v1605_v4 = vld [vmem:[%s2406_s0 + $0x1e4] ss:$8 sps:$4 sm:$0xff]   ;;  %v1580_v5 = vld [vmem:[%s2406_s0 + $0xe0] ss:$8 sps:$4 sm:$0xff]   ;;  %v1584_v7 = vld [vmem:[%s2406_s0 + $0xf4] ss:$8 sps:$4 sm:$0xff]  }
  0x18   :  { %v1607_v6 = vld [vmem:[%s2406_s0 + $0x1e0] ss:$8 sps:$4 sm:$0xff]   ;;  %v1608_v8 = vld [vmem:[%s2406_s0 + $0x1f4] ss:$8 sps:$4 sm:$0xff]  }
  0x1a   :  { %556 = vmatpush1.bf16.msra.mxu0 %v1511_v9  ;;  %1500 = vmatpush1.bf16.msra.mxu1 %v1511_v9  ;;  %v1586_v9 = vld [vmem:[%s2406_s0 + $0xf0] ss:$8 sps:$4 sm:$0xff]  }
  0x1b   :  { %557 = vmatprep.subr.bf16.mxu0 %v1611_v0  ;;  %1491 = vmatprep.subr.bf16.mxu1 %v1611_v0 }
  0x1e   :  { %558 = vmatpush1.bf16.msra.mxu0 %v1512_v10  ;;  %1501 = vmatpush1.bf16.msra.mxu1 %v1512_v10  ;;  %v1610_v10 = vld [vmem:[%s2406_s0 + $0x1f0] ss:$8 sps:$4 sm:$0xff]  }
  0x1f   :  { %571 = vmatprep.subr.bf16.mxu0 %v1611_v0  ;;  %1492 = vmatprep.subr.bf16.mxu1 %v1611_v0 }
  0x22   :  { %572 = vmatpush2.bf16.msra.mxu0 %v1513_v11  ;;  %1502 = vmatpush2.bf16.msra.mxu1 %v1513_v11 }
  0x23   :  { %573 = vmatprep.subr.bf16.mxu0 %v1611_v0  ;;  %1493 = vmatprep.subr.bf16.mxu1 %v1611_v0  ;;  %v1602_v0 = vld [vmem:[%s2406_s0 + $0x1d4] ss:$8 sps:$4 sm:$0xff]  }
  0x26   :  { %574 = vmatpush2.bf16.msra.mxu0 %v1514_v12  ;;  %1503 = vmatpush2.bf16.msra.mxu1 %v1514_v12 }
  0x29   :  { %576 = vmatmul.mubr.bf16.vlgmr.msra.gmra.mxu0 %v1515_v13  ;;  %704 = vmatmul.mubr.bf16.vlgmr.msra.gmra.mxu1 %v1539_v15 }
  0x2a   :  { %1453 = vmatprep.mubr.msk.bf16.mxu0 %vm446_vm0, %v1518_v14  ;;  %1469 = vmatprep.mubr.msk.bf16.mxu1 %vm446_vm0, %v1545_v16 }
  0x31   :  { %584 = vmatmul.mubr.bf16.gmra.mxu0 %v1520_v17  ;;  %712 = vmatmul.mubr.bf16.gmra.mxu1 %v1547_v19 }
  0x32   :  { %1454 = vmatprep.mubr.msk.bf16.mxu0 %vm446_vm0, %v1521_v18  ;;  %1470 = vmatprep.mubr.msk.bf16.mxu1 %vm446_vm0, %v1551_v20 }
  0x39   :  { %592 = vmatmul.mubr.bf16.gmra.mxu0 %v1523_v21  ;;  %720 = vmatmul.mubr.bf16.gmra.mxu1 %v1553_v22 }
  0x3a   :  { %1455 = vmatprep.mubr.msk.bf16.mxu0 %vm446_vm0, %v1524_v23  ;;  %1471 = vmatprep.mubr.msk.bf16.mxu1 %vm446_vm0, %v1557_v24 }
  0x41   :  { %600 = vmatmul.mubr.bf16.gmra.mxu0 %v1526_v25  ;;  %728 = vmatmul.mubr.bf16.gmra.mxu1 %v1559_v26 }
  0x42   :  { %1456 = vmatprep.mubr.msk.bf16.mxu0 %vm446_vm0, %v1527_v27  ;;  %1472 = vmatprep.mubr.msk.bf16.mxu1 %vm446_vm0, %v1563_v28 }
  0x49   :  { %608 = vmatmul.mubr.bf16.gmra.mxu0 %v1529_v29  ;;  %736 = vmatmul.mubr.bf16.gmra.mxu1 %v1565_v30 }
  0x4a   :  { %1457 = vmatprep.mubr.msk.bf16.mxu0 %vm446_vm0, %v1530_v31  ;;  %1473 = vmatprep.mubr.msk.bf16.mxu1 %vm446_vm0, %v1569_v32 }
  0x51   :  { %616 = vmatmul.mubr.bf16.gmra.mxu0 %v1532_v33  ;;  %744 = vmatmul.mubr.bf16.gmra.mxu1 %v1571_v34 }
  0x52   :  { %1458 = vmatprep.mubr.msk.bf16.mxu0 %vm446_vm0, %v1533_v35  ;;  %1474 = vmatprep.mubr.msk.bf16.mxu1 %vm446_vm0, %v1575_v36 }
  0x59   :  { %624 = vmatmul.mubr.bf16.gmra.mxu0 %v1535_v37  ;;  %752 = vmatmul.mubr.bf16.gmra.mxu1 %v1577_v38 }
  0x5a   :  { %1459 = vmatprep.mubr.msk.bf16.mxu0 %vm446_vm0, %v1536_v39  ;;  %1475 = vmatprep.mubr.msk.bf16.mxu1 %vm446_vm0, %v1581_v40 }
  0x61   :  { %632 = vmatmul.mubr.bf16.gmra.mxu0 %v1538_v41  ;;  %760 = vmatmul.mubr.bf16.gmra.mxu1 %v1583_v42 }
  0x62   :  { %1460 = vmatprep.mubr.msk.bf16.mxu0 %vm446_vm0, %v1542_v43  ;;  %1476 = vmatprep.mubr.msk.bf16.mxu1 %vm446_vm0, %v1587_v44 }
  0x69   :  { %640 = vmatmul.mubr.bf16.gmra.mxu0 %v1544_v45  ;;  %768 = vmatmul.mubr.bf16.gmra.mxu1 %v1589_v46 }
  0x6a   :  { %1461 = vmatprep.mubr.msk.bf16.mxu0 %vm446_vm0, %v1548_v47  ;;  %1477 = vmatprep.mubr.msk.bf16.mxu1 %vm446_vm0, %v1590_v48 }
  0x71   :  { %648 = vmatmul.mubr.bf16.gmra.mxu0 %v1550_v49  ;;  %776 = vmatmul.mubr.bf16.gmra.mxu1 %v1592_v50 }
  0x72   :  { %1462 = vmatprep.mubr.msk.bf16.mxu0 %vm446_vm0, %v1554_v51  ;;  %1478 = vmatprep.mubr.msk.bf16.mxu1 %vm446_vm0, %v1593_v52 }
  0x79   :  { %656 = vmatmul.mubr.bf16.gmra.mxu0 %v1556_v53  ;;  %784 = vmatmul.mubr.bf16.gmra.mxu1 %v1595_v54 }
  0x7a   :  { %1463 = vmatprep.mubr.msk.bf16.mxu0 %vm446_vm0, %v1560_v55  ;;  %1479 = vmatprep.mubr.msk.bf16.mxu1 %vm446_vm0, %v1596_v56 }
  0x81   :  { %664 = vmatmul.mubr.bf16.gmra.mxu0 %v1562_v57  ;;  %792 = vmatmul.mubr.bf16.gmra.mxu1 %v1598_v58 }
  0x82   :  { %1464 = vmatprep.mubr.msk.bf16.mxu0 %vm446_vm0, %v1566_v59  ;;  %1480 = vmatprep.mubr.msk.bf16.mxu1 %vm446_vm0, %v1599_v60 }
  0x89   :  { %672 = vmatmul.mubr.bf16.gmra.mxu0 %v1568_v61  ;;  %800 = vmatmul.mubr.bf16.gmra.mxu1 %v1601_v62 }
  0x8a   :  { %1465 = vmatprep.mubr.msk.bf16.mxu0 %vm446_vm0, %v1572_v63  ;;  %1481 = vmatprep.mubr.msk.bf16.mxu1 %vm446_vm0, %v1602_v0 }
  0x91   :  { %680 = vmatmul.mubr.bf16.gmra.mxu0 %v1574_v1  ;;  %808 = vmatmul.mubr.bf16.gmra.mxu1 %v1604_v2 }
  0x92   :  { %1466 = vmatprep.mubr.msk.bf16.mxu0 %vm446_vm0, %v1578_v3  ;;  %1482 = vmatprep.mubr.msk.bf16.mxu1 %vm446_vm0, %v1605_v4 }
  0x99   :  { %688 = vmatmul.mubr.bf16.gmra.mxu0 %v1580_v5  ;;  %816 = vmatmul.mubr.bf16.gmra.mxu1 %v1607_v6 }
  0x9a   :  { %1467 = vmatprep.mubr.msk.bf16.mxu0 %vm446_vm0, %v1584_v7  ;;  %1483 = vmatprep.mubr.msk.bf16.mxu1 %vm446_vm0, %v1608_v8 }
  0xa1   :  { %696 = vmatmul.mubr.bf16.gmra.mxu0 %v1586_v9  ;;  %824 = vmatmul.mubr.bf16.gmra.mxu1 %v1610_v10 }
  0xe9   :  { %v1886_v11 = vpop.f32.mrf.mxu0  ;;  %v1888_v12 = vpop.f32.mrf.mxu1 }
  0xea   :  { %836 = vst [vmem:[%s2407_s2] sm:$0xff] %v1886_v11  ;;  %868 = vst [vmem:[%s2407_s2 + $0x100] sm:$0xff] %v1888_v12 }
  0xeb   :  { %v579_v13 = vpop.f32.mrf.mxu0  ;;  %v707_v14 = vpop.f32.mrf.mxu1 }
  0xed   :  { %v1898_v15 = vpop.f32.mrf.mxu0  ;;  %v1900_v16 = vpop.f32.mrf.mxu1 }
  0xee   :  { %837 = vst [vmem:[%s2407_s2 + $0x8] sm:$0xff] %v1898_v15  ;;  %869 = vst [vmem:[%s2407_s2 + $0x108] sm:$0xff] %v1900_v16  ;;  %v1233_v13 = vmul.f32 %v1898_v15, %v1898_v15 }
  0xef   :  { %v582_v17 = vpop.f32.mrf.mxu0  ;;  %v710_v18 = vpop.f32.mrf.mxu1 }
  0xf0   :  { %v1232_v18 = vmul.f32 %v1886_v11, %v1886_v11 }
  0xf1   :  { %v1910_v19 = vpop.f32.mrf.mxu0  ;;  %v1912_v20 = vpop.f32.mrf.mxu1 }
  0xf2   :  { %838 = vst [vmem:[%s2407_s2 + $0x10] sm:$0xff] %v1910_v19  ;;  %870 = vst [vmem:[%s2407_s2 + $0x110] sm:$0xff] %v1912_v20 }
  0xf3   :  { %v587_v21 = vpop.f32.mrf.mxu0  ;;  %v715_v22 = vpop.f32.mrf.mxu1 }
  0xf4   :  { %v1163_v21 = vadd.f32 %v1898_v15, %v1886_v11  ;;  %v1234_v22 = vmul.f32 %v1910_v19, %v1910_v19 }
  0xf5   :  { %v1922_v23 = vpop.f32.mrf.mxu0  ;;  %v1924_v24 = vpop.f32.mrf.mxu1 }
  0xf6   :  { %839 = vst [vmem:[%s2407_s2 + $0x18] sm:$0xff] %v1922_v23  ;;  %871 = vst [vmem:[%s2407_s2 + $0x118] sm:$0xff] %v1924_v24  ;;  %v1235_v11 = vmul.f32 %v1922_v23, %v1922_v23 }
  0xf7   :  { %v590_v25 = vpop.f32.mrf.mxu0  ;;  %v718_v26 = vpop.f32.mrf.mxu1 }
  0xf9   :  { %v1934_v27 = vpop.f32.mrf.mxu0  ;;  %v1936_v28 = vpop.f32.mrf.mxu1 }
  0xfa   :  { %840 = vst [vmem:[%s2407_s2 + $0x20] sm:$0xff] %v1934_v27  ;;  %872 = vst [vmem:[%s2407_s2 + $0x120] sm:$0xff] %v1936_v28 }
  0xfb   :  { %v595_v29 = vpop.f32.mrf.mxu0  ;;  %v723_v30 = vpop.f32.mrf.mxu1 }
  0xfc   :  { %v1296_v29 = vadd.f32 %v1233_v13, %v1232_v18  ;;  %v1164_v30 = vadd.f32 %v1163_v21, %v1910_v19 }
  0xfd   :  { %v1946_v31 = vpop.f32.mrf.mxu0  ;;  %v1948_v32 = vpop.f32.mrf.mxu1 }
  0xfe   :  { %841 = vst [vmem:[%s2407_s2 + $0x28] sm:$0xff] %v1946_v31  ;;  %873 = vst [vmem:[%s2407_s2 + $0x128] sm:$0xff] %v1948_v32 }
  0xff   :  { %v598_v33 = vpop.f32.mrf.mxu0  ;;  %v726_v34 = vpop.f32.mrf.mxu1 }
 0x100   :  { %v1297_v34 = vadd.f32 %v1296_v29, %v1234_v22 }
 0x101   :  { %v1958_v35 = vpop.f32.mrf.mxu0  ;;  %v1960_v36 = vpop.f32.mrf.mxu1 }
 0x102   :  { %842 = vst [vmem:[%s2407_s2 + $0x30] sm:$0xff] %v1958_v35  ;;  %874 = vst [vmem:[%s2407_s2 + $0x130] sm:$0xff] %v1960_v36 }
 0x103   :  { %v603_v37 = vpop.f32.mrf.mxu0  ;;  %v731_v38 = vpop.f32.mrf.mxu1 }
 0x104   :  { %v1165_v37 = vadd.f32 %v1164_v30, %v1922_v23  ;;  %v1236_v38 = vmul.f32 %v1934_v27, %v1934_v27  ;;  %v1237_v23 = vmul.f32 %v1946_v31, %v1946_v31 }
 0x105   :  { %v1970_v39 = vpop.f32.mrf.mxu0  ;;  %v1972_v40 = vpop.f32.mrf.mxu1 }
 0x106   :  { %843 = vst [vmem:[%s2407_s2 + $0x38] sm:$0xff] %v1970_v39  ;;  %875 = vst [vmem:[%s2407_s2 + $0x138] sm:$0xff] %v1972_v40 }
 0x107   :  { %v606_v41 = vpop.f32.mrf.mxu0  ;;  %v734_v42 = vpop.f32.mrf.mxu1 }
 0x108   :  { %v1298_v42 = vadd.f32 %v1297_v34, %v1235_v11 }
 0x109   :  { %v1982_v43 = vpop.f32.mrf.mxu0  ;;  %v1984_v44 = vpop.f32.mrf.mxu1 }
 0x10a   :  { %844 = vst [vmem:[%s2407_s2 + $0x40] sm:$0xff] %v1982_v43  ;;  %876 = vst [vmem:[%s2407_s2 + $0x140] sm:$0xff] %v1984_v44 }
 0x10b   :  { %v611_v45 = vpop.f32.mrf.mxu0  ;;  %v739_v46 = vpop.f32.mrf.mxu1 }
 0x10c   :  { %v1166_v45 = vadd.f32 %v1165_v37, %v1934_v27 }
 0x10d   :  { %v1994_v47 = vpop.f32.mrf.mxu0  ;;  %v1996_v48 = vpop.f32.mrf.mxu1 }
 0x10e   :  { %845 = vst [vmem:[%s2407_s2 + $0x48] sm:$0xff] %v1994_v47  ;;  %877 = vst [vmem:[%s2407_s2 + $0x148] sm:$0xff] %v1996_v48 }
 0x10f   :  { %v614_v49 = vpop.f32.mrf.mxu0  ;;  %v742_v50 = vpop.f32.mrf.mxu1 }
 0x110   :  { %v1299_v50 = vadd.f32 %v1298_v42, %v1236_v38 }
 0x111   :  { %v2006_v51 = vpop.f32.mrf.mxu0  ;;  %v2008_v52 = vpop.f32.mrf.mxu1 }
 0x112   :  { %846 = vst [vmem:[%s2407_s2 + $0x50] sm:$0xff] %v2006_v51  ;;  %878 = vst [vmem:[%s2407_s2 + $0x150] sm:$0xff] %v2008_v52 }
 0x113   :  { %v619_v53 = vpop.f32.mrf.mxu0  ;;  %v747_v54 = vpop.f32.mrf.mxu1 }
 0x114   :  { %v1167_v53 = vadd.f32 %v1166_v45, %v1946_v31  ;;  %v1238_v54 = vmul.f32 %v1958_v35, %v1958_v35  ;;  %v1239_v31 = vmul.f32 %v1970_v39, %v1970_v39 }
 0x115   :  { %v2018_v55 = vpop.f32.mrf.mxu0  ;;  %v2020_v56 = vpop.f32.mrf.mxu1 }
 0x116   :  { %847 = vst [vmem:[%s2407_s2 + $0x58] sm:$0xff] %v2018_v55  ;;  %879 = vst [vmem:[%s2407_s2 + $0x158] sm:$0xff] %v2020_v56 }
 0x117   :  { %v622_v57 = vpop.f32.mrf.mxu0  ;;  %v750_v58 = vpop.f32.mrf.mxu1 }
 0x118   :  { %v1300_v58 = vadd.f32 %v1299_v50, %v1237_v23 }
 0x119   :  { %v2030_v59 = vpop.f32.mrf.mxu0  ;;  %v2032_v60 = vpop.f32.mrf.mxu1 }
 0x11a   :  { %848 = vst [vmem:[%s2407_s2 + $0x60] sm:$0xff] %v2030_v59  ;;  %880 = vst [vmem:[%s2407_s2 + $0x160] sm:$0xff] %v2032_v60 }
 0x11b   :  { %v627_v61 = vpop.f32.mrf.mxu0  ;;  %v755_v62 = vpop.f32.mrf.mxu1 }
 0x11c   :  { %v1168_v61 = vadd.f32 %v1167_v53, %v1958_v35 }
 0x11d   :  { %v2042_v63 = vpop.f32.mrf.mxu0  ;;  %v2044_v0 = vpop.f32.mrf.mxu1 }
 0x11e   :  { %849 = vst [vmem:[%s2407_s2 + $0x68] sm:$0xff] %v2042_v63  ;;  %881 = vst [vmem:[%s2407_s2 + $0x168] sm:$0xff] %v2044_v0 }
 0x11f   :  { %v630_v1 = vpop.f32.mrf.mxu0  ;;  %v758_v2 = vpop.f32.mrf.mxu1 }
 0x120   :  { %v1301_v2 = vadd.f32 %v1300_v58, %v1238_v54 }
 0x121   :  { %v2054_v3 = vpop.f32.mrf.mxu0  ;;  %v2056_v4 = vpop.f32.mrf.mxu1 }
 0x122   :  { %850 = vst [vmem:[%s2407_s2 + $0x70] sm:$0xff] %v2054_v3  ;;  %882 = vst [vmem:[%s2407_s2 + $0x170] sm:$0xff] %v2056_v4 }
 0x123   :  { %v635_v5 = vpop.f32.mrf.mxu0  ;;  %v763_v6 = vpop.f32.mrf.mxu1 }
 0x124   :  { %v1169_v5 = vadd.f32 %v1168_v61, %v1970_v39  ;;  %v1240_v6 = vmul.f32 %v1982_v43, %v1982_v43  ;;  %v1241_v39 = vmul.f32 %v1994_v47, %v1994_v47 }
 0x125   :  { %v2066_v7 = vpop.f32.mrf.mxu0  ;;  %v2068_v8 = vpop.f32.mrf.mxu1 }
 0x126   :  { %851 = vst [vmem:[%s2407_s2 + $0x78] sm:$0xff] %v2066_v7  ;;  %883 = vst [vmem:[%s2407_s2 + $0x178] sm:$0xff] %v2068_v8  ;;  %v1170_v13 = vadd.f32 %v1169_v5, %v1982_v43 }
 0x127   :  { %v638_v9 = vpop.f32.mrf.mxu0  ;;  %v766_v10 = vpop.f32.mrf.mxu1 }
 0x128   :  { %v1302_v10 = vadd.f32 %v1301_v2, %v1239_v31 }
 0x129   :  { %v2080_v14 = vpop.f32.mrf.mxu0  ;;  %v2082_v17 = vpop.f32.mrf.mxu1 }
 0x12a   :  { %852 = vst [vmem:[%s2407_s2 + $0x80] sm:$0xff] %v2080_v14  ;;  %884 = vst [vmem:[%s2407_s2 + $0x180] sm:$0xff] %v2082_v17  ;;  %v1303_v22 = vadd.f32 %v1302_v10, %v1240_v6 }
 0x12b   :  { %v643_v25 = vpop.f32.mrf.mxu0  ;;  %v771_v26 = vpop.f32.mrf.mxu1 }
 0x12c   :  { %v1171_v25 = vadd.f32 %v1170_v13, %v1994_v47  ;;  %v1242_v26 = vmul.f32 %v2006_v51, %v2006_v51  ;;  %v1304_v30 = vadd.f32 %v1303_v22, %v1241_v39  ;;  %v1243_v47 = vmul.f32 %v2018_v55, %v2018_v55 }
 0x12d   :  { %v2101_v15 = vpop.f32.mrf.mxu0  ;;  %v2103_v33 = vpop.f32.mrf.mxu1 }
 0x12e   :  { %853 = vst [vmem:[%s2407_s2 + $0x88] sm:$0xff] %v2101_v15  ;;  %885 = vst [vmem:[%s2407_s2 + $0x188] sm:$0xff] %v2103_v33  ;;  %v1172_v11 = vadd.f32 %v1171_v25, %v2006_v51  ;;  %v1305_v38 = vadd.f32 %v1304_v30, %v1242_v26 }
 0x12f   :  { %v646_v19 = vpop.f32.mrf.mxu0  ;;  %v774_v41 = vpop.f32.mrf.mxu1 }
 0x130   :  { %v1173_v19 = vadd.f32 %v1172_v11, %v2018_v55  ;;  %v1244_v41 = vmul.f32 %v2030_v59, %v2030_v59  ;;  %v1306_v45 = vadd.f32 %v1305_v38, %v1243_v47  ;;  %v1245_v55 = vmul.f32 %v2042_v63, %v2042_v63 }
 0x131   :  { %v2119_v46 = vpop.f32.mrf.mxu0  ;;  %v2121_v49 = vpop.f32.mrf.mxu1 }
 0x132   :  { %854 = vst [vmem:[%s2407_s2 + $0x90] sm:$0xff] %v2119_v46  ;;  %886 = vst [vmem:[%s2407_s2 + $0x190] sm:$0xff] %v2121_v49  ;;  %v1174_v23 = vadd.f32 %v1173_v19, %v2030_v59  ;;  %v1307_v54 = vadd.f32 %v1306_v45, %v1244_v41 }
 0x133   :  { %v651_v27 = vpop.f32.mrf.mxu0  ;;  %v779_v57 = vpop.f32.mrf.mxu1 }
 0x134   :  { %v1175_v27 = vadd.f32 %v1174_v23, %v2042_v63  ;;  %v1246_v57 = vmul.f32 %v2054_v3, %v2054_v3  ;;  %v1308_v61 = vadd.f32 %v1307_v54, %v1245_v55  ;;  %v1247_v63 = vmul.f32 %v2066_v7, %v2066_v7 }
 0x135   :  { %v2137_v62 = vpop.f32.mrf.mxu0  ;;  %v2139_v1 = vpop.f32.mrf.mxu1 }
 0x136   :  { %855 = vst [vmem:[%s2407_s2 + $0x98] sm:$0xff] %v2137_v62  ;;  %887 = vst [vmem:[%s2407_s2 + $0x198] sm:$0xff] %v2139_v1  ;;  %v1176_v31 = vadd.f32 %v1175_v27, %v2054_v3  ;;  %v1309_v6 = vadd.f32 %v1308_v61, %v1246_v57 }
 0x137   :  { %v654_v35 = vpop.f32.mrf.mxu0  ;;  %v782_v9 = vpop.f32.mrf.mxu1 }
 0x138   :  { %v1177_v35 = vadd.f32 %v1176_v31, %v2066_v7  ;;  %v1248_v9 = vmul.f32 %v2080_v14, %v2080_v14  ;;  %v1310_v13 = vadd.f32 %v1309_v6, %v1247_v63  ;;  %v1249_v7 = vmul.f32 %v2101_v15, %v2101_v15 }
 0x139   :  { %v2155_v18 = vpop.f32.mrf.mxu0  ;;  %v2157_v21 = vpop.f32.mrf.mxu1 }
 0x13a   :  { %856 = vst [vmem:[%s2407_s2 + $0xa0] sm:$0xff] %v2155_v18  ;;  %888 = vst [vmem:[%s2407_s2 + $0x1a0] sm:$0xff] %v2157_v21  ;;  %v1178_v39 = vadd.f32 %v1177_v35, %v2080_v14  ;;  %v1311_v26 = vadd.f32 %v1310_v13, %v1248_v9 }
 0x13b   :  { %v659_v43 = vpop.f32.mrf.mxu0  ;;  %v787_v29 = vpop.f32.mrf.mxu1 }
 0x13c   :  { %v1179_v43 = vadd.f32 %v1178_v39, %v2101_v15  ;;  %v1250_v29 = vmul.f32 %v2119_v46, %v2119_v46  ;;  %v1312_v11 = vadd.f32 %v1311_v26, %v1249_v7  ;;  %v1251_v15 = vmul.f32 %v2137_v62, %v2137_v62 }
 0x13d   :  { %v2173_v34 = vpop.f32.mrf.mxu0  ;;  %v2175_v37 = vpop.f32.mrf.mxu1 }
 0x13e   :  { %857 = vst [vmem:[%s2407_s2 + $0xa8] sm:$0xff] %v2173_v34  ;;  %889 = vst [vmem:[%s2407_s2 + $0x1a8] sm:$0xff] %v2175_v37  ;;  %v1180_v47 = vadd.f32 %v1179_v43, %v2119_v46  ;;  %v1313_v41 = vadd.f32 %v1312_v11, %v1250_v29 }
 0x13f   :  { %v662_v51 = vpop.f32.mrf.mxu0  ;;  %v790_v42 = vpop.f32.mrf.mxu1 }
 0x140   :  { %v1181_v51 = vadd.f32 %v1180_v47, %v2137_v62  ;;  %v1252_v42 = vmul.f32 %v2155_v18, %v2155_v18  ;;  %v1314_v23 = vadd.f32 %v1313_v41, %v1251_v15  ;;  %v1253_v62 = vmul.f32 %v2173_v34, %v2173_v34 }
 0x141   :  { %v665_v50 = vpop.f32.mrf.mxu0  ;;  %v2191_v53 = vpop.f32.mrf.mxu1 }
 0x142   :  { %858 = vst [vmem:[%s2407_s2 + $0xb0] sm:$0xff] %v665_v50  ;;  %890 = vst [vmem:[%s2407_s2 + $0x1b0] sm:$0xff] %v2191_v53  ;;  %v1182_v55 = vadd.f32 %v1181_v51, %v2155_v18  ;;  %v1315_v57 = vadd.f32 %v1314_v23, %v1252_v42 }
 0x143   :  { %v667_v59 = vpop.f32.mrf.mxu0  ;;  %v795_v58 = vpop.f32.mrf.mxu1 }
 0x144   :  { %v1183_v59 = vadd.f32 %v1182_v55, %v2173_v34  ;;  %v1254_v58 = vmul.f32 %v665_v50, %v665_v50  ;;  %v1316_v31 = vadd.f32 %v1315_v57, %v1253_v62 }
 0x145   :  { %v668_v2 = vpop.f32.mrf.mxu0  ;;  %v2206_v5 = vpop.f32.mrf.mxu1 }
 0x146   :  { %859 = vst [vmem:[%s2407_s2 + $0xb8] sm:$0xff] %v668_v2  ;;  %891 = vst [vmem:[%s2407_s2 + $0x1b8] sm:$0xff] %v2206_v5  ;;  %v1184_v63 = vadd.f32 %v1183_v59, %v665_v50  ;;  %v1255_v6 = vmul.f32 %v668_v2, %v668_v2 }
 0x147   :  { %v670_v3 = vpop.f32.mrf.mxu0  ;;  %v798_v10 = vpop.f32.mrf.mxu1 }
 0x148   :  { %v1317_v3 = vadd.f32 %v1316_v31, %v1254_v58  ;;  %v1185_v34 = vadd.f32 %v1184_v63, %v668_v2 }
 0x149   :  { %v673_v22 = vpop.f32.mrf.mxu0  ;;  %v2221_v25 = vpop.f32.mrf.mxu1 }
 0x14a   :  { %860 = vst [vmem:[%s2407_s2 + $0xc0] sm:$0xff] %v673_v22  ;;  %892 = vst [vmem:[%s2407_s2 + $0x1c0] sm:$0xff] %v2221_v25  ;;  %v1256_v10 = vmul.f32 %v673_v22, %v673_v22  ;;  %v1318_v7 = vadd.f32 %v1317_v3, %v1255_v6  ;;  %v1186_v50 = vadd.f32 %v1185_v34, %v673_v22 }
 0x14b   :  { %v675_v14 = vpop.f32.mrf.mxu0  ;;  %v803_v30 = vpop.f32.mrf.mxu1 }
 0x14c   :  { %v1319_v14 = vadd.f32 %v1318_v7, %v1256_v10 }
 0x14d   :  { %v676_v38 = vpop.f32.mrf.mxu0  ;;  %v2236_v19 = vpop.f32.mrf.mxu1 }
 0x14e   :  { %861 = vst [vmem:[%s2407_s2 + $0xc8] sm:$0xff] %v676_v38  ;;  %893 = vst [vmem:[%s2407_s2 + $0x1c8] sm:$0xff] %v2236_v19  ;;  %v1257_v26 = vmul.f32 %v676_v38, %v676_v38  ;;  %v1187_v2 = vadd.f32 %v1186_v50, %v676_v38 }
 0x14f   :  { %v678_v46 = vpop.f32.mrf.mxu0  ;;  %v806_v45 = vpop.f32.mrf.mxu1 }
 0x150   :  { %v1320_v15 = vadd.f32 %v1319_v14, %v1257_v26 }
 0x151   :  { %v681_v54 = vpop.f32.mrf.mxu0  ;;  %v2251_v27 = vpop.f32.mrf.mxu1 }
 0x152   :  { %862 = vst [vmem:[%s2407_s2 + $0xd0] sm:$0xff] %v681_v54  ;;  %894 = vst [vmem:[%s2407_s2 + $0x1d0] sm:$0xff] %v2251_v27  ;;  %v1258_v30 = vmul.f32 %v681_v54, %v681_v54  ;;  %v1188_v22 = vadd.f32 %v1187_v2, %v681_v54 }
 0x153   :  { %v683_v18 = vpop.f32.mrf.mxu0  ;;  %v811_v61 = vpop.f32.mrf.mxu1 }
 0x154   :  { %v1321_v46 = vadd.f32 %v1320_v15, %v1258_v30  ;;  %v1265_v30 = vmul.f32 %v1900_v16, %v1900_v16  ;;  %v1266_v15 = vmul.f32 %v1912_v20, %v1912_v20 }
 0x155   :  { %v684_v35 = vpop.f32.mrf.mxu0  ;;  %v2261_v9 = vpop.f32.mrf.mxu1 }
 0x156   :  { %863 = vst [vmem:[%s2407_s2 + $0xd8] sm:$0xff] %v684_v35  ;;  %895 = vst [vmem:[%s2407_s2 + $0x1d8] sm:$0xff] %v2261_v9  ;;  %v1259_v41 = vmul.f32 %v684_v35, %v684_v35  ;;  %v1189_v38 = vadd.f32 %v1188_v22, %v684_v35 }
 0x157   :  { %v686_v13 = vpop.f32.mrf.mxu0  ;;  %v814_v39 = vpop.f32.mrf.mxu1 }
 0x158   :  { %v1322_v62 = vadd.f32 %v1321_v46, %v1259_v41 }
 0x159   :  { %v689_v43 = vpop.f32.mrf.mxu0  ;;  %v2270_v29 = vpop.f32.mrf.mxu1 }
 0x15a   :  { %864 = vst [vmem:[%s2407_s2 + $0xe0] sm:$0xff] %v689_v43  ;;  %896 = vst [vmem:[%s2407_s2 + $0x1e0] sm:$0xff] %v2270_v29  ;;  %v1260_v45 = vmul.f32 %v689_v43, %v689_v43  ;;  %v1190_v54 = vadd.f32 %v1189_v38, %v689_v43  ;;  %v1264_v43 = vmul.f32 %v1888_v12, %v1888_v12 }
 0x15b   :  { %v691_v11 = vpop.f32.mrf.mxu0  ;;  %v819_v47 = vpop.f32.mrf.mxu1 }
 0x15c   :  { %v1323_v18 = vadd.f32 %v1322_v62, %v1260_v45 }
 0x15d   :  { %v692_v51 = vpop.f32.mrf.mxu0  ;;  %v2279_v42 = vpop.f32.mrf.mxu1 }
 0x15e   :  { %865 = vst [vmem:[%s2407_s2 + $0xe8] sm:$0xff] %v692_v51  ;;  %897 = vst [vmem:[%s2407_s2 + $0x1e8] sm:$0xff] %v2279_v42  ;;  %v1261_v57 = vmul.f32 %v692_v51, %v692_v51  ;;  %v1191_v61 = vadd.f32 %v1190_v54, %v692_v51  ;;  %v1267_v51 = vmul.f32 %v1924_v24, %v1924_v24 }
 0x15f   :  { %v694_v23 = vpop.f32.mrf.mxu0  ;;  %v822_v55 = vpop.f32.mrf.mxu1 }
 0x160   :  { %v1324_v35 = vadd.f32 %v1323_v18, %v1261_v57 }
 0x161   :  { %v697_v59 = vpop.f32.mrf.mxu0  ;;  %v2288_v58 = vpop.f32.mrf.mxu1 }
 0x162   :  { %866 = vst [vmem:[%s2407_s2 + $0xf0] sm:$0xff] %v697_v59  ;;  %v1262_v31 = vmul.f32 %v697_v59, %v697_v59  ;;  %898 = vst [vmem:[%s2407_s2 + $0x1f0] sm:$0xff] %v2288_v58  ;;  %v1192_v3 = vadd.f32 %v1191_v61, %v697_v59 }
 0x163   :  { %v699_v63 = vpop.f32.mrf.mxu0  ;;  %v827_v6 = vpop.f32.mrf.mxu1 }
 0x164   :  { %v1325_v13 = vadd.f32 %v1324_v35, %v1262_v31 }
 0x165   :  { %v700_v34 = vpop.f32.mrf.mxu0  ;;  %v2297_v10 = vpop.f32.mrf.mxu1 }
 0x166   :  { %867 = vst [vmem:[%s2407_s2 + $0xf8] sm:$0xff] %v700_v34  ;;  %v1193_v39 = vadd.f32 %v1192_v3, %v700_v34  ;;  %v1263_v7 = vmul.f32 %v700_v34, %v700_v34  ;;  %899 = vst [vmem:[%s2407_s2 + $0x1f8] sm:$0xff] %v2297_v10 }
 0x167   :  { %v702_v50 = vpop.f32.mrf.mxu0  ;;  %v830_v26 = vpop.f32.mrf.mxu1 }
 0x168   :  { %v1194_v14 = vadd.f32 %v1193_v39, %v1888_v12  ;;  %v1326_v2 = vadd.f32 %v1325_v13, %v1263_v7  ;;  %v1268_v12 = vmul.f32 %v1936_v28, %v1936_v28 }
 0x16a   :  { %v1195_v11 = vadd.f32 %v1194_v14, %v1900_v16  ;;  %v1327_v47 = vadd.f32 %v1326_v2, %v1264_v43  ;;  %v1269_v16 = vmul.f32 %v1948_v32, %v1948_v32 }
 0x16c   :  { %v1196_v22 = vadd.f32 %v1195_v11, %v1912_v20  ;;  %v1328_v41 = vadd.f32 %v1327_v47, %v1265_v30  ;;  %v1270_v20 = vmul.f32 %v1960_v36, %v1960_v36 }
 0x16e   :  { %v1197_v46 = vadd.f32 %v1196_v22, %v1924_v24  ;;  %v1329_v38 = vadd.f32 %v1328_v41, %v1266_v15  ;;  %v1271_v24 = vmul.f32 %v1972_v40, %v1972_v40  ;;  %v1281_v15 = vmul.f32 %v2103_v33, %v2103_v33 }
 0x170   :  { %v1198_v45 = vadd.f32 %v1197_v46, %v1936_v28  ;;  %v1330_v23 = vadd.f32 %v1329_v38, %v1267_v51  ;;  %v1272_v28 = vmul.f32 %v1984_v44, %v1984_v44  ;;  %v1282_v51 = vmul.f32 %v2121_v49, %v2121_v49 }
 0x171   :  { %v1283_v38 = vmul.f32 %v2139_v1, %v2139_v1 }
 0x172   :  { %v1199_v55 = vadd.f32 %v1198_v45, %v1948_v32  ;;  %v1331_v62 = vadd.f32 %v1330_v23, %v1268_v12  ;;  %v1273_v32 = vmul.f32 %v1996_v48, %v1996_v48  ;;  %v1284_v45 = vmul.f32 %v2157_v21, %v2157_v21 }
 0x174   :  { %v1200_v54 = vadd.f32 %v1199_v55, %v1960_v36  ;;  %v1332_v57 = vadd.f32 %v1331_v62, %v1269_v16  ;;  %v1274_v36 = vmul.f32 %v2008_v52, %v2008_v52  ;;  %v1285_v16 = vmul.f32 %v2175_v37, %v2175_v37 }
 0x175   :  { %v1286_v62 = vmul.f32 %v2191_v53, %v2191_v53 }
 0x176   :  { %v1201_v59 = vadd.f32 %v1200_v54, %v1972_v40  ;;  %v1333_v18 = vadd.f32 %v1332_v57, %v1270_v20  ;;  %v1275_v40 = vmul.f32 %v2020_v56, %v2020_v56  ;;  %v1287_v54 = vmul.f32 %v2206_v5, %v2206_v5 }
 0x178   :  { %v1334_v61 = vadd.f32 %v1333_v18, %v1271_v24  ;;  %v1202_v31 = vadd.f32 %v1201_v59, %v1984_v44  ;;  %v1276_v44 = vmul.f32 %v2032_v60, %v2032_v60  ;;  %v1288_v24 = vmul.f32 %v2221_v25, %v2221_v25 }
 0x179   :  { %v1289_v18 = vmul.f32 %v2236_v19, %v2236_v19 }
 0x17a   :  { %v1203_v63 = vadd.f32 %v1202_v31, %v1996_v48  ;;  %v1335_v6 = vadd.f32 %v1334_v61, %v1272_v28  ;;  %v1277_v48 = vmul.f32 %v2044_v0, %v2044_v0  ;;  %v1290_v61 = vmul.f32 %v2251_v27, %v2251_v27 }
 0x17c   :  { %v1204_v35 = vadd.f32 %v1203_v63, %v2008_v52  ;;  %v1336_v3 = vadd.f32 %v1335_v6, %v1273_v32  ;;  %v1278_v52 = vmul.f32 %v2056_v4, %v2056_v4  ;;  %v1291_v32 = vmul.f32 %v2261_v9, %v2261_v9 }
 0x17d   :  { %v1292_v6 = vmul.f32 %v2270_v29, %v2270_v29 }
 0x17e   :  { %v1205_v34 = vadd.f32 %v1204_v35, %v2020_v56  ;;  %v1337_v13 = vadd.f32 %v1336_v3, %v1274_v36  ;;  %v1279_v56 = vmul.f32 %v2068_v8, %v2068_v8  ;;  %v1293_v35 = vmul.f32 %v2279_v42, %v2279_v42 }
 0x180   :  { %v1206_v39 = vadd.f32 %v1205_v34, %v2032_v60  ;;  %v1338_v7 = vadd.f32 %v1337_v13, %v1275_v40  ;;  %v1280_v60 = vmul.f32 %v2082_v17, %v2082_v17  ;;  %v1294_v40 = vmul.f32 %v2288_v58, %v2288_v58 }
 0x181   :  { %v1295_v13 = vmul.f32 %v2297_v10, %v2297_v10 }
 0x182   :  { %v1207_v50 = vadd.f32 %v1206_v39, %v2044_v0  ;;  %v1339_v26 = vadd.f32 %v1338_v7, %v1276_v44 }
 0x184   :  { %v1208_v43 = vadd.f32 %v1207_v50, %v2056_v4  ;;  %v1340_v14 = vadd.f32 %v1339_v26, %v1277_v48 }
 0x186   :  { %v1209_v2 = vadd.f32 %v1208_v43, %v2068_v8  ;;  %v1341_v30 = vadd.f32 %v1340_v14, %v1278_v52 }
 0x188   :  { %v1210_v11 = vadd.f32 %v1209_v2, %v2082_v17  ;;  %v1342_v47 = vadd.f32 %v1341_v30, %v1279_v56 }
 0x18a   :  { %v1211_v0 = vadd.f32 %v1210_v11, %v2103_v33  ;;  %v1343_v22 = vadd.f32 %v1342_v47, %v1280_v60 }
 0x18c   :  { %v1344_v4 = vadd.f32 %v1343_v22, %v1281_v15  ;;  %v1212_v41 = vadd.f32 %v1211_v0, %v2121_v49 }
 0x18e   :  { %v1345_v8 = vadd.f32 %v1344_v4, %v1282_v51  ;;  %v1213_v46 = vadd.f32 %v1212_v41, %v2139_v1 }
 0x190   :  { %v1346_v17 = vadd.f32 %v1345_v8, %v1283_v38  ;;  %v1214_v12 = vadd.f32 %v1213_v46, %v2157_v21 }
 0x192   :  { %v1347_v33 = vadd.f32 %v1346_v17, %v1284_v45  ;;  %v1215_v23 = vadd.f32 %v1214_v12, %v2175_v37 }
 0x194   :  { %v1348_v55 = vadd.f32 %v1347_v33, %v1285_v16  ;;  %v1216_v49 = vadd.f32 %v1215_v23, %v2191_v53 }
 0x196   :  { %v1349_v20 = vadd.f32 %v1348_v55, %v1286_v62  ;;  %v1217_v1 = vadd.f32 %v1216_v49, %v2206_v5 }
 0x198   :  { %v1350_v57 = vadd.f32 %v1349_v20, %v1287_v54  ;;  %v1218_v21 = vadd.f32 %v1217_v1, %v2221_v25 }
 0x19a   :  { %v1351_v59 = vadd.f32 %v1350_v57, %v1288_v24  ;;  %v1219_v37 = vadd.f32 %v1218_v21, %v2236_v19 }
 0x19c   :  { %v1352_v28 = vadd.f32 %v1351_v59, %v1289_v18  ;;  %v1220_v53 = vadd.f32 %v1219_v37, %v2251_v27 }
 0x19e   :  { %v1353_v31 = vadd.f32 %v1352_v28, %v1290_v61  ;;  %v1221_v5 = vadd.f32 %v1220_v53, %v2261_v9 }
 0x1a0   :  { %v1354_v63 = vadd.f32 %v1353_v31, %v1291_v32  ;;  %v1222_v25 = vadd.f32 %v1221_v5, %v2270_v29 }
 0x1a2   :  { %v1355_v36 = vadd.f32 %v1354_v63, %v1292_v6  ;;  %v1223_v19 = vadd.f32 %v1222_v25, %v2279_v42 }
 0x1a4   :  { %v1356_v3 = vadd.f32 %v1355_v36, %v1293_v35  ;;  %v1224_v27 = vadd.f32 %v1223_v19, %v2288_v58 }
 0x1a6   :  { %v1357_v34 = vadd.f32 %v1356_v3, %v1294_v40  ;;  %v1225_v9 = vadd.f32 %v1224_v27, %v2297_v10 }
 0x1a8   :  { %v1226_v44 = vrot.slane %v1225_v9, 4  ;;  %v1358_v29 = vadd.f32 %v1357_v34, %v1295_v13 }
 0x1aa   :  { %v1227_v39 = vadd.f32 %v1226_v44, %v1225_v9  ;;  %v1359_v7 = vrot.slane %v1358_v29, 4 }
 0x1ac   :  { %v1228_v48 = vrot.slane %v1227_v39, 2  ;;  %v1360_v50 = vadd.f32 %v1359_v7, %v1358_v29 }
 0x1ae   :  { %v1229_v26 = vadd.f32 %v1228_v48, %v1227_v39  ;;  %v1361_v42 = vrot.slane %v1360_v50, 2 }
 0x1b0   :  { %v1230_v52 = vrot.slane %v1229_v26, 1  ;;  %v1362_v43 = vadd.f32 %v1361_v42, %v1360_v50 }
 0x1b2   :  { %v1363_v14 = vrot.slane %v1362_v43, 1  ;;  %v1231_v56 = vadd.f32 %v1230_v52, %v1229_v26 }
 0x1b4   :  { %v1364_v58 = vadd.f32 %v1363_v14, %v1362_v43 }
 0x1b6   :  { %v1366_v2 = vsel %vm1365_vm1, %v1231_v56, %v1364_v58 }
 0x1b7   :  { %v1368_v30 = vsel %vm1367_vm2, %v1366_v2, 0.0 }
 0x1b8   :  { %1369 = vst [vmem:[%s2408_s3] sm:$0xff] %v1368_v30 }

// kernel: simple_pose_net.9
= control target key start
LH: loop header
LB: loop body
LE: loop exit
PB: predicated region body
PF: predicated region fallthrough
CT: control target
= control target key end

     0   :  { %vm550_vm0 = vcmask 523264   ;;  %vm1015_vm1 = vcmask 1040384   ;;  %vm1017_vm2 = vcmask 1041408   ;;  %s1773_s1 = inlined_call_operand.vmem [shape: bf16[576,128], index: 1, kind: input, shape index: {}]   ;;  %s1774_s0 = inlined_call_operand.vmem [shape: bf16[128,576], index: 0, kind: input, shape index: {}]   ;;  %s1775_s2 = inlined_call_operand.vmem [shape: f32[128,128], index: 2, kind: output, shape index: {0}]   ;;  %s1776_s3 = inlined_call_operand.vmem [shape: f32[1,8,128], index: 3, kind: output, shape index: {1}]  }
   0x1   :  { %v1284_v0 = vld [vmem:[%s1773_s1 + $0x78] sm:$0xff]   ;;  %v1288_v4 = vld [vmem:[%s1773_s1 + $0x70] sm:$0xff]   ;;  %v1292_v8 = vld [vmem:[%s1773_s1 + $0x68] sm:$0xff]  }
   0x2   :  { %v1285_v1 = vld [vmem:[%s1773_s1 + $0xf8] sm:$0xff]   ;;  %1112 = vmatprep.subr.bf16.mxu0 %v1284_v0  ;;  %v1289_v5 = vld [vmem:[%s1773_s1 + $0xf0] sm:$0xff]   ;;  %v1293_v9 = vld [vmem:[%s1773_s1 + $0xe8] sm:$0xff]  }
   0x3   :  { %v1286_v2 = vld [vmem:[%s1773_s1 + $0x38] sm:$0xff]   ;;  %1176 = vmatprep.subr.bf16.mxu1 %v1285_v1  ;;  %v1290_v6 = vld [vmem:[%s1773_s1 + $0x30] sm:$0xff]   ;;  %v1294_v10 = vld [vmem:[%s1773_s1 + $0x28] sm:$0xff]  }
   0x4   :  { %v1287_v3 = vld [vmem:[%s1773_s1 + $0xb8] sm:$0xff]   ;;  %1113 = vmatpush3.bf16.msra.mxu0 %v1286_v2  ;;  %v1291_v7 = vld [vmem:[%s1773_s1 + $0xb0] sm:$0xff]   ;;  %v1295_v11 = vld [vmem:[%s1773_s1 + $0xa8] sm:$0xff]  }
   0x5   :  { %1177 = vmatpush3.bf16.msra.mxu1 %v1287_v3  ;;  %1114 = vmatprep.subr.bf16.mxu0 %v1288_v4  ;;  %v1296_v12 = vld [vmem:[%s1773_s1 + $0x60] sm:$0xff]   ;;  %v1300_v16 = vld [vmem:[%s1773_s1 + $0x58] sm:$0xff]   ;;  %v1304_v20 = vld [vmem:[%s1773_s1 + $0x50] sm:$0xff]  }
   0x6   :  { %1178 = vmatprep.subr.bf16.mxu1 %v1289_v5  ;;  %v1297_v13 = vld [vmem:[%s1773_s1 + $0xe0] sm:$0xff]   ;;  %v1301_v17 = vld [vmem:[%s1773_s1 + $0xd8] sm:$0xff]   ;;  %v1305_v21 = vld [vmem:[%s1773_s1 + $0xd0] sm:$0xff]  }
   0x7   :  { %v1298_v14 = vld [vmem:[%s1773_s1 + $0x20] sm:$0xff]   ;;  %v1302_v18 = vld [vmem:[%s1773_s1 + $0x18] sm:$0xff]   ;;  %v1306_v22 = vld [vmem:[%s1773_s1 + $0x10] sm:$0xff]  }
   0x8   :  { %1115 = vmatpush3.bf16.msra.mxu0 %v1290_v6  ;;  %v1299_v15 = vld [vmem:[%s1773_s1 + $0xa0] sm:$0xff]   ;;  %v1303_v19 = vld [vmem:[%s1773_s1 + $0x98] sm:$0xff]   ;;  %v1307_v23 = vld [vmem:[%s1773_s1 + $0x90] sm:$0xff]  }
   0x9   :  { %1179 = vmatpush3.bf16.msra.mxu1 %v1291_v7  ;;  %1116 = vmatprep.subr.bf16.mxu0 %v1292_v8  ;;  %v1308_v24 = vld [vmem:[%s1773_s1 + $0x48] sm:$0xff]   ;;  %v1312_v28 = vld [vmem:[%s1773_s1 + $0x40] sm:$0xff]   ;;  %v1322_v36 = vld [vmem:[%s1773_s1 + $0x118] sm:$0xff]  }
   0xa   :  { %1180 = vmatprep.subr.bf16.mxu1 %v1293_v9  ;;  %v1309_v25 = vld [vmem:[%s1773_s1 + $0xc8] sm:$0xff]   ;;  %v1313_v29 = vld [vmem:[%s1773_s1 + $0xc0] sm:$0xff]   ;;  %v1335_v42 = vld [vmem:[%s1773_s1 + $0x110] sm:$0xff]  }
   0xb   :  { %v1310_v26 = vld [vmem:[%s1773_s1 + $0x8] sm:$0xff]   ;;  %v1314_v30 = vld [vmem:[%s1773_s1] sm:$0xff]   ;;  %v1331_v43 = vld [vmem:[%s1774_s0 + $0x5c] ss:$20 sps:$4 sm:$0xff]  }
   0xc   :  { %1117 = vmatpush3.bf16.msra.mxu0 %v1294_v10  ;;  %v1311_v27 = vld [vmem:[%s1773_s1 + $0x88] sm:$0xff]   ;;  %v1315_v31 = vld [vmem:[%s1773_s1 + $0x80] sm:$0xff]   ;;  %v1336_v47 = vld [vmem:[%s1774_s0 + $0x7c] ss:$20 sps:$4 sm:$0xff]  }
   0xd   :  { %1181 = vmatpush3.bf16.msra.mxu1 %v1295_v11  ;;  %1118 = vmatprep.subr.bf16.mxu0 %v1296_v12  ;;  %v1316_v32 = vld [vmem:[%s1774_s0] ss:$20 sps:$4 sm:$0xff]   ;;  %v1318_v33 = vld [vmem:[%s1774_s0 + $0x4] ss:$20 sps:$4 sm:$0xff]   ;;  %v1319_v34 = vld [vmem:[%s1774_s0 + $0x8] ss:$20 sps:$4 sm:$0xff]  }
   0xe   :  { %1182 = vmatprep.subr.bf16.mxu1 %v1297_v13  ;;  %v1321_v35 = vld [vmem:[%s1774_s0 + $0xc] ss:$20 sps:$4 sm:$0xff]   ;;  %607 = vmatprep.mubr.bf16.mxu0 %v1318_v33  ;;  %v1325_v38 = vld [vmem:[%s1774_s0 + $0x34] ss:$20 sps:$4 sm:$0xff]   ;;  %v1328_v40 = vld [vmem:[%s1774_s0 + $0x30] ss:$20 sps:$4 sm:$0xff]  }
   0xf   :  { %704 = vmatprep.mubr.bf16.mxu1 %v1321_v35  ;;  %v1323_v37 = vld [vmem:[%s1774_s0 + $0x2c] ss:$20 sps:$4 sm:$0xff]   ;;  %v1327_v39 = vld [vmem:[%s1774_s0 + $0x28] ss:$20 sps:$4 sm:$0xff]   ;;  %v1333_v44 = vld [vmem:[%s1774_s0 + $0x50] ss:$20 sps:$4 sm:$0xff]  }
  0x10   :  { %1119 = vmatpush3.bf16.msra.mxu0 %v1298_v14  ;;  %v1329_v41 = vld [vmem:[%s1774_s0 + $0x54] ss:$20 sps:$4 sm:$0xff]   ;;  %v1334_v45 = vld [vmem:[%s1774_s0 + $0x58] ss:$20 sps:$4 sm:$0xff]   ;;  %v1361_v49 = vld [vmem:[%s1773_s1 + $0x100] sm:$0xff]  }
  0x11   :  { %1183 = vmatpush3.bf16.msra.mxu1 %v1299_v15  ;;  %1120 = vmatprep.subr.bf16.mxu0 %v1300_v16  ;;  %v1348_v46 = vld [vmem:[%s1773_s1 + $0x108] sm:$0xff]   ;;  %v1338_v48 = vld [vmem:[%s1774_s0 + $0x84] ss:$20 sps:$4 sm:$0xff]   ;;  %v1341_v51 = vld [vmem:[%s1774_s0 + $0x80] ss:$20 sps:$4 sm:$0xff]  }
  0x12   :  { %1184 = vmatprep.subr.bf16.mxu1 %v1301_v17  ;;  %v1340_v50 = vld [vmem:[%s1774_s0 + $0x78] ss:$20 sps:$4 sm:$0xff]   ;;  %v1346_v54 = vld [vmem:[%s1774_s0 + $0xa0] ss:$20 sps:$4 sm:$0xff]   ;;  %v1347_v55 = vld [vmem:[%s1774_s0 + $0xa8] ss:$20 sps:$4 sm:$0xff]  }
  0x13   :  { %v1342_v52 = vld [vmem:[%s1774_s0 + $0xa4] ss:$20 sps:$4 sm:$0xff]   ;;  %v1344_v53 = vld [vmem:[%s1774_s0 + $0xac] ss:$20 sps:$4 sm:$0xff]   ;;  %v1351_v57 = vld [vmem:[%s1774_s0 + $0xd4] ss:$20 sps:$4 sm:$0xff]  }
  0x14   :  { %1121 = vmatpush3.bf16.msra.mxu0 %v1302_v18  ;;  %v1349_v56 = vld [vmem:[%s1774_s0 + $0xcc] ss:$20 sps:$4 sm:$0xff]   ;;  %v1353_v58 = vld [vmem:[%s1774_s0 + $0xc8] ss:$20 sps:$4 sm:$0xff]   ;;  %v1354_v59 = vld [vmem:[%s1774_s0 + $0xd0] ss:$20 sps:$4 sm:$0xff]  }
  0x15   :  { %1185 = vmatpush3.bf16.msra.mxu1 %v1303_v19  ;;  %1122 = vmatprep.subr.bf16.mxu0 %v1304_v20  ;;  %v1355_v60 = vld [vmem:[%s1774_s0 + $0xf4] ss:$20 sps:$4 sm:$0xff]   ;;  %v1357_v61 = vld [vmem:[%s1774_s0 + $0xfc] ss:$20 sps:$4 sm:$0xff]   ;;  %v1360_v63 = vld [vmem:[%s1774_s0 + $0xf8] ss:$20 sps:$4 sm:$0xff]  }
  0x16   :  { %1186 = vmatprep.subr.bf16.mxu1 %v1305_v21  ;;  %v1359_v62 = vld [vmem:[%s1774_s0 + $0xf0] ss:$20 sps:$4 sm:$0xff]   ;;  %v1366_v2 = vld [vmem:[%s1774_s0 + $0x118] ss:$20 sps:$4 sm:$0xff]   ;;  %v1367_v3 = vld [vmem:[%s1774_s0 + $0x120] ss:$20 sps:$4 sm:$0xff]  }
  0x17   :  { %v1362_v0 = vld [vmem:[%s1774_s0 + $0x11c] ss:$20 sps:$4 sm:$0xff]   ;;  %v1364_v1 = vld [vmem:[%s1774_s0 + $0x124] ss:$20 sps:$4 sm:$0xff]   ;;  %v1372_v8 = vld [vmem:[%s1774_s0 + $0x60] ss:$20 sps:$4 sm:$0xff]  }
  0x18   :  { %1123 = vmatpush3.bf16.msra.mxu0 %v1306_v22  ;;  %v1368_v4 = vld [vmem:[%s1774_s0 + $0x10] ss:$20 sps:$4 sm:$0xff]   ;;  %v1370_v6 = vld [vmem:[%s1774_s0 + $0x38] ss:$20 sps:$4 sm:$0xff]   ;;  %v1373_v9 = vld [vmem:[%s1774_s0 + $0x100] ss:$20 sps:$4 sm:$0xff]  }
  0x19   :  { %1187 = vmatpush3.bf16.msra.mxu1 %v1307_v23  ;;  %1124 = vmatprep.subr.bf16.mxu0 %v1308_v24  ;;  %v1369_v5 = vld [vmem:[%s1774_s0 + $0xb0] ss:$20 sps:$4 sm:$0xff]   ;;  %v1371_v7 = vld [vmem:[%s1774_s0 + $0xd8] ss:$20 sps:$4 sm:$0xff]   ;;  %v1374_v10 = vld [vmem:[%s1774_s0 + $0x88] ss:$20 sps:$4 sm:$0xff]  }
  0x1a   :  { %1188 = vmatprep.subr.bf16.mxu1 %v1309_v25  ;;  %v1375_v11 = vld [vmem:[%s1774_s0 + $0x128] ss:$20 sps:$4 sm:$0xff]  }
  0x1c   :  { %1125 = vmatpush3.bf16.msra.mxu0 %v1310_v26 }
  0x1d   :  { %1189 = vmatpush3.bf16.msra.mxu1 %v1311_v27  ;;  %1126 = vmatprep.subr.bf16.mxu0 %v1312_v28 }
  0x1e   :  { %1190 = vmatprep.subr.bf16.mxu1 %v1313_v29 }
  0x20   :  { %1127 = vmatpush3.bf16.msra.mxu0 %v1314_v30 }
  0x21   :  { %1191 = vmatpush3.bf16.msra.mxu1 %v1315_v31  ;;  %1252 = vmatprep.subr.bf16.mxu0 %v1322_v36 }
  0x22   :  { %1276 = vmatprep.subr.bf16.mxu1 %v1322_v36 }
  0x23   :  { %608 = vmatmul.mubr.bf16.vlgmr.msra.gmra.mxu0 %v1316_v32 }
  0x24   :  { %705 = vmatmul.mubr.bf16.vlgmr.msra.gmra.mxu1 %v1319_v34  ;;  %1253 = vmatpush3.bf16.msra.mxu0 %v1322_v36 }
  0x25   :  { %615 = vmatprep.mubr.bf16.mxu0 %v1323_v37  ;;  %712 = vmatprep.mubr.bf16.mxu1 %v1325_v38 }
  0x26   :  { %1280 = vmatpush3.bf16.msra.mxu1 %v1322_v36  ;;  %1254 = vmatprep.subr.bf16.mxu0 %v1335_v42 }
  0x27   :  { %1277 = vmatprep.subr.bf16.mxu1 %v1335_v42 }
  0x28   :  { %1255 = vmatpush3.bf16.msra.mxu0 %v1335_v42 }
  0x29   :  { %1256 = vmatprep.subr.bf16.mxu0 %v1348_v46 }
  0x2a   :  { %1281 = vmatpush3.bf16.msra.mxu1 %v1335_v42 }
  0x2b   :  { %616 = vmatmul.mubr.bf16.gmra.mxu0 %v1327_v39  ;;  %1278 = vmatprep.subr.bf16.mxu1 %v1348_v46 }
  0x2c   :  { %713 = vmatmul.mubr.bf16.gmra.mxu1 %v1328_v40  ;;  %623 = vmatprep.mubr.bf16.mxu0 %v1329_v41 }
  0x2d   :  { %720 = vmatprep.mubr.bf16.mxu1 %v1331_v43  ;;  %1257 = vmatpush3.bf16.msra.mxu0 %v1348_v46 }
  0x2e   :  { %1282 = vmatpush3.bf16.msra.mxu1 %v1348_v46  ;;  %1258 = vmatprep.subr.bf16.mxu0 %v1361_v49 }
  0x2f   :  { %1279 = vmatprep.subr.bf16.mxu1 %v1361_v49 }
  0x31   :  { %1259 = vmatpush3.bf16.msra.mxu0 %v1361_v49 }
  0x32   :  { %1283 = vmatpush3.bf16.msra.mxu1 %v1361_v49 }
  0x33   :  { %624 = vmatmul.mubr.bf16.gmra.mxu0 %v1333_v44 }
  0x34   :  { %721 = vmatmul.mubr.bf16.gmra.mxu1 %v1334_v45  ;;  %631 = vmatprep.mubr.bf16.mxu0 %v1336_v47 }
  0x35   :  { %728 = vmatprep.mubr.bf16.mxu1 %v1338_v48 }
  0x3b   :  { %632 = vmatmul.mubr.bf16.gmra.mxu0 %v1340_v50 }
  0x3c   :  { %729 = vmatmul.mubr.bf16.gmra.mxu1 %v1341_v51  ;;  %639 = vmatprep.mubr.bf16.mxu0 %v1342_v52 }
  0x3d   :  { %736 = vmatprep.mubr.bf16.mxu1 %v1344_v53 }
  0x43   :  { %640 = vmatmul.mubr.bf16.gmra.mxu0 %v1346_v54 }
  0x44   :  { %737 = vmatmul.mubr.bf16.gmra.mxu1 %v1347_v55  ;;  %647 = vmatprep.mubr.bf16.mxu0 %v1349_v56 }
  0x45   :  { %744 = vmatprep.mubr.bf16.mxu1 %v1351_v57 }
  0x4b   :  { %648 = vmatmul.mubr.bf16.gmra.mxu0 %v1353_v58 }
  0x4c   :  { %745 = vmatmul.mubr.bf16.gmra.mxu1 %v1354_v59  ;;  %655 = vmatprep.mubr.bf16.mxu0 %v1355_v60 }
  0x4d   :  { %752 = vmatprep.mubr.bf16.mxu1 %v1357_v61 }
  0x53   :  { %656 = vmatmul.mubr.bf16.gmra.mxu0 %v1359_v62 }
  0x54   :  { %753 = vmatmul.mubr.bf16.gmra.mxu1 %v1360_v63  ;;  %663 = vmatprep.mubr.bf16.mxu0 %v1362_v0 }
  0x55   :  { %760 = vmatprep.mubr.bf16.mxu1 %v1364_v1 }
  0x5b   :  { %664 = vmatmul.mubr.bf16.gmra.mxu0 %v1366_v2 }
  0x5c   :  { %761 = vmatmul.mubr.bf16.gmra.mxu1 %v1367_v3  ;;  %1260 = vmatprep.mubr.msk.bf16.mxu0 %vm550_vm0, %v1368_v4 }
  0x5d   :  { %1268 = vmatprep.mubr.msk.bf16.mxu1 %vm550_vm0, %v1369_v5 }
  0x63   :  { %1261 = vmatmul.mubr.msk.bf16.vlgmr.msra.gmra.mxu0 %vm550_vm0, %v1370_v6 }
  0x64   :  { %1269 = vmatmul.mubr.msk.bf16.vlgmr.msra.gmra.mxu1 %vm550_vm0, %v1371_v7  ;;  %1264 = vmatprep.mubr.msk.bf16.mxu0 %vm550_vm0, %v1372_v8 }
  0x65   :  { %1272 = vmatprep.mubr.msk.bf16.mxu1 %vm550_vm0, %v1373_v9 }
  0x6b   :  { %1265 = vmatmul.mubr.msk.bf16.gmra.mxu0 %vm550_vm0, %v1374_v10 }
  0x6c   :  { %1273 = vmatmul.mubr.msk.bf16.gmra.mxu1 %vm550_vm0, %v1375_v11 }
  0xe3   :  { %v1128_v12 = vpop.f32.mrf.mxu0 }
  0xe4   :  { %v1192_v13 = vpop.f32.mrf.mxu1 }
  0xe5   :  { %v1129_v14 = vpop.f32.mrf.mxu0 }
  0xe6   :  { %v1193_v15 = vpop.f32.mrf.mxu1  ;;  %v1130_v7 = vadd.f32 %v1129_v14, %v1128_v12 }
  0xe7   :  { %v1632_v16 = vpop.f32.mrf.mxu0  ;;  %v1194_v8 = vadd.f32 %v1193_v15, %v1192_v13 }
  0xe8   :  { %v1634_v17 = vpop.f32.mrf.mxu1 }
  0xe9   :  { %v1636_v18 = vpop.f32.mrf.mxu0  ;;  %v707_v14 = vadd.f32 %v1194_v8, %v1130_v7 }
  0xea   :  { %v1638_v19 = vpop.f32.mrf.mxu1 }
  0xeb   :  { %v1134_v20 = vpop.f32.mrf.mxu0 }
  0xec   :  { %v1198_v21 = vpop.f32.mrf.mxu1 }
  0xed   :  { %v1135_v22 = vpop.f32.mrf.mxu0 }
  0xee   :  { %v1199_v23 = vpop.f32.mrf.mxu1  ;;  %v1136_v9 = vadd.f32 %v1135_v22, %v1134_v20 }
  0xef   :  { %v1137_v24 = vpop.f32.mrf.mxu0  ;;  %v1200_v10 = vadd.f32 %v1199_v23, %v1198_v21 }
  0xf0   :  { %v1201_v25 = vpop.f32.mrf.mxu1 }
  0xf1   :  { %v1138_v26 = vpop.f32.mrf.mxu0  ;;  %v715_v13 = vadd.f32 %v1200_v10, %v1136_v9 }
  0xf2   :  { %v1202_v27 = vpop.f32.mrf.mxu1 }
  0xf3   :  { %v1640_v28 = vpop.f32.mrf.mxu0 }
  0xf4   :  { %v1642_v29 = vpop.f32.mrf.mxu1 }
  0xf5   :  { %v1644_v30 = vpop.f32.mrf.mxu0 }
  0xf6   :  { %v1646_v31 = vpop.f32.mrf.mxu1 }
  0xf7   :  { %v1648_v32 = vpop.f32.mrf.mxu0 }
  0xf8   :  { %1777 = vst [vmem:[#allocation2_spill] sm:$0xff] %v1648_v32  ;;  %v1650_v33 = vpop.f32.mrf.mxu1 }
  0xf9   :  { %1778 = vst [vmem:[#allocation3_spill] sm:$0xff] %v1650_v33  ;;  %v1652_v34 = vpop.f32.mrf.mxu0  ;;  %v1203_v33 = vadd.f32 %v1202_v27, %v1201_v25  ;;  %v1206_v25 = vadd.f32 %v1646_v31, %v1642_v29 }
  0xfa   :  { %1779 = vst [vmem:[#allocation4_spill] sm:$0xff] %v1652_v34  ;;  %v1654_v35 = vpop.f32.mrf.mxu1 }
  0xfb   :  { %1780 = vst [vmem:[#allocation5_spill] sm:$0xff] %v1654_v35  ;;  %v1146_v36 = vpop.f32.mrf.mxu0  ;;  %v1139_v35 = vadd.f32 %v1138_v26, %v1137_v24  ;;  %v1142_v24 = vadd.f32 %v1644_v30, %v1640_v28 }
  0xfc   :  { %v1656_v37 = vpop.f32.mrf.mxu1 }
  0xfd   :  { %v1147_v38 = vpop.f32.mrf.mxu0  ;;  %v718_v23 = vadd.f32 %v1203_v33, %v1139_v35 }
  0xfe   :  { %v1658_v39 = vpop.f32.mrf.mxu1  ;;  %v1148_v26 = vadd.f32 %v1147_v38, %v1146_v36 }
  0xff   :  { %v1660_v40 = vpop.f32.mrf.mxu0 }
 0x100   :  { %v1662_v41 = vpop.f32.mrf.mxu1 }
 0x101   :  { %v1664_v42 = vpop.f32.mrf.mxu0 }
 0x102   :  { %v1666_v43 = vpop.f32.mrf.mxu1  ;;  %v1151_v33 = vadd.f32 %v1664_v42, %v1660_v40  ;;  %v1790_v40 = vld [vmem:[#allocation4_spill] sm:$0xff] }
 0x103   :  { %1781 = vst [vmem:[#allocation6_spill] sm:$0xff] %v1666_v43  ;;  %v1152_v44 = vpop.f32.mrf.mxu0 }
 0x104   :  { %v1216_v45 = vpop.f32.mrf.mxu1 }
 0x105   :  { %v1153_v46 = vpop.f32.mrf.mxu0 }
 0x106   :  { %v1217_v47 = vpop.f32.mrf.mxu1  ;;  %v1154_v32 = vadd.f32 %v1153_v46, %v1152_v44  ;;  %v1212_v46 = vadd.f32 %v1658_v39, %v1656_v37  ;;  %v1789_v39 = vld [vmem:[#allocation2_spill] sm:$0xff] }
 0x107   :  { %v1155_v48 = vpop.f32.mrf.mxu0 }
 0x108   :  { %v1219_v49 = vpop.f32.mrf.mxu1 }
 0x109   :  { %v1156_v50 = vpop.f32.mrf.mxu0 }
 0x10a   :  { %v1220_v51 = vpop.f32.mrf.mxu1  ;;  %v1788_v28 = vld [vmem:[#allocation6_spill] sm:$0xff] }
 0x10b   :  { %v1158_v52 = vpop.f32.mrf.mxu0  ;;  %v1221_v44 = vadd.f32 %v1220_v51, %v1219_v49  ;;  %v1215_v30 = vadd.f32 %v1788_v28, %v1662_v41  ;;  %v1145_v41 = vadd.f32 %v1790_v40, %v1789_v39  ;;  %v723_v49 = vadd.f32 %v1206_v25, %v1142_v24 }
 0x10c   :  { %v1222_v53 = vpop.f32.mrf.mxu1 }
 0x10d   :  { %v1159_v54 = vpop.f32.mrf.mxu0 }
 0x10e   :  { %v1223_v55 = vpop.f32.mrf.mxu1 }
 0x10f   :  { %v1161_v56 = vpop.f32.mrf.mxu0 }
 0x110   :  { %v1225_v57 = vpop.f32.mrf.mxu1 }
 0x111   :  { %v1162_v58 = vpop.f32.mrf.mxu0 }
 0x112   :  { %v1226_v59 = vpop.f32.mrf.mxu1  ;;  %v1163_v15 = vadd.f32 %v1162_v58, %v1161_v56  ;;  %v1794_v58 = vld [vmem:[#allocation5_spill] sm:$0xff] }
 0x113   :  { %v1668_v60 = vpop.f32.mrf.mxu0  ;;  %v1227_v20 = vadd.f32 %v1226_v59, %v1225_v57  ;;  %v1793_v57 = vld [vmem:[#allocation3_spill] sm:$0xff] }
 0x114   :  { %1782 = vst [vmem:[#allocation7_spill] sm:$0xff] %v1668_v60  ;;  %v1670_v61 = vpop.f32.mrf.mxu1  ;;  %v1224_v60 = vadd.f32 %v1223_v55, %v1222_v53  ;;  %v1209_v59 = vadd.f32 %v1794_v58, %v1793_v57 }
 0x115   :  { %1783 = vst [vmem:[#allocation8_spill] sm:$0xff] %v1670_v61  ;;  %v1165_v62 = vpop.f32.mrf.mxu0  ;;  %v1160_v61 = vadd.f32 %v1159_v54, %v1158_v52  ;;  %v750_v38 = vadd.f32 %v1227_v20, %v1163_v15 }
 0x116   :  { %v1229_v63 = vpop.f32.mrf.mxu1 }
 0x117   :  { %v1672_v0 = vpop.f32.mrf.mxu0  ;;  %v747_v22 = vadd.f32 %v1224_v60, %v1160_v61 }
 0x118   :  { %1784 = vst [vmem:[#allocation9_spill] sm:$0xff] %v1672_v0  ;;  %v1674_v1 = vpop.f32.mrf.mxu1 }
 0x119   :  { %1785 = vst [vmem:[#allocation10_spill] sm:$0xff] %v1674_v1  ;;  %v1676_v2 = vpop.f32.mrf.mxu0  ;;  %v1218_v1 = vadd.f32 %v1217_v47, %v1216_v45 }
 0x11a   :  { %1786 = vst [vmem:[#allocation11_spill] sm:$0xff] %v1676_v2  ;;  %v1678_v3 = vpop.f32.mrf.mxu1  ;;  %v1197_v2 = vadd.f32 %v1638_v19, %v1634_v17 }
 0x11b   :  { %1787 = vst [vmem:[#allocation12_spill] sm:$0xff] %v1678_v3  ;;  %v1170_v4 = vpop.f32.mrf.mxu0  ;;  %v1133_v3 = vadd.f32 %v1636_v18, %v1632_v16  ;;  %v1157_v18 = vadd.f32 %v1156_v50, %v1155_v48  ;;  %v739_v45 = vadd.f32 %v1218_v1, %v1154_v32  ;;  %v1791_v50 = vld [vmem:[#allocation7_spill] sm:$0xff] }
 0x11c   :  { %v1234_v5 = vpop.f32.mrf.mxu1  ;;  %v1166_v51 = vadd.f32 %v1165_v62, %v1791_v50  ;;  %v1792_v52 = vld [vmem:[#allocation8_spill] sm:$0xff]  ;;  %v731_v62 = vadd.f32 %v1212_v46, %v1148_v26 }
 0x11d   :  { %v1171_v6 = vpop.f32.mrf.mxu0  ;;  %v710_v48 = vadd.f32 %v1197_v2, %v1133_v3  ;;  %v1230_v53 = vadd.f32 %v1229_v63, %v1792_v52  ;;  %v742_v56 = vadd.f32 %v1221_v44, %v1157_v18  ;;  %v734_v63 = vadd.f32 %v1215_v30, %v1151_v33 }
 0x11e   :  { %v1235_v11 = vpop.f32.mrf.mxu1  ;;  %v1172_v35 = vadd.f32 %v1171_v6, %v1170_v4  ;;  %v726_v44 = vadd.f32 %v1209_v59, %v1145_v41 }
 0x11f   :  { %v1173_v34 = vpop.f32.mrf.mxu0  ;;  %v1236_v36 = vadd.f32 %v1235_v11, %v1234_v5  ;;  %v1795_v11 = vld [vmem:[#allocation9_spill] sm:$0xff]  ;;  %v755_v20 = vadd.f32 %v1230_v53, %v1166_v51 }
 0x120   :  { %v1237_v0 = vpop.f32.mrf.mxu1 }
 0x121   :  { %v1174_v43 = vpop.f32.mrf.mxu0  ;;  %v763_v5 = vadd.f32 %v1236_v36, %v1172_v35 }
 0x122   :  { %v1238_v12 = vpop.f32.mrf.mxu1  ;;  %v1175_v1 = vadd.f32 %v1174_v43, %v1173_v34  ;;  %v1796_v34 = vld [vmem:[#allocation11_spill] sm:$0xff] }
 0x123   :  { %v1262_v21 = vpop.f32.mrf.mxu0  ;;  %v1239_v2 = vadd.f32 %v1238_v12, %v1237_v0  ;;  %v1169_v43 = vadd.f32 %v1796_v34, %v1795_v11  ;;  %v1797_v0 = vld [vmem:[#allocation10_spill] sm:$0xff]  ;;  %v1798_v12 = vld [vmem:[#allocation12_spill] sm:$0xff] }
 0x124   :  { %v812_v27 = vadd.f32 %v1262_v21, %v715_v13  ;;  %v1270_v16 = vpop.f32.mrf.mxu1  ;;  %v1233_v13 = vadd.f32 %v1798_v12, %v1797_v0 }
 0x125   :  { %v1688_v17 = vadd.f32 %v1270_v16, %v747_v22  ;;  %v803_v19 = vpop.f32.mrf.mxu0  ;;  %v766_v18 = vadd.f32 %v1239_v2, %v1175_v1 }
 0x126   :  { %872 = vst [vmem:[%s1775_s2 + $0x10] sm:$0xff] %v812_v27  ;;  %v804_v29 = vadd.f32 %v803_v19, %v707_v14  ;;  %v835_v31 = vpop.f32.mrf.mxu1  ;;  %v980_v21 = vmul.f32 %v812_v27, %v812_v27 }
 0x127   :  { %880 = vst [vmem:[%s1775_s2 + $0x50] sm:$0xff] %v1688_v17  ;;  %v1703_v32 = vadd.f32 %v835_v31, %v739_v45  ;;  %v1263_v37 = vpop.f32.mrf.mxu0 }
 0x128   :  { %870 = vst [vmem:[%s1775_s2] sm:$0xff] %v804_v29  ;;  %v815_v42 = vadd.f32 %v1263_v37, %v718_v23  ;;  %v1271_v47 = vpop.f32.mrf.mxu1  ;;  %v978_v6 = vmul.f32 %v804_v29, %v804_v29 }
 0x129   :  { %878 = vst [vmem:[%s1775_s2 + $0x40] sm:$0xff] %v1703_v32  ;;  %v1716_v54 = vadd.f32 %v1271_v47, %v750_v38  ;;  %v806_v55 = vpop.f32.mrf.mxu0  ;;  %v986_v53 = vmul.f32 %v1703_v32, %v1703_v32 }
 0x12a   :  { %873 = vst [vmem:[%s1775_s2 + $0x18] sm:$0xff] %v815_v42  ;;  %v807_v60 = vadd.f32 %v806_v55, %v710_v48  ;;  %v838_v61 = vpop.f32.mrf.mxu1  ;;  %v981_v19 = vmul.f32 %v815_v42, %v815_v42 }
 0x12b   :  { %881 = vst [vmem:[%s1775_s2 + $0x58] sm:$0xff] %v1716_v54  ;;  %v839_v3 = vadd.f32 %v838_v61, %v742_v56  ;;  %v1266_v4 = vpop.f32.mrf.mxu0 }
 0x12c   :  { %871 = vst [vmem:[%s1775_s2 + $0x8] sm:$0xff] %v807_v60  ;;  %v957_v7 = vadd.f32 %v807_v60, %v804_v29  ;;  %v979_v8 = vmul.f32 %v807_v60, %v807_v60  ;;  %v828_v9 = vadd.f32 %v1266_v4, %v731_v62  ;;  %v1274_v10 = vpop.f32.mrf.mxu1  ;;  %v758_v29 = vadd.f32 %v1233_v13, %v1169_v43 }
 0x12d   :  { %879 = vst [vmem:[%s1775_s2 + $0x48] sm:$0xff] %v839_v3  ;;  %v860_v14 = vadd.f32 %v1274_v10, %v763_v5  ;;  %v819_v15 = vpop.f32.mrf.mxu0  ;;  %v987_v57 = vmul.f32 %v839_v3, %v839_v3  ;;  %v988_v60 = vmul.f32 %v1688_v17, %v1688_v17 }
 0x12e   :  { %v958_v22 = vadd.f32 %v957_v7, %v812_v27  ;;  %v994_v23 = vadd.f32 %v979_v8, %v978_v6  ;;  %876 = vst [vmem:[%s1775_s2 + $0x30] sm:$0xff] %v828_v9  ;;  %v820_v24 = vadd.f32 %v819_v15, %v723_v49  ;;  %v851_v25 = vpop.f32.mrf.mxu1  ;;  %v984_v47 = vmul.f32 %v828_v9, %v828_v9 }
 0x12f   :  { %884 = vst [vmem:[%s1775_s2 + $0x70] sm:$0xff] %v860_v14  ;;  %v852_v26 = vadd.f32 %v851_v25, %v755_v20  ;;  %v1267_v16 = vpop.f32.mrf.mxu0 }
 0x130   :  { %v995_v45 = vadd.f32 %v994_v23, %v980_v21  ;;  %874 = vst [vmem:[%s1775_s2 + $0x20] sm:$0xff] %v820_v24  ;;  %v959_v27 = vadd.f32 %v958_v22, %v815_v42  ;;  %v831_v46 = vadd.f32 %v1267_v16, %v734_v63  ;;  %v1275_v33 = vpop.f32.mrf.mxu1  ;;  %v982_v35 = vmul.f32 %v820_v24, %v820_v24 }
 0x131   :  { %882 = vst [vmem:[%s1775_s2 + $0x60] sm:$0xff] %v852_v26  ;;  %v863_v28 = vadd.f32 %v1275_v33, %v766_v18  ;;  %v822_v30 = vpop.f32.mrf.mxu0  ;;  %v989_v63 = vmul.f32 %v1716_v54, %v1716_v54  ;;  %v990_v4 = vmul.f32 %v852_v26, %v852_v26 }
 0x132   :  { %v960_v31 = vadd.f32 %v959_v27, %v820_v24  ;;  %v996_v36 = vadd.f32 %v995_v45, %v981_v19  ;;  %877 = vst [vmem:[%s1775_s2 + $0x38] sm:$0xff] %v831_v46  ;;  %v823_v37 = vadd.f32 %v822_v30, %v726_v44  ;;  %v854_v38 = vpop.f32.mrf.mxu1  ;;  %v985_v50 = vmul.f32 %v831_v46, %v831_v46 }
 0x133   :  { %885 = vst [vmem:[%s1775_s2 + $0x78] sm:$0xff] %v863_v28  ;;  %v855_v39 = vadd.f32 %v854_v38, %v758_v29  ;;  %v993_v11 = vmul.f32 %v863_v28, %v863_v28 }
 0x134   :  { %v997_v40 = vadd.f32 %v996_v36, %v982_v35  ;;  %875 = vst [vmem:[%s1775_s2 + $0x28] sm:$0xff] %v823_v37  ;;  %v961_v41 = vadd.f32 %v960_v31, %v823_v37  ;;  %v983_v42 = vmul.f32 %v823_v37, %v823_v37 }
 0x135   :  { %883 = vst [vmem:[%s1775_s2 + $0x68] sm:$0xff] %v855_v39  ;;  %v991_v7 = vmul.f32 %v855_v39, %v855_v39 }
 0x136   :  { %v962_v48 = vadd.f32 %v961_v41, %v828_v9  ;;  %v998_v49 = vadd.f32 %v997_v40, %v983_v42  ;;  %v992_v9 = vmul.f32 %v860_v14, %v860_v14 }
 0x138   :  { %v963_v51 = vadd.f32 %v962_v48, %v831_v46  ;;  %v999_v52 = vadd.f32 %v998_v49, %v984_v47 }
 0x13a   :  { %v964_v55 = vadd.f32 %v963_v51, %v1703_v32  ;;  %v1000_v56 = vadd.f32 %v999_v52, %v985_v50 }
 0x13c   :  { %v1001_v58 = vadd.f32 %v1000_v56, %v986_v53  ;;  %v965_v59 = vadd.f32 %v964_v55, %v839_v3 }
 0x13e   :  { %v966_v61 = vadd.f32 %v965_v59, %v1688_v17  ;;  %v1002_v62 = vadd.f32 %v1001_v58, %v987_v57 }
 0x140   :  { %v967_v1 = vadd.f32 %v966_v61, %v1716_v54  ;;  %v1003_v2 = vadd.f32 %v1002_v62, %v988_v60 }
 0x142   :  { %v968_v5 = vadd.f32 %v967_v1, %v852_v26  ;;  %v1004_v6 = vadd.f32 %v1003_v2, %v989_v63 }
 0x144   :  { %v969_v32 = vadd.f32 %v968_v5, %v855_v39  ;;  %v1005_v8 = vadd.f32 %v1004_v6, %v990_v4 }
 0x146   :  { %v970_v3 = vadd.f32 %v969_v32, %v860_v14  ;;  %v1006_v10 = vadd.f32 %v1005_v8, %v991_v7 }
 0x148   :  { %v971_v34 = vadd.f32 %v970_v3, %v863_v28  ;;  %v1007_v43 = vadd.f32 %v1006_v10, %v992_v9 }
 0x14a   :  { %v972_v17 = vrot.slane %v971_v34, 4  ;;  %v1008_v0 = vadd.f32 %v1007_v43, %v993_v11 }
 0x14c   :  { %v973_v12 = vadd.f32 %v972_v17, %v971_v34  ;;  %v1009_v13 = vrot.slane %v1008_v0, 4 }
 0x14e   :  { %v974_v15 = vrot.slane %v973_v12, 2  ;;  %v1010_v20 = vadd.f32 %v1009_v13, %v1008_v0 }
 0x150   :  { %v975_v54 = vadd.f32 %v974_v15, %v973_v12  ;;  %v1011_v21 = vrot.slane %v1010_v20, 2 }
 0x152   :  { %v976_v22 = vrot.slane %v975_v54, 1  ;;  %v1012_v23 = vadd.f32 %v1011_v21, %v1010_v20 }
 0x154   :  { %v1013_v24 = vrot.slane %v1012_v23, 1  ;;  %v977_v25 = vadd.f32 %v976_v22, %v975_v54 }
 0x156   :  { %v1014_v26 = vadd.f32 %v1013_v24, %v1012_v23 }
 0x158   :  { %v1016_v14 = vsel %vm1015_vm1, %v977_v25, %v1014_v26 }
 0x159   :  { %v1018_v16 = vsel %vm1017_vm2, %v1016_v14, 0.0 }
 0x15a   :  { %1019 = vst [vmem:[%s1776_s3] sm:$0xff] %v1018_v16 }

// kernel: simple_pose_net.10
= control target key start
LH: loop header
LB: loop body
LE: loop exit
PB: predicated region body
PF: predicated region fallthrough
CT: control target
= control target key end

     0   :  { %s391_s0 = inlined_call_operand.vmem [shape: f32[128,128], index: 0, kind: input, shape index: {}]   ;;  %s392_s1 = inlined_call_operand.vmem [shape: f32[1,128], index: 1, kind: input, shape index: {}]   ;;  %s393_s2 = inlined_call_operand.vmem [shape: f32[1,128], index: 2, kind: input, shape index: {}]   ;;  %s394_s3 = inlined_call_operand.vmem [shape: bf16[128,128], index: 3, kind: output, shape index: {}]  }
   0x1   :  { %v14_v0 = vld [vmem:[%s391_s0] sm:$0xff]  ;;  %v15_v1 = vld [vmem:[%s391_s0 + $0x8] sm:$0xff]  ;;  %v16_v6 = vld [vmem:[%s391_s0 + $0x10] sm:$0xff] }
   0x2   :  { %v286_v2 = vld [vmem:[%s392_s1] ss:$0 sm:$0xff]  ;;  %v17_v7 = vld [vmem:[%s391_s0 + $0x18] sm:$0xff]  ;;  %v19_v11 = vld [vmem:[%s391_s0 + $0x28] sm:$0xff] }
   0x3   :  { %v37_v3 = vmul.f32 %v286_v2, %v14_v0  ;;  %v38_v4 = vmul.f32 %v286_v2, %v15_v1  ;;  %v293_v5 = vld [vmem:[%s393_s2] ss:$0 sm:$0xff]  ;;  %v39_v8 = vmul.f32 %v286_v2, %v16_v6  ;;  %v40_v9 = vmul.f32 %v286_v2, %v17_v7  ;;  %v20_v12 = vld [vmem:[%s391_s0 + $0x30] sm:$0xff]  ;;  %v21_v17 = vld [vmem:[%s391_s0 + $0x38] sm:$0xff] }
   0x4   :  { %v18_v10 = vld [vmem:[%s391_s0 + $0x20] sm:$0xff]  ;;  %v42_v16 = vmul.f32 %v286_v2, %v19_v11  ;;  %v43_v20 = vmul.f32 %v286_v2, %v20_v12  ;;  %v44_v21 = vmul.f32 %v286_v2, %v21_v17  ;;  %v23_v27 = vld [vmem:[%s391_s0 + $0x48] sm:$0xff]  ;;  %v24_v32 = vld [vmem:[%s391_s0 + $0x50] sm:$0xff] }
   0x5   :  { %v60_v13 = vadd.f32 %v293_v5, %v37_v3  ;;  %v61_v14 = vadd.f32 %v293_v5, %v38_v4  ;;  %v41_v15 = vmul.f32 %v286_v2, %v18_v10  ;;  %v62_v18 = vadd.f32 %v293_v5, %v39_v8  ;;  %v22_v22 = vld [vmem:[%s391_s0 + $0x40] sm:$0xff]  ;;  %v25_v33 = vld [vmem:[%s391_s0 + $0x58] sm:$0xff]  ;;  %v27_v39 = vld [vmem:[%s391_s0 + $0x68] sm:$0xff] }
   0x6   :  { %v63_v19 = vadd.f32 %v293_v5, %v40_v9  ;;  %v65_v26 = vadd.f32 %v293_v5, %v42_v16  ;;  %v66_v30 = vadd.f32 %v293_v5, %v43_v20  ;;  %v67_v31 = vadd.f32 %v293_v5, %v44_v21  ;;  %v26_v38 = vld [vmem:[%s391_s0 + $0x60] sm:$0xff]  ;;  %v28_v44 = vld [vmem:[%s391_s0 + $0x70] sm:$0xff]  ;;  %v29_v49 = vld [vmem:[%s391_s0 + $0x78] sm:$0xff] }
   0x7   :  { %v76_v23 = vmax.f32 %v60_v13, 0.0  ;;  %v77_v24 = vmax.f32 %v61_v14, 0.0  ;;  %v64_v25 = vadd.f32 %v293_v5, %v41_v15  ;;  %v78_v28 = vmax.f32 %v62_v18, 0.0 }
   0x8   :  { %v79_v29 = vmax.f32 %v63_v19, 0.0  ;;  %v81_v36 = vmax.f32 %v65_v26, 0.0  ;;  %v45_v37 = vmul.f32 %v286_v2, %v22_v22  ;;  %v82_v41 = vmax.f32 %v66_v30, 0.0 }
   0x9   :  { %v213_v34 = vpack.c.bf16 %v77_v24, %v76_v23  ;;  %v80_v35 = vmax.f32 %v64_v25, 0.0  ;;  %v83_v42 = vmax.f32 %v67_v31, 0.0  ;;  %v46_v43 = vmul.f32 %v286_v2, %v23_v27 }
   0xa   :  { %v218_v40 = vpack.c.bf16 %v79_v29, %v78_v28  ;;  %v68_v46 = vadd.f32 %v293_v5, %v45_v37  ;;  %v47_v47 = vmul.f32 %v286_v2, %v24_v32  ;;  %v48_v48 = vmul.f32 %v286_v2, %v25_v33 }
   0xb   :  { %214 = vst [vmem:[%s394_s3] sm:$0xff] %v213_v34   ;;  %v223_v45 = vpack.c.bf16 %v81_v36, %v80_v35  ;;  %v228_v50 = vpack.c.bf16 %v83_v42, %v82_v41  ;;  %v69_v51 = vadd.f32 %v293_v5, %v46_v43  ;;  %v49_v52 = vmul.f32 %v286_v2, %v26_v38 }
   0xc   :  { %250 = vst [vmem:[%s394_s3 + $0x8] sm:$0xff] %v218_v40   ;;  %v50_v53 = vmul.f32 %v286_v2, %v27_v39  ;;  %v84_v54 = vmax.f32 %v68_v46, 0.0  ;;  %v70_v55 = vadd.f32 %v293_v5, %v47_v47  ;;  %v71_v56 = vadd.f32 %v293_v5, %v48_v48 }
   0xd   :  { %251 = vst [vmem:[%s394_s3 + $0x10] sm:$0xff] %v223_v45   ;;  %v51_v57 = vmul.f32 %v286_v2, %v28_v44  ;;  %252 = vst [vmem:[%s394_s3 + $0x18] sm:$0xff] %v228_v50   ;;  %v85_v58 = vmax.f32 %v69_v51, 0.0  ;;  %v72_v59 = vadd.f32 %v293_v5, %v49_v52  ;;  %v52_v61 = vmul.f32 %v286_v2, %v29_v49 }
   0xe   :  { %v73_v60 = vadd.f32 %v293_v5, %v50_v53  ;;  %v86_v62 = vmax.f32 %v70_v55, 0.0  ;;  %v87_v63 = vmax.f32 %v71_v56, 0.0 }
   0xf   :  { %v74_v0 = vadd.f32 %v293_v5, %v51_v57  ;;  %v233_v1 = vpack.c.bf16 %v85_v58, %v84_v54  ;;  %v88_v3 = vmax.f32 %v72_v59, 0.0  ;;  %v75_v6 = vadd.f32 %v293_v5, %v52_v61 }
  0x10   :  { %v89_v4 = vmax.f32 %v73_v60, 0.0  ;;  %v238_v7 = vpack.c.bf16 %v87_v63, %v86_v62 }
  0x11   :  { %v90_v8 = vmax.f32 %v74_v0, 0.0  ;;  %253 = vst [vmem:[%s394_s3 + $0x20] sm:$0xff] %v233_v1   ;;  %v91_v10 = vmax.f32 %v75_v6, 0.0 }
  0x12   :  { %v243_v9 = vpack.c.bf16 %v89_v4, %v88_v3  ;;  %254 = vst [vmem:[%s394_s3 + $0x28] sm:$0xff] %v238_v7  }
  0x13   :  { %v248_v2 = vpack.c.bf16 %v91_v10, %v90_v8 }
  0x14   :  { %255 = vst [vmem:[%s394_s3 + $0x30] sm:$0xff] %v243_v9  }
  0x15   :  { %256 = vst [vmem:[%s394_s3 + $0x38] sm:$0xff] %v248_v2  }

// kernel: simple_pose_net.12
= control target key start
LH: loop header
LB: loop body
LE: loop exit
PB: predicated region body
PF: predicated region fallthrough
CT: control target
= control target key end

     0   :  { %v24_v0 = vlaneseq  ;;  %s172_s1 = inlined_call_operand.vmem [shape: f32[1,256], index: 1, kind: input, shape index: {}]   ;;  %s173_s2 = inlined_call_operand.vmem [shape: f32[1,256], index: 2, kind: input, shape index: {}]   ;;  %s174_s0 = inlined_call_operand.vmem [shape: f32[32,256], index: 0, kind: input, shape index: {}]   ;;  %s175_s3 = inlined_call_operand.vmem [shape: bf16[32,256], index: 3, kind: output, shape index: {}]  }
   0x1   :  { %v22_v2 = vld [vmem:[%s172_s1] sm:$0x3]  ;;  %v15_v5 = vld [vmem:[%s174_s0 + $0x8] sm:$0xff]  ;;  %v16_v8 = vld [vmem:[%s174_s0 + $0x10] sm:$0xff] }
   0x2   :  { %v25_v1 = vshrl.u32 %v24_v0, 7  ;;  %v42_v3 = vld [vmem:[%s173_s2] sm:$0x3]  ;;  %v17_v9 = vld [vmem:[%s174_s0 + $0x18] sm:$0xff]  ;;  %v19_v15 = vld [vmem:[%s174_s0 + $0x28] sm:$0xff] }
   0x3   :  { %v14_v4 = vld [vmem:[%s174_s0] sm:$0xff]  ;;  %v20_v16 = vld [vmem:[%s174_s0 + $0x30] sm:$0xff]  ;;  %v21_v17 = vld [vmem:[%s174_s0 + $0x38] sm:$0xff] }
   0x4   :  { %v26_v6 = vsub.s32 0, %v25_v1  ;;  %v30_v7 = vsub.s32 1, %v25_v1  ;;  %v18_v10 = vld [vmem:[%s174_s0 + $0x20] sm:$0xff] }
   0x6   :  { %v27_v11 = vrot.slane %v22_v2, %v26_v6  ;;  %v31_v12 = vrot.slane %v22_v2, %v30_v7  ;;  %v47_v13 = vrot.slane %v42_v3, %v26_v6  ;;  %v51_v14 = vrot.slane %v42_v3, %v30_v7 }
   0x8   :  { %v34_v18 = vmul.f32 %v27_v11, %v14_v4  ;;  %v35_v19 = vmul.f32 %v31_v12, %v15_v5  ;;  %v36_v20 = vmul.f32 %v27_v11, %v16_v8  ;;  %v37_v21 = vmul.f32 %v31_v12, %v17_v9 }
   0x9   :  { %v38_v22 = vmul.f32 %v27_v11, %v18_v10  ;;  %v39_v23 = vmul.f32 %v31_v12, %v19_v15  ;;  %v40_v24 = vmul.f32 %v27_v11, %v20_v16  ;;  %v41_v25 = vmul.f32 %v31_v12, %v21_v17 }
   0xa   :  { %v54_v26 = vadd.f32 %v47_v13, %v34_v18  ;;  %v55_v27 = vadd.f32 %v51_v14, %v35_v19  ;;  %v56_v28 = vadd.f32 %v47_v13, %v36_v20  ;;  %v57_v29 = vadd.f32 %v51_v14, %v37_v21 }
   0xb   :  { %v58_v30 = vadd.f32 %v47_v13, %v38_v22  ;;  %v59_v31 = vadd.f32 %v51_v14, %v39_v23  ;;  %v60_v32 = vadd.f32 %v47_v13, %v40_v24  ;;  %v61_v33 = vadd.f32 %v51_v14, %v41_v25 }
   0xc   :  { %v62_v34 = vmax.f32 %v54_v26, 0.0  ;;  %v63_v35 = vmax.f32 %v55_v27, 0.0  ;;  %v64_v36 = vmax.f32 %v56_v28, 0.0  ;;  %v65_v37 = vmax.f32 %v57_v29, 0.0 }
   0xd   :  { %v66_v38 = vmax.f32 %v58_v30, 0.0  ;;  %v67_v39 = vmax.f32 %v59_v31, 0.0  ;;  %v68_v40 = vmax.f32 %v60_v32, 0.0  ;;  %v69_v41 = vmax.f32 %v61_v33, 0.0 }
   0xe   :  { %v106_v42 = vpack.c.bf16 %v63_v35, %v62_v34  ;;  %v107_v43 = vpack.c.bf16 %v65_v37, %v64_v36 }
   0xf   :  { %v108_v44 = vpack.c.bf16 %v67_v39, %v66_v38  ;;  %v109_v45 = vpack.c.bf16 %v69_v41, %v68_v40 }
  0x10   :  { %94 = vst [vmem:[%s175_s3] sm:$0xff] %v106_v42  ;;  %95 = vst [vmem:[%s175_s3 + $0x8] sm:$0xff] %v107_v43 }
  0x11   :  { %96 = vst [vmem:[%s175_s3 + $0x10] sm:$0xff] %v108_v44  ;;  %97 = vst [vmem:[%s175_s3 + $0x18] sm:$0xff] %v109_v45 }

// kernel: simple_pose_net.11
= control target key start
LH: loop header
LB: loop body
LE: loop exit
PB: predicated region body
PF: predicated region fallthrough
CT: control target
= control target key end

     0   :  { %vm1350_vm0 = vcmask 1040384   ;;  %vm1353_vm1 = vcmask 1041408   ;;  %s2324_s1 = inlined_call_operand.vmem [shape: bf16[1152,256], index: 1, kind: input, shape index: {}]   ;;  %s2325_s0 = inlined_call_operand.vmem [shape: bf16[32,1152], index: 0, kind: input, shape index: {}]   ;;  %s2326_s2 = inlined_call_operand.vmem [shape: f32[32,256], index: 2, kind: output, shape index: {0}]   ;;  %s2327_s3 = inlined_call_operand.vmem [shape: f32[1,8,256], index: 3, kind: output, shape index: {1}]  }
   0x1   :  { %v1545_v0 = vld [vmem:[%s2324_s1 + $0x74] ss:$8 sps:$4 sm:$0xff]   ;;  %v1549_v2 = vld [vmem:[%s2324_s1 + $0x70] ss:$8 sps:$4 sm:$0xff]   ;;  %v1551_v4 = vld [vmem:[%s2324_s1 + $0x64] ss:$8 sps:$4 sm:$0xff]  }
   0x2   :  { %v1547_v1 = vld [vmem:[%s2324_s1 + $0x174] ss:$8 sps:$4 sm:$0xff]   ;;  %990 = vmatprep.subr.bf16.mxu0 %v1545_v0  ;;  %v1550_v3 = vld [vmem:[%s2324_s1 + $0x170] ss:$8 sps:$4 sm:$0xff]   ;;  %v1553_v5 = vld [vmem:[%s2324_s1 + $0x164] ss:$8 sps:$4 sm:$0xff]  }
   0x3   :  { %1043 = vmatprep.subr.bf16.mxu1 %v1547_v1  ;;  %991 = vmatpush1.bf16.msra.mxu0 %v1549_v2  ;;  %v1555_v6 = vld [vmem:[%s2324_s1 + $0x60] ss:$8 sps:$4 sm:$0xff]   ;;  %v1557_v8 = vld [vmem:[%s2324_s1 + $0x54] ss:$8 sps:$4 sm:$0xff]   ;;  %v1561_v10 = vld [vmem:[%s2324_s1 + $0x50] ss:$8 sps:$4 sm:$0xff]  }
   0x4   :  { %1044 = vmatpush1.bf16.msra.mxu1 %v1550_v3  ;;  %992 = vmatprep.subr.bf16.mxu0 %v1551_v4  ;;  %v1556_v7 = vld [vmem:[%s2324_s1 + $0x160] ss:$8 sps:$4 sm:$0xff]   ;;  %v1559_v9 = vld [vmem:[%s2324_s1 + $0x154] ss:$8 sps:$4 sm:$0xff]   ;;  %v1562_v11 = vld [vmem:[%s2324_s1 + $0x150] ss:$8 sps:$4 sm:$0xff]  }
   0x5   :  { %1045 = vmatprep.subr.bf16.mxu1 %v1553_v5  ;;  %v1563_v12 = vld [vmem:[%s2324_s1 + $0x44] ss:$8 sps:$4 sm:$0xff]   ;;  %v1567_v14 = vld [vmem:[%s2324_s1 + $0x40] ss:$8 sps:$4 sm:$0xff]   ;;  %v1569_v16 = vld [vmem:[%s2324_s1 + $0x34] ss:$8 sps:$4 sm:$0xff]  }
   0x6   :  { %v1565_v13 = vld [vmem:[%s2324_s1 + $0x144] ss:$8 sps:$4 sm:$0xff]   ;;  %v1568_v15 = vld [vmem:[%s2324_s1 + $0x140] ss:$8 sps:$4 sm:$0xff]   ;;  %v1571_v17 = vld [vmem:[%s2324_s1 + $0x134] ss:$8 sps:$4 sm:$0xff]  }
   0x7   :  { %993 = vmatpush1.bf16.msra.mxu0 %v1555_v6  ;;  %v1573_v18 = vld [vmem:[%s2324_s1 + $0x30] ss:$8 sps:$4 sm:$0xff]   ;;  %v1575_v20 = vld [vmem:[%s2324_s1 + $0x24] ss:$8 sps:$4 sm:$0xff]   ;;  %v1579_v22 = vld [vmem:[%s2324_s1 + $0x20] ss:$8 sps:$4 sm:$0xff]  }
   0x8   :  { %1046 = vmatpush1.bf16.msra.mxu1 %v1556_v7  ;;  %994 = vmatprep.subr.bf16.mxu0 %v1557_v8  ;;  %v1574_v19 = vld [vmem:[%s2324_s1 + $0x130] ss:$8 sps:$4 sm:$0xff]   ;;  %v1577_v21 = vld [vmem:[%s2324_s1 + $0x124] ss:$8 sps:$4 sm:$0xff]   ;;  %v1580_v23 = vld [vmem:[%s2324_s1 + $0x120] ss:$8 sps:$4 sm:$0xff]  }
   0x9   :  { %1047 = vmatprep.subr.bf16.mxu1 %v1559_v9  ;;  %v1581_v24 = vld [vmem:[%s2324_s1 + $0x14] ss:$8 sps:$4 sm:$0xff]   ;;  %v1585_v26 = vld [vmem:[%s2324_s1 + $0x10] ss:$8 sps:$4 sm:$0xff]   ;;  %v1587_v28 = vld [vmem:[%s2324_s1 + $0x4] ss:$8 sps:$4 sm:$0xff]  }
   0xa   :  { %v1583_v25 = vld [vmem:[%s2324_s1 + $0x114] ss:$8 sps:$4 sm:$0xff]   ;;  %v1586_v27 = vld [vmem:[%s2324_s1 + $0x110] ss:$8 sps:$4 sm:$0xff]   ;;  %v1589_v29 = vld [vmem:[%s2324_s1 + $0x104] ss:$8 sps:$4 sm:$0xff]  }
   0xb   :  { %995 = vmatpush1.bf16.msra.mxu0 %v1561_v10  ;;  %v1591_v30 = vld [vmem:[%s2324_s1] ss:$8 sps:$4 sm:$0xff]   ;;  %v1593_v32 = vld [vmem:[%s2324_s1 + $0xf4] ss:$8 sps:$4 sm:$0xff]   ;;  %v1597_v34 = vld [vmem:[%s2324_s1 + $0xf0] ss:$8 sps:$4 sm:$0xff]  }
   0xc   :  { %1048 = vmatpush1.bf16.msra.mxu1 %v1562_v11  ;;  %996 = vmatprep.subr.bf16.mxu0 %v1563_v12  ;;  %v1592_v31 = vld [vmem:[%s2324_s1 + $0x100] ss:$8 sps:$4 sm:$0xff]   ;;  %v1595_v33 = vld [vmem:[%s2324_s1 + $0x1f4] ss:$8 sps:$4 sm:$0xff]   ;;  %v1598_v35 = vld [vmem:[%s2324_s1 + $0x1f0] ss:$8 sps:$4 sm:$0xff]  }
   0xd   :  { %1049 = vmatprep.subr.bf16.mxu1 %v1565_v13  ;;  %v1599_v36 = vld [vmem:[%s2324_s1 + $0xe4] ss:$8 sps:$4 sm:$0xff]   ;;  %v1603_v38 = vld [vmem:[%s2324_s1 + $0xe0] ss:$8 sps:$4 sm:$0xff]   ;;  %v1605_v40 = vld [vmem:[%s2324_s1 + $0xd4] ss:$8 sps:$4 sm:$0xff]  }
   0xe   :  { %v1601_v37 = vld [vmem:[%s2324_s1 + $0x1e4] ss:$8 sps:$4 sm:$0xff]   ;;  %v1604_v39 = vld [vmem:[%s2324_s1 + $0x1e0] ss:$8 sps:$4 sm:$0xff]   ;;  %v1607_v41 = vld [vmem:[%s2324_s1 + $0x1d4] ss:$8 sps:$4 sm:$0xff]  }
   0xf   :  { %997 = vmatpush1.bf16.msra.mxu0 %v1567_v14  ;;  %v1609_v42 = vld [vmem:[%s2324_s1 + $0xd0] ss:$8 sps:$4 sm:$0xff]   ;;  %v1611_v44 = vld [vmem:[%s2324_s1 + $0xc4] ss:$8 sps:$4 sm:$0xff]   ;;  %v1615_v46 = vld [vmem:[%s2324_s1 + $0xc0] ss:$8 sps:$4 sm:$0xff]  }
  0x10   :  { %1050 = vmatpush1.bf16.msra.mxu1 %v1568_v15  ;;  %998 = vmatprep.subr.bf16.mxu0 %v1569_v16  ;;  %v1610_v43 = vld [vmem:[%s2324_s1 + $0x1d0] ss:$8 sps:$4 sm:$0xff]   ;;  %v1613_v45 = vld [vmem:[%s2324_s1 + $0x1c4] ss:$8 sps:$4 sm:$0xff]   ;;  %v1616_v47 = vld [vmem:[%s2324_s1 + $0x1c0] ss:$8 sps:$4 sm:$0xff]  }
  0x11   :  { %1051 = vmatprep.subr.bf16.mxu1 %v1571_v17  ;;  %v1617_v48 = vld [vmem:[%s2324_s1 + $0xb4] ss:$8 sps:$4 sm:$0xff]   ;;  %v1643_v49 = vld [vmem:[%s2325_s0 + $0x4] ss:$36 sps:$4 sm:$0xff]   ;;  %v1646_v51 = vld [vmem:[%s2325_s0 + $0xc] ss:$36 sps:$4 sm:$0xff]  }
  0x12   :  { %v1619_v50 = vld [vmem:[%s2324_s1 + $0x1b4] ss:$8 sps:$4 sm:$0xff]   ;;  %1022 = vmatprep.mubr.bf16.mxu0 %v1643_v49  ;;  %v1621_v52 = vld [vmem:[%s2324_s1 + $0xb0] ss:$8 sps:$4 sm:$0xff]   ;;  %1075 = vmatprep.mubr.bf16.mxu1 %v1646_v51  ;;  %v1623_v54 = vld [vmem:[%s2324_s1 + $0xa4] ss:$8 sps:$4 sm:$0xff]  }
  0x13   :  { %999 = vmatpush1.bf16.msra.mxu0 %v1573_v18  ;;  %v1622_v53 = vld [vmem:[%s2324_s1 + $0x1b0] ss:$8 sps:$4 sm:$0xff]   ;;  %v1625_v55 = vld [vmem:[%s2324_s1 + $0x1a4] ss:$8 sps:$4 sm:$0xff]   ;;  %v1627_v56 = vld [vmem:[%s2324_s1 + $0xa0] ss:$8 sps:$4 sm:$0xff]  }
  0x14   :  { %1052 = vmatpush1.bf16.msra.mxu1 %v1574_v19  ;;  %1000 = vmatprep.subr.bf16.mxu0 %v1575_v20  ;;  %v1628_v57 = vld [vmem:[%s2324_s1 + $0x1a0] ss:$8 sps:$4 sm:$0xff]   ;;  %v1629_v58 = vld [vmem:[%s2324_s1 + $0x94] ss:$8 sps:$4 sm:$0xff]   ;;  %v1633_v60 = vld [vmem:[%s2324_s1 + $0x90] ss:$8 sps:$4 sm:$0xff]  }
  0x15   :  { %1053 = vmatprep.subr.bf16.mxu1 %v1577_v21  ;;  %v1631_v59 = vld [vmem:[%s2324_s1 + $0x194] ss:$8 sps:$4 sm:$0xff]   ;;  %v1634_v61 = vld [vmem:[%s2324_s1 + $0x190] ss:$8 sps:$4 sm:$0xff]   ;;  %v1635_v62 = vld [vmem:[%s2324_s1 + $0x84] ss:$8 sps:$4 sm:$0xff]  }
  0x16   :  { %v1637_v63 = vld [vmem:[%s2324_s1 + $0x184] ss:$8 sps:$4 sm:$0xff]   ;;  %v1639_v0 = vld [vmem:[%s2324_s1 + $0x80] ss:$8 sps:$4 sm:$0xff]   ;;  %v1649_v2 = vld [vmem:[%s2324_s1 + $0x274] ss:$8 sps:$4 sm:$0xff]  }
  0x17   :  { %1001 = vmatpush1.bf16.msra.mxu0 %v1579_v22  ;;  %v1640_v1 = vld [vmem:[%s2324_s1 + $0x180] ss:$8 sps:$4 sm:$0xff]   ;;  %v1652_v3 = vld [vmem:[%s2324_s1 + $0x374] ss:$8 sps:$4 sm:$0xff]   ;;  %v1647_v6 = vld [vmem:[%s2324_s1 + $0x270] ss:$8 sps:$4 sm:$0xff]  }
  0x18   :  { %1054 = vmatpush1.bf16.msra.mxu1 %v1580_v23  ;;  %1002 = vmatprep.subr.bf16.mxu0 %v1581_v24  ;;  %v1641_v4 = vld [vmem:[%s2325_s0] ss:$36 sps:$4 sm:$0xff]   ;;  %v1644_v5 = vld [vmem:[%s2325_s0 + $0x8] ss:$36 sps:$4 sm:$0xff]   ;;  %v1650_v7 = vld [vmem:[%s2324_s1 + $0x370] ss:$8 sps:$4 sm:$0xff]  }
  0x19   :  { %1055 = vmatprep.subr.bf16.mxu1 %v1583_v25  ;;  %v1655_v8 = vld [vmem:[%s2324_s1 + $0x264] ss:$8 sps:$4 sm:$0xff]   ;;  %v1653_v10 = vld [vmem:[%s2324_s1 + $0x260] ss:$8 sps:$4 sm:$0xff]   ;;  %v1661_v12 = vld [vmem:[%s2324_s1 + $0x254] ss:$8 sps:$4 sm:$0xff]  }
  0x1a   :  { %v1658_v9 = vld [vmem:[%s2324_s1 + $0x364] ss:$8 sps:$4 sm:$0xff]   ;;  %v1656_v11 = vld [vmem:[%s2324_s1 + $0x360] ss:$8 sps:$4 sm:$0xff]   ;;  %v1664_v13 = vld [vmem:[%s2324_s1 + $0x354] ss:$8 sps:$4 sm:$0xff]  }
  0x1b   :  { %1003 = vmatpush1.bf16.msra.mxu0 %v1585_v26  ;;  %v1659_v14 = vld [vmem:[%s2324_s1 + $0x250] ss:$8 sps:$4 sm:$0xff]   ;;  %v1667_v16 = vld [vmem:[%s2324_s1 + $0x244] ss:$8 sps:$4 sm:$0xff]   ;;  %v1665_v18 = vld [vmem:[%s2324_s1 + $0x240] ss:$8 sps:$4 sm:$0xff]  }
  0x1c   :  { %1056 = vmatpush1.bf16.msra.mxu1 %v1586_v27  ;;  %1004 = vmatprep.subr.bf16.mxu0 %v1587_v28  ;;  %v1662_v15 = vld [vmem:[%s2324_s1 + $0x350] ss:$8 sps:$4 sm:$0xff]   ;;  %v1670_v17 = vld [vmem:[%s2324_s1 + $0x344] ss:$8 sps:$4 sm:$0xff]   ;;  %v1668_v19 = vld [vmem:[%s2324_s1 + $0x340] ss:$8 sps:$4 sm:$0xff]  }
  0x1d   :  { %1057 = vmatprep.subr.bf16.mxu1 %v1589_v29  ;;  %v1673_v20 = vld [vmem:[%s2324_s1 + $0x234] ss:$8 sps:$4 sm:$0xff]   ;;  %v1671_v22 = vld [vmem:[%s2324_s1 + $0x230] ss:$8 sps:$4 sm:$0xff]   ;;  %v1679_v24 = vld [vmem:[%s2324_s1 + $0x224] ss:$8 sps:$4 sm:$0xff]  }
  0x1e   :  { %v1676_v21 = vld [vmem:[%s2324_s1 + $0x334] ss:$8 sps:$4 sm:$0xff]   ;;  %v1674_v23 = vld [vmem:[%s2324_s1 + $0x330] ss:$8 sps:$4 sm:$0xff]   ;;  %v1682_v25 = vld [vmem:[%s2324_s1 + $0x324] ss:$8 sps:$4 sm:$0xff]  }
  0x1f   :  { %1005 = vmatpush1.bf16.msra.mxu0 %v1591_v30  ;;  %v1725_v26 = vld [vmem:[%s2325_s0 + $0x4c] ss:$36 sps:$4 sm:$0xff]   ;;  %v1727_v27 = vld [vmem:[%s2325_s0 + $0x54] ss:$36 sps:$4 sm:$0xff]   ;;  %v1677_v30 = vld [vmem:[%s2324_s1 + $0x220] ss:$8 sps:$4 sm:$0xff]  }
  0x20   :  { %1058 = vmatpush1.bf16.msra.mxu1 %v1592_v31  ;;  %1006 = vmatprep.subr.bf16.mxu0 %v1593_v32  ;;  %v1729_v28 = vld [vmem:[%s2325_s0 + $0x48] ss:$36 sps:$4 sm:$0xff]   ;;  %v1730_v29 = vld [vmem:[%s2325_s0 + $0x50] ss:$36 sps:$4 sm:$0xff]  }
  0x21   :  { %1059 = vmatprep.subr.bf16.mxu1 %v1595_v33  ;;  %v1680_v31 = vld [vmem:[%s2324_s1 + $0x320] ss:$8 sps:$4 sm:$0xff]   ;;  %v1685_v32 = vld [vmem:[%s2324_s1 + $0x214] ss:$8 sps:$4 sm:$0xff]  }
  0x22   :  { %v1688_v33 = vld [vmem:[%s2324_s1 + $0x314] ss:$8 sps:$4 sm:$0xff]   ;;  %v1704_v49 = vld [vmem:[%s2324_s1 + $0x3e0] ss:$8 sps:$4 sm:$0xff]  }
  0x23   :  { %1007 = vmatpush2.bf16.msra.mxu0 %v1597_v34  ;;  %v1683_v34 = vld [vmem:[%s2324_s1 + $0x210] ss:$8 sps:$4 sm:$0xff]   ;;  %v1712_v51 = vld [vmem:[%s2324_s1 + $0x3d4] ss:$8 sps:$4 sm:$0xff]  }
  0x24   :  { %1060 = vmatpush2.bf16.msra.mxu1 %v1598_v35  ;;  %1008 = vmatprep.subr.bf16.mxu0 %v1599_v36  ;;  %v1686_v35 = vld [vmem:[%s2324_s1 + $0x310] ss:$8 sps:$4 sm:$0xff]   ;;  %v1691_v36 = vld [vmem:[%s2324_s1 + $0x204] ss:$8 sps:$4 sm:$0xff]  }
  0x25   :  { %1061 = vmatprep.subr.bf16.mxu1 %v1601_v37  ;;  %v1694_v37 = vld [vmem:[%s2324_s1 + $0x304] ss:$8 sps:$4 sm:$0xff]  }
  0x27   :  { %1009 = vmatpush2.bf16.msra.mxu0 %v1603_v38  ;;  %v1689_v38 = vld [vmem:[%s2324_s1 + $0x200] ss:$8 sps:$4 sm:$0xff]  }
  0x28   :  { %1062 = vmatpush2.bf16.msra.mxu1 %v1604_v39  ;;  %1010 = vmatprep.subr.bf16.mxu0 %v1605_v40  ;;  %v1692_v39 = vld [vmem:[%s2324_s1 + $0x300] ss:$8 sps:$4 sm:$0xff]   ;;  %v1697_v40 = vld [vmem:[%s2324_s1 + $0x2f4] ss:$8 sps:$4 sm:$0xff]  }
  0x29   :  { %1063 = vmatprep.subr.bf16.mxu1 %v1607_v41  ;;  %v1751_v41 = vld [vmem:[%s2325_s0 + $0x14] ss:$36 sps:$4 sm:$0xff]  }
  0x2b   :  { %1011 = vmatpush2.bf16.msra.mxu0 %v1609_v42  ;;  %v1700_v42 = vld [vmem:[%s2324_s1 + $0x3f4] ss:$8 sps:$4 sm:$0xff]  }
  0x2c   :  { %1064 = vmatpush2.bf16.msra.mxu1 %v1610_v43  ;;  %1012 = vmatprep.subr.bf16.mxu0 %v1611_v44  ;;  %v1754_v43 = vld [vmem:[%s2325_s0 + $0x1c] ss:$36 sps:$4 sm:$0xff]   ;;  %v1695_v44 = vld [vmem:[%s2324_s1 + $0x2f0] ss:$8 sps:$4 sm:$0xff]  }
  0x2d   :  { %1065 = vmatprep.subr.bf16.mxu1 %v1613_v45  ;;  %v1698_v45 = vld [vmem:[%s2324_s1 + $0x3f0] ss:$8 sps:$4 sm:$0xff]  }
  0x2f   :  { %1013 = vmatpush2.bf16.msra.mxu0 %v1615_v46  ;;  %v1703_v46 = vld [vmem:[%s2324_s1 + $0x2e4] ss:$8 sps:$4 sm:$0xff]  }
  0x30   :  { %1066 = vmatpush2.bf16.msra.mxu1 %v1616_v47  ;;  %1014 = vmatprep.subr.bf16.mxu0 %v1617_v48  ;;  %v1706_v47 = vld [vmem:[%s2324_s1 + $0x3e4] ss:$8 sps:$4 sm:$0xff]   ;;  %v1701_v48 = vld [vmem:[%s2324_s1 + $0x2e0] ss:$8 sps:$4 sm:$0xff]  }
  0x31   :  { %1067 = vmatprep.subr.bf16.mxu1 %v1619_v50  ;;  %v1709_v50 = vld [vmem:[%s2324_s1 + $0x2d4] ss:$8 sps:$4 sm:$0xff]  }
  0x33   :  { %1015 = vmatpush2.bf16.msra.mxu0 %v1621_v52  ;;  %v1707_v52 = vld [vmem:[%s2324_s1 + $0x2d0] ss:$8 sps:$4 sm:$0xff]  }
  0x34   :  { %1068 = vmatpush2.bf16.msra.mxu1 %v1622_v53  ;;  %1016 = vmatprep.subr.bf16.mxu0 %v1623_v54  ;;  %v1710_v53 = vld [vmem:[%s2324_s1 + $0x3d0] ss:$8 sps:$4 sm:$0xff]   ;;  %v1715_v54 = vld [vmem:[%s2324_s1 + $0x2c4] ss:$8 sps:$4 sm:$0xff]  }
  0x35   :  { %1069 = vmatprep.subr.bf16.mxu1 %v1625_v55  ;;  %v1718_v55 = vld [vmem:[%s2324_s1 + $0x3c4] ss:$8 sps:$4 sm:$0xff]  }
  0x37   :  { %1017 = vmatpush2.bf16.msra.mxu0 %v1627_v56  ;;  %v1713_v56 = vld [vmem:[%s2324_s1 + $0x2c0] ss:$8 sps:$4 sm:$0xff]  }
  0x38   :  { %1070 = vmatpush2.bf16.msra.mxu1 %v1628_v57  ;;  %1018 = vmatprep.subr.bf16.mxu0 %v1629_v58  ;;  %v1716_v57 = vld [vmem:[%s2324_s1 + $0x3c0] ss:$8 sps:$4 sm:$0xff]   ;;  %v1721_v58 = vld [vmem:[%s2324_s1 + $0x2b4] ss:$8 sps:$4 sm:$0xff]  }
  0x39   :  { %1071 = vmatprep.subr.bf16.mxu1 %v1631_v59  ;;  %v1724_v59 = vld [vmem:[%s2324_s1 + $0x3b4] ss:$8 sps:$4 sm:$0xff]  }
  0x3b   :  { %1019 = vmatpush2.bf16.msra.mxu0 %v1633_v60  ;;  %v1719_v60 = vld [vmem:[%s2324_s1 + $0x2b0] ss:$8 sps:$4 sm:$0xff]  }
  0x3c   :  { %1072 = vmatpush2.bf16.msra.mxu1 %v1634_v61  ;;  %1020 = vmatprep.subr.bf16.mxu0 %v1635_v62  ;;  %v1722_v61 = vld [vmem:[%s2324_s1 + $0x3b0] ss:$8 sps:$4 sm:$0xff]   ;;  %v1733_v62 = vld [vmem:[%s2324_s1 + $0x2a4] ss:$8 sps:$4 sm:$0xff]  }
  0x3d   :  { %1073 = vmatprep.subr.bf16.mxu1 %v1637_v63  ;;  %v1736_v63 = vld [vmem:[%s2324_s1 + $0x3a4] ss:$8 sps:$4 sm:$0xff]  }
  0x3f   :  { %1021 = vmatpush2.bf16.msra.mxu0 %v1639_v0  ;;  %v1731_v0 = vld [vmem:[%s2324_s1 + $0x2a0] ss:$8 sps:$4 sm:$0xff]  }
  0x40   :  { %1074 = vmatpush2.bf16.msra.mxu1 %v1640_v1  ;;  %1096 = vmatprep.subr.bf16.mxu0 %v1649_v2  ;;  %v1734_v1 = vld [vmem:[%s2324_s1 + $0x3a0] ss:$8 sps:$4 sm:$0xff]   ;;  %v1739_v2 = vld [vmem:[%s2324_s1 + $0x294] ss:$8 sps:$4 sm:$0xff]  }
  0x41   :  { %1149 = vmatprep.subr.bf16.mxu1 %v1652_v3  ;;  %v1742_v3 = vld [vmem:[%s2324_s1 + $0x394] ss:$8 sps:$4 sm:$0xff]  }
  0x42   :  { %1023 = vmatmul.mubr.bf16.vlgmr.msra.gmra.mxu0 %v1641_v4  ;;  %v1737_v4 = vld [vmem:[%s2324_s1 + $0x290] ss:$8 sps:$4 sm:$0xff]  }
  0x43   :  { %1076 = vmatmul.mubr.bf16.vlgmr.msra.gmra.mxu1 %v1644_v5  ;;  %1097 = vmatpush1.bf16.msra.mxu0 %v1647_v6  ;;  %v1740_v5 = vld [vmem:[%s2324_s1 + $0x390] ss:$8 sps:$4 sm:$0xff]   ;;  %v1745_v6 = vld [vmem:[%s2324_s1 + $0x284] ss:$8 sps:$4 sm:$0xff]  }
  0x44   :  { %1150 = vmatpush1.bf16.msra.mxu1 %v1650_v7  ;;  %1098 = vmatprep.subr.bf16.mxu0 %v1655_v8  ;;  %v1748_v7 = vld [vmem:[%s2324_s1 + $0x384] ss:$8 sps:$4 sm:$0xff]   ;;  %v1743_v8 = vld [vmem:[%s2324_s1 + $0x280] ss:$8 sps:$4 sm:$0xff]  }
  0x45   :  { %1151 = vmatprep.subr.bf16.mxu1 %v1658_v9  ;;  %1032 = vmatprep.mubr.bf16.mxu0 %v1725_v26  ;;  %v1746_v9 = vld [vmem:[%s2324_s1 + $0x380] ss:$8 sps:$4 sm:$0xff]   ;;  %v1773_v26 = vld [vmem:[%s2324_s1 + $0x430] ss:$8 sps:$4 sm:$0xff]  }
  0x46   :  { %1085 = vmatprep.mubr.bf16.mxu1 %v1727_v27  ;;  %v1778_v27 = vld [vmem:[%s2324_s1 + $0x424] ss:$8 sps:$4 sm:$0xff]  }
  0x47   :  { %1099 = vmatpush1.bf16.msra.mxu0 %v1653_v10  ;;  %v1757_v10 = vld [vmem:[%s2324_s1 + $0x474] ss:$8 sps:$4 sm:$0xff]  }
  0x48   :  { %1152 = vmatpush1.bf16.msra.mxu1 %v1656_v11  ;;  %1100 = vmatprep.subr.bf16.mxu0 %v1661_v12  ;;  %v1749_v11 = vld [vmem:[%s2325_s0 + $0x10] ss:$36 sps:$4 sm:$0xff]   ;;  %v1752_v12 = vld [vmem:[%s2325_s0 + $0x18] ss:$36 sps:$4 sm:$0xff]  }
  0x49   :  { %1153 = vmatprep.subr.bf16.mxu1 %v1664_v13  ;;  %v1755_v13 = vld [vmem:[%s2324_s1 + $0x470] ss:$8 sps:$4 sm:$0xff]  }
  0x4a   :  { %1033 = vmatmul.mubr.bf16.gmra.mxu0 %v1729_v28  ;;  %v1776_v28 = vld [vmem:[%s2324_s1 + $0x420] ss:$8 sps:$4 sm:$0xff]  }
  0x4b   :  { %1101 = vmatpush1.bf16.msra.mxu0 %v1659_v14  ;;  %1086 = vmatmul.mubr.bf16.gmra.mxu1 %v1730_v29  ;;  %v1760_v14 = vld [vmem:[%s2324_s1 + $0x464] ss:$8 sps:$4 sm:$0xff]   ;;  %v1781_v29 = vld [vmem:[%s2324_s1 + $0x414] ss:$8 sps:$4 sm:$0xff]  }
  0x4c   :  { %1154 = vmatpush1.bf16.msra.mxu1 %v1662_v15  ;;  %1102 = vmatprep.subr.bf16.mxu0 %v1667_v16  ;;  %v1761_v15 = vld [vmem:[%s2325_s0 + $0x5c] ss:$36 sps:$4 sm:$0xff]   ;;  %v1767_v16 = vld [vmem:[%s2325_s0 + $0x64] ss:$36 sps:$4 sm:$0xff]  }
  0x4d   :  { %1155 = vmatprep.subr.bf16.mxu1 %v1670_v17  ;;  %1128 = vmatprep.mubr.bf16.mxu0 %v1751_v41  ;;  %v1758_v17 = vld [vmem:[%s2324_s1 + $0x460] ss:$8 sps:$4 sm:$0xff]  }
  0x4e   :  { %1181 = vmatprep.mubr.bf16.mxu1 %v1754_v43 }
  0x4f   :  { %1103 = vmatpush1.bf16.msra.mxu0 %v1665_v18  ;;  %v1766_v18 = vld [vmem:[%s2324_s1 + $0x454] ss:$8 sps:$4 sm:$0xff]  }
  0x50   :  { %1156 = vmatpush1.bf16.msra.mxu1 %v1668_v19  ;;  %1104 = vmatprep.subr.bf16.mxu0 %v1673_v20  ;;  %v1763_v19 = vld [vmem:[%s2325_s0 + $0x58] ss:$36 sps:$4 sm:$0xff]   ;;  %v1769_v20 = vld [vmem:[%s2325_s0 + $0x60] ss:$36 sps:$4 sm:$0xff]  }
  0x51   :  { %1157 = vmatprep.subr.bf16.mxu1 %v1676_v21  ;;  %v1764_v21 = vld [vmem:[%s2324_s1 + $0x450] ss:$8 sps:$4 sm:$0xff]  }
  0x53   :  { %1105 = vmatpush1.bf16.msra.mxu0 %v1671_v22  ;;  %v1772_v22 = vld [vmem:[%s2324_s1 + $0x444] ss:$8 sps:$4 sm:$0xff]  }
  0x54   :  { %1158 = vmatpush1.bf16.msra.mxu1 %v1674_v23  ;;  %1106 = vmatprep.subr.bf16.mxu0 %v1679_v24  ;;  %v1770_v23 = vld [vmem:[%s2324_s1 + $0x440] ss:$8 sps:$4 sm:$0xff]   ;;  %v1775_v24 = vld [vmem:[%s2324_s1 + $0x434] ss:$8 sps:$4 sm:$0xff]  }
  0x55   :  { %1159 = vmatprep.subr.bf16.mxu1 %v1682_v25  ;;  %v1787_v25 = vmov 0  }
  0x57   :  { %1107 = vmatpush1.bf16.msra.mxu0 %v1677_v30  ;;  %v1779_v30 = vld [vmem:[%s2324_s1 + $0x410] ss:$8 sps:$4 sm:$0xff]  }
  0x58   :  { %1160 = vmatpush1.bf16.msra.mxu1 %v1680_v31  ;;  %1108 = vmatprep.subr.bf16.mxu0 %v1685_v32  ;;  %v1784_v31 = vld [vmem:[%s2324_s1 + $0x404] ss:$8 sps:$4 sm:$0xff]   ;;  %v1782_v32 = vld [vmem:[%s2324_s1 + $0x400] ss:$8 sps:$4 sm:$0xff]  }
  0x59   :  { %1161 = vmatprep.subr.bf16.mxu1 %v1688_v33  ;;  %v1785_v33 = vld [vmem:[%s2325_s0 + $0x20] ss:$36 sps:$4 sm:$0xff]  }
  0x5b   :  { %1109 = vmatpush1.bf16.msra.mxu0 %v1683_v34  ;;  %v1786_v34 = vld [vmem:[%s2325_s0 + $0x68] ss:$36 sps:$4 sm:$0xff]  }
  0x5c   :  { %1162 = vmatpush1.bf16.msra.mxu1 %v1686_v35  ;;  %1110 = vmatprep.subr.bf16.mxu0 %v1691_v36 }
  0x5d   :  { %1163 = vmatprep.subr.bf16.mxu1 %v1694_v37 }
  0x5f   :  { %1111 = vmatpush1.bf16.msra.mxu0 %v1689_v38 }
  0x60   :  { %1164 = vmatpush1.bf16.msra.mxu1 %v1692_v39  ;;  %1112 = vmatprep.subr.bf16.mxu0 %v1697_v40 }
  0x61   :  { %1165 = vmatprep.subr.bf16.mxu1 %v1700_v42 }
  0x63   :  { %1113 = vmatpush2.bf16.msra.mxu0 %v1695_v44 }
  0x64   :  { %1166 = vmatpush2.bf16.msra.mxu1 %v1698_v45  ;;  %1114 = vmatprep.subr.bf16.mxu0 %v1703_v46 }
  0x65   :  { %1167 = vmatprep.subr.bf16.mxu1 %v1706_v47 }
  0x67   :  { %1115 = vmatpush2.bf16.msra.mxu0 %v1701_v48 }
  0x68   :  { %1168 = vmatpush2.bf16.msra.mxu1 %v1704_v49  ;;  %1116 = vmatprep.subr.bf16.mxu0 %v1709_v50 }
  0x69   :  { %1169 = vmatprep.subr.bf16.mxu1 %v1712_v51 }
  0x6b   :  { %1117 = vmatpush2.bf16.msra.mxu0 %v1707_v52 }
  0x6c   :  { %1170 = vmatpush2.bf16.msra.mxu1 %v1710_v53  ;;  %1118 = vmatprep.subr.bf16.mxu0 %v1715_v54 }
  0x6d   :  { %1171 = vmatprep.subr.bf16.mxu1 %v1718_v55 }
  0x6f   :  { %1119 = vmatpush2.bf16.msra.mxu0 %v1713_v56 }
  0x70   :  { %1172 = vmatpush2.bf16.msra.mxu1 %v1716_v57  ;;  %1120 = vmatprep.subr.bf16.mxu0 %v1721_v58 }
  0x71   :  { %1173 = vmatprep.subr.bf16.mxu1 %v1724_v59 }
  0x73   :  { %1121 = vmatpush2.bf16.msra.mxu0 %v1719_v60 }
  0x74   :  { %1174 = vmatpush2.bf16.msra.mxu1 %v1722_v61  ;;  %1122 = vmatprep.subr.bf16.mxu0 %v1733_v62 }
  0x75   :  { %1175 = vmatprep.subr.bf16.mxu1 %v1736_v63 }
  0x77   :  { %1123 = vmatpush2.bf16.msra.mxu0 %v1731_v0 }
  0x78   :  { %1176 = vmatpush2.bf16.msra.mxu1 %v1734_v1  ;;  %1124 = vmatprep.subr.bf16.mxu0 %v1739_v2 }
  0x79   :  { %1177 = vmatprep.subr.bf16.mxu1 %v1742_v3 }
  0x7b   :  { %1125 = vmatpush2.bf16.msra.mxu0 %v1737_v4 }
  0x7c   :  { %1178 = vmatpush2.bf16.msra.mxu1 %v1740_v5  ;;  %1126 = vmatprep.subr.bf16.mxu0 %v1745_v6 }
  0x7d   :  { %1179 = vmatprep.subr.bf16.mxu1 %v1748_v7 }
  0x7f   :  { %1127 = vmatpush2.bf16.msra.mxu0 %v1743_v8 }
  0x80   :  { %1180 = vmatpush2.bf16.msra.mxu1 %v1746_v9  ;;  %1202 = vmatprep.subr.bf16.mxu0 %v1757_v10 }
  0x81   :  { %1528 = vmatprep.subr.bf16.mxu1 %v1757_v10 }
  0x82   :  { %1129 = vmatmul.mubr.bf16.vlgmr.msra.gmra.mxu0 %v1749_v11 }
  0x83   :  { %1182 = vmatmul.mubr.bf16.vlgmr.msra.gmra.mxu1 %v1752_v12  ;;  %1203 = vmatpush1.bf16.msra.mxu0 %v1755_v13 }
  0x84   :  { %1536 = vmatpush1.bf16.msra.mxu1 %v1755_v13  ;;  %1204 = vmatprep.subr.bf16.mxu0 %v1760_v14 }
  0x85   :  { %1529 = vmatprep.subr.bf16.mxu1 %v1760_v14  ;;  %1138 = vmatprep.mubr.bf16.mxu0 %v1761_v15 }
  0x86   :  { %1191 = vmatprep.mubr.bf16.mxu1 %v1767_v16 }
  0x87   :  { %1205 = vmatpush1.bf16.msra.mxu0 %v1758_v17 }
  0x88   :  { %1537 = vmatpush1.bf16.msra.mxu1 %v1758_v17  ;;  %1206 = vmatprep.subr.bf16.mxu0 %v1766_v18 }
  0x89   :  { %1530 = vmatprep.subr.bf16.mxu1 %v1766_v18 }
  0x8a   :  { %1139 = vmatmul.mubr.bf16.gmra.mxu0 %v1763_v19 }
  0x8b   :  { %1192 = vmatmul.mubr.bf16.gmra.mxu1 %v1769_v20  ;;  %1207 = vmatpush1.bf16.msra.mxu0 %v1764_v21 }
  0x8c   :  { %1538 = vmatpush1.bf16.msra.mxu1 %v1764_v21  ;;  %1208 = vmatprep.subr.bf16.mxu0 %v1772_v22 }
  0x8d   :  { %1531 = vmatprep.subr.bf16.mxu1 %v1772_v22  ;;  %1234 = vmatprep.mubr.bf16.mxu0 %v1787_v25 }
  0x8e   :  { %1244 = vmatprep.mubr.bf16.mxu1 %v1787_v25 }
  0x8f   :  { %1209 = vmatpush1.bf16.msra.mxu0 %v1770_v23 }
  0x90   :  { %1539 = vmatpush1.bf16.msra.mxu1 %v1770_v23  ;;  %1210 = vmatprep.subr.bf16.mxu0 %v1775_v24 }
  0x91   :  { %1532 = vmatprep.subr.bf16.mxu1 %v1775_v24 }
  0x93   :  { %1211 = vmatpush1.bf16.msra.mxu0 %v1773_v26 }
  0x94   :  { %1540 = vmatpush1.bf16.msra.mxu1 %v1773_v26  ;;  %1212 = vmatprep.subr.bf16.mxu0 %v1778_v27 }
  0x95   :  { %1533 = vmatprep.subr.bf16.mxu1 %v1778_v27 }
  0x97   :  { %1213 = vmatpush1.bf16.msra.mxu0 %v1776_v28 }
  0x98   :  { %1541 = vmatpush1.bf16.msra.mxu1 %v1776_v28  ;;  %1214 = vmatprep.subr.bf16.mxu0 %v1781_v29 }
  0x99   :  { %1534 = vmatprep.subr.bf16.mxu1 %v1781_v29 }
  0x9b   :  { %1215 = vmatpush1.bf16.msra.mxu0 %v1779_v30 }
  0x9c   :  { %1542 = vmatpush1.bf16.msra.mxu1 %v1779_v30  ;;  %1216 = vmatprep.subr.bf16.mxu0 %v1784_v31 }
  0x9d   :  { %1535 = vmatprep.subr.bf16.mxu1 %v1784_v31 }
  0x9f   :  { %1217 = vmatpush1.bf16.msra.mxu0 %v1782_v32 }
  0xa0   :  { %1543 = vmatpush1.bf16.msra.mxu1 %v1782_v32 }
  0xa2   :  { %1235 = vmatmul.mubr.bf16.vlgmr.msra.gmra.mxu0 %v1785_v33 }
  0xa3   :  { %1245 = vmatmul.mubr.bf16.vlgmr.msra.gmra.mxu1 %v1786_v34 }
 0x102   :  { %v1024_v35 = vpop.f32.mrf.mxu0 }
 0x103   :  { %v1077_v36 = vpop.f32.mrf.mxu1 }
 0x104   :  { %v1026_v37 = vpop.f32.mrf.mxu0  ;;  %v1078_v63 = vadd.f32 %v1077_v36, %v1024_v35 }
 0x105   :  { %v1079_v38 = vpop.f32.mrf.mxu1 }
 0x106   :  { %v1028_v39 = vpop.f32.mrf.mxu0  ;;  %v1080_v1 = vadd.f32 %v1079_v38, %v1026_v37 }
 0x107   :  { %v1081_v40 = vpop.f32.mrf.mxu1 }
 0x108   :  { %v1030_v41 = vpop.f32.mrf.mxu0  ;;  %v1082_v8 = vadd.f32 %v1081_v40, %v1028_v39 }
 0x109   :  { %v1083_v42 = vpop.f32.mrf.mxu1 }
 0x10a   :  { %v1034_v43 = vpop.f32.mrf.mxu0  ;;  %v1084_v11 = vadd.f32 %v1083_v42, %v1030_v41 }
 0x10b   :  { %v1087_v44 = vpop.f32.mrf.mxu1 }
 0x10c   :  { %v1036_v45 = vpop.f32.mrf.mxu0  ;;  %v1088_v0 = vadd.f32 %v1087_v44, %v1034_v43 }
 0x10d   :  { %v1089_v46 = vpop.f32.mrf.mxu1 }
 0x10e   :  { %v1038_v47 = vpop.f32.mrf.mxu0  ;;  %v1090_v4 = vadd.f32 %v1089_v46, %v1036_v45 }
 0x10f   :  { %v1091_v48 = vpop.f32.mrf.mxu1 }
 0x110   :  { %v1040_v49 = vpop.f32.mrf.mxu0  ;;  %v1092_v9 = vadd.f32 %v1091_v48, %v1038_v47 }
 0x111   :  { %v1093_v50 = vpop.f32.mrf.mxu1 }
 0x112   :  { %v1094_v18 = vadd.f32 %v1093_v50, %v1040_v49 }
 0x142   :  { %v1130_v51 = vpop.f32.mrf.mxu0 }
 0x143   :  { %v1183_v52 = vpop.f32.mrf.mxu1  ;;  %v1131_v5 = vadd.f32 %v1130_v51, %v1078_v63 }
 0x144   :  { %v1132_v53 = vpop.f32.mrf.mxu0 }
 0x145   :  { %v1185_v54 = vpop.f32.mrf.mxu1  ;;  %v1133_v7 = vadd.f32 %v1132_v53, %v1080_v1  ;;  %v1184_v14 = vadd.f32 %v1183_v52, %v1131_v5 }
 0x146   :  { %v1134_v55 = vpop.f32.mrf.mxu0 }
 0x147   :  { %v1187_v56 = vpop.f32.mrf.mxu1  ;;  %v1135_v15 = vadd.f32 %v1134_v55, %v1082_v8  ;;  %v1186_v19 = vadd.f32 %v1185_v54, %v1133_v7 }
 0x148   :  { %v1136_v57 = vpop.f32.mrf.mxu0 }
 0x149   :  { %v1189_v58 = vpop.f32.mrf.mxu1  ;;  %v1137_v22 = vadd.f32 %v1136_v57, %v1084_v11  ;;  %v1188_v29 = vadd.f32 %v1187_v56, %v1135_v15 }
 0x14a   :  { %v1140_v59 = vpop.f32.mrf.mxu0 }
 0x14b   :  { %v1193_v60 = vpop.f32.mrf.mxu1  ;;  %v1141_v6 = vadd.f32 %v1140_v59, %v1088_v0  ;;  %v1190_v35 = vadd.f32 %v1189_v58, %v1137_v22 }
 0x14c   :  { %v1142_v61 = vpop.f32.mrf.mxu0 }
 0x14d   :  { %v1195_v62 = vpop.f32.mrf.mxu1  ;;  %v1143_v10 = vadd.f32 %v1142_v61, %v1090_v4  ;;  %v1194_v16 = vadd.f32 %v1193_v60, %v1141_v6 }
 0x14e   :  { %v1144_v2 = vpop.f32.mrf.mxu0 }
 0x14f   :  { %v1197_v3 = vpop.f32.mrf.mxu1  ;;  %v1145_v17 = vadd.f32 %v1144_v2, %v1092_v9  ;;  %v1196_v23 = vadd.f32 %v1195_v62, %v1143_v10 }
 0x150   :  { %v1146_v12 = vpop.f32.mrf.mxu0 }
 0x151   :  { %v1199_v13 = vpop.f32.mrf.mxu1  ;;  %v1147_v26 = vadd.f32 %v1146_v12, %v1094_v18  ;;  %v1198_v30 = vadd.f32 %v1197_v3, %v1145_v17 }
 0x153   :  { %v1200_v38 = vadd.f32 %v1199_v13, %v1147_v26 }
 0x162   :  { %v1236_v20 = vpop.f32.mrf.mxu0 }
 0x163   :  { %v1246_v21 = vpop.f32.mrf.mxu1  ;;  %v1237_v24 = vadd.f32 %v1236_v20, %v1184_v14 }
 0x164   :  { %v1247_v25 = vadd.f32 %v1246_v21, %v1194_v16  ;;  %v1238_v27 = vpop.f32.mrf.mxu0 }
 0x165   :  { %v1248_v28 = vpop.f32.mrf.mxu1  ;;  %1259 = vst [vmem:[%s2326_s2] sm:$0xff] %v1237_v24  ;;  %v1239_v31 = vadd.f32 %v1238_v27, %v1186_v19  ;;  %v1324_v41 = vmul.f32 %v1237_v24, %v1237_v24 }
 0x166   :  { %1263 = vst [vmem:[%s2326_s2 + $0x20] sm:$0xff] %v1247_v25  ;;  %v1249_v32 = vadd.f32 %v1248_v28, %v1196_v23  ;;  %v1240_v33 = vpop.f32.mrf.mxu0  ;;  %v1328_v45 = vmul.f32 %v1247_v25, %v1247_v25 }
 0x167   :  { %v1250_v34 = vpop.f32.mrf.mxu1  ;;  %1260 = vst [vmem:[%s2326_s2 + $0x8] sm:$0xff] %v1239_v31  ;;  %v1241_v36 = vadd.f32 %v1240_v33, %v1188_v29  ;;  %v1325_v46 = vmul.f32 %v1239_v31, %v1239_v31 }
 0x168   :  { %1264 = vst [vmem:[%s2326_s2 + $0x28] sm:$0xff] %v1249_v32  ;;  %v1251_v37 = vadd.f32 %v1250_v34, %v1198_v30  ;;  %v1242_v39 = vpop.f32.mrf.mxu0  ;;  %v1329_v52 = vmul.f32 %v1249_v32, %v1249_v32 }
 0x169   :  { %v1252_v40 = vpop.f32.mrf.mxu1  ;;  %1261 = vst [vmem:[%s2326_s2 + $0x10] sm:$0xff] %v1241_v36  ;;  %v1306_v42 = vadd.f32 %v1241_v36, %v1237_v24  ;;  %v1326_v43 = vmul.f32 %v1241_v36, %v1241_v36  ;;  %v1243_v44 = vadd.f32 %v1242_v39, %v1190_v35 }
 0x16a   :  { %1265 = vst [vmem:[%s2326_s2 + $0x30] sm:$0xff] %v1251_v37  ;;  %v1253_v47 = vadd.f32 %v1252_v40, %v1200_v38  ;;  %v1330_v53 = vmul.f32 %v1251_v37, %v1251_v37 }
 0x16b   :  { %v1332_v48 = vadd.f32 %v1326_v43, %v1324_v41  ;;  %v1307_v49 = vadd.f32 %v1306_v42, %v1247_v25  ;;  %1262 = vst [vmem:[%s2326_s2 + $0x18] sm:$0xff] %v1243_v44  ;;  %v1315_v50 = vadd.f32 %v1243_v44, %v1239_v31  ;;  %v1327_v51 = vmul.f32 %v1243_v44, %v1243_v44 }
 0x16c   :  { %1266 = vst [vmem:[%s2326_s2 + $0x38] sm:$0xff] %v1253_v47  ;;  %v1331_v58 = vmul.f32 %v1253_v47, %v1253_v47 }
 0x16d   :  { %v1308_v54 = vadd.f32 %v1307_v49, %v1251_v37  ;;  %v1333_v55 = vadd.f32 %v1332_v48, %v1328_v45  ;;  %v1341_v56 = vadd.f32 %v1327_v51, %v1325_v46  ;;  %v1316_v57 = vadd.f32 %v1315_v50, %v1249_v32 }
 0x16f   :  { %v1309_v59 = vrot.slane %v1308_v54, 4  ;;  %v1334_v60 = vadd.f32 %v1333_v55, %v1330_v53  ;;  %v1317_v61 = vadd.f32 %v1316_v57, %v1253_v47  ;;  %v1342_v62 = vadd.f32 %v1341_v56, %v1329_v52 }
 0x171   :  { %v1310_v63 = vadd.f32 %v1309_v59, %v1308_v54  ;;  %v1335_v0 = vrot.slane %v1334_v60, 4  ;;  %v1318_v1 = vrot.slane %v1317_v61, 4  ;;  %v1343_v2 = vadd.f32 %v1342_v62, %v1331_v58 }
 0x173   :  { %v1311_v3 = vrot.slane %v1310_v63, 2  ;;  %v1336_v4 = vadd.f32 %v1335_v0, %v1334_v60  ;;  %v1319_v5 = vadd.f32 %v1318_v1, %v1317_v61  ;;  %v1344_v6 = vrot.slane %v1343_v2, 4 }
 0x175   :  { %v1312_v7 = vadd.f32 %v1311_v3, %v1310_v63  ;;  %v1337_v8 = vrot.slane %v1336_v4, 2  ;;  %v1320_v9 = vrot.slane %v1319_v5, 2  ;;  %v1345_v10 = vadd.f32 %v1344_v6, %v1343_v2 }
 0x177   :  { %v1313_v11 = vrot.slane %v1312_v7, 1  ;;  %v1338_v12 = vadd.f32 %v1337_v8, %v1336_v4  ;;  %v1321_v13 = vadd.f32 %v1320_v9, %v1319_v5  ;;  %v1346_v14 = vrot.slane %v1345_v10, 2 }
 0x179   :  { %v1339_v15 = vrot.slane %v1338_v12, 1  ;;  %v1322_v16 = vrot.slane %v1321_v13, 1  ;;  %v1347_v17 = vadd.f32 %v1346_v14, %v1345_v10  ;;  %v1314_v18 = vadd.f32 %v1313_v11, %v1312_v7 }
 0x17b   :  { %v1340_v19 = vadd.f32 %v1339_v15, %v1338_v12  ;;  %v1348_v20 = vrot.slane %v1347_v17, 1  ;;  %v1323_v22 = vadd.f32 %v1322_v16, %v1321_v13 }
 0x17d   :  { %v1351_v21 = vsel %vm1350_vm0, %v1314_v18, %v1340_v19  ;;  %v1349_v23 = vadd.f32 %v1348_v20, %v1347_v17 }
 0x17e   :  { %v1354_v24 = vsel %vm1353_vm1, %v1351_v21, 0.0 }
 0x17f   :  { %1356 = vst [vmem:[%s2327_s3] sm:$0xff] %v1354_v24  ;;  %v1352_v25 = vsel %vm1350_vm0, %v1323_v22, %v1349_v23 }
 0x180   :  { %v1355_v26 = vsel %vm1353_vm1, %v1352_v25, 0.0 }
 0x181   :  { %1357 = vst [vmem:[%s2327_s3 + $0x8] sm:$0xff] %v1355_v26 }

// kernel: simple_pose_net.13
= control target key start
LH: loop header
LB: loop body
LE: loop exit
PB: predicated region body
PF: predicated region fallthrough
CT: control target
= control target key end

     0   :  { %s875_s1 = inlined_call_operand.vmem [shape: bf16[256,384], index: 1, kind: input, shape index: {}]   ;;  %s876_s0 = inlined_call_operand.vmem [shape: bf16[32,256], index: 0, kind: input, shape index: {}]   ;;  %s877_s2 = inlined_call_operand.vmem [shape: f32[32,384], index: 2, kind: output, shape index: {}]  }
   0x1   :  { %v598_v0 = vld [vmem:[%s875_s1 + $0xac] ss:$12 sps:$4 sm:$0xff]   ;;  %v600_v1 = vld [vmem:[%s875_s1 + $0xa8] ss:$12 sps:$4 sm:$0xff]   ;;  %v603_v3 = vld [vmem:[%s875_s1 + $0x90] ss:$12 sps:$4 sm:$0xff]  }
   0x2   :  { %356 = vmatprep.subr.bf16.mxu0 %v598_v0  ;;  %v601_v2 = vld [vmem:[%s875_s1 + $0x94] ss:$12 sps:$4 sm:$0xff]   ;;  %v604_v4 = vld [vmem:[%s875_s1 + $0x7c] ss:$12 sps:$4 sm:$0xff]   ;;  %v606_v5 = vld [vmem:[%s875_s1 + $0x78] ss:$12 sps:$4 sm:$0xff]  }
   0x3   :  { %357 = vmatpush1.bf16.msra.mxu0 %v600_v1  ;;  %v607_v6 = vld [vmem:[%s875_s1 + $0x64] ss:$12 sps:$4 sm:$0xff]   ;;  %v609_v8 = vld [vmem:[%s875_s1 + $0x60] ss:$12 sps:$4 sm:$0xff]   ;;  %v612_v13 = vld [vmem:[%s875_s1 + $0x48] ss:$12 sps:$4 sm:$0xff]  }
   0x4   :  { %358 = vmatprep.subr.bf16.mxu0 %v601_v2  ;;  %v618_v7 = vld [vmem:[%s875_s1 + $0x170] ss:$12 sps:$4 sm:$0xff]   ;;  %v610_v10 = vld [vmem:[%s875_s1 + $0x4c] ss:$12 sps:$4 sm:$0xff]   ;;  %v613_v14 = vld [vmem:[%s875_s1 + $0x34] ss:$12 sps:$4 sm:$0xff]  }
   0x5   :  { %570 = vmatprep.subr.bf16.mxu1 %v618_v7  ;;  %v620_v9 = vld [vmem:[%s875_s1 + $0xb0] ss:$12 sps:$4 sm:$0xff]   ;;  %v623_v11 = vld [vmem:[%s875_s1 + $0x158] ss:$12 sps:$4 sm:$0xff]   ;;  %v628_v15 = vld [vmem:[%s875_s1 + $0x140] ss:$12 sps:$4 sm:$0xff]  }
   0x6   :  { %571 = vmatpush3.bf16.msra.mxu1 %v620_v9  ;;  %v625_v12 = vld [vmem:[%s875_s1 + $0x98] ss:$12 sps:$4 sm:$0xff]   ;;  %v630_v16 = vld [vmem:[%s875_s1 + $0x80] ss:$12 sps:$4 sm:$0xff]   ;;  %v615_v17 = vld [vmem:[%s875_s1 + $0x30] ss:$12 sps:$4 sm:$0xff]  }
   0x7   :  { %359 = vmatpush1.bf16.msra.mxu0 %v603_v3  ;;  %572 = vmatprep.subr.bf16.mxu1 %v623_v11  ;;  %v633_v18 = vld [vmem:[%s875_s1 + $0x128] ss:$12 sps:$4 sm:$0xff]   ;;  %v619_v21 = vld [vmem:[%s875_s1 + $0x18] ss:$12 sps:$4 sm:$0xff]   ;;  %v638_v22 = vld [vmem:[%s875_s1 + $0x110] ss:$12 sps:$4 sm:$0xff]  }
   0x8   :  { %360 = vmatprep.subr.bf16.mxu0 %v604_v4  ;;  %v616_v19 = vld [vmem:[%s875_s1 + $0x1c] ss:$12 sps:$4 sm:$0xff]   ;;  %v621_v23 = vld [vmem:[%s875_s1 + $0x4] ss:$12 sps:$4 sm:$0xff]   ;;  %v624_v26 = vld [vmem:[%s875_s1] ss:$12 sps:$4 sm:$0xff]  }
   0x9   :  { %v635_v20 = vld [vmem:[%s875_s1 + $0x68] ss:$12 sps:$4 sm:$0xff]   ;;  %v640_v24 = vld [vmem:[%s875_s1 + $0x50] ss:$12 sps:$4 sm:$0xff]   ;;  %v643_v25 = vld [vmem:[%s875_s1 + $0xf8] ss:$12 sps:$4 sm:$0xff]  }
   0xa   :  { %573 = vmatpush3.bf16.msra.mxu1 %v625_v12  ;;  %v626_v27 = vld [vmem:[%s875_s1 + $0x16c] ss:$12 sps:$4 sm:$0xff]   ;;  %v629_v30 = vld [vmem:[%s875_s1 + $0x168] ss:$12 sps:$4 sm:$0xff]   ;;  %v634_v34 = vld [vmem:[%s875_s1 + $0x150] ss:$12 sps:$4 sm:$0xff]  }
   0xb   :  { %361 = vmatpush1.bf16.msra.mxu0 %v606_v5  ;;  %574 = vmatprep.subr.bf16.mxu1 %v628_v15  ;;  %v645_v28 = vld [vmem:[%s875_s1 + $0x38] ss:$12 sps:$4 sm:$0xff]   ;;  %v648_v29 = vld [vmem:[%s875_s1 + $0xe0] ss:$12 sps:$4 sm:$0xff]   ;;  %v653_v33 = vld [vmem:[%s875_s1 + $0xc8] ss:$12 sps:$4 sm:$0xff]  }
   0xc   :  { %362 = vmatprep.subr.bf16.mxu0 %v607_v6  ;;  %v631_v31 = vld [vmem:[%s875_s1 + $0x154] ss:$12 sps:$4 sm:$0xff]   ;;  %v658_v35 = vld [vmem:[%s876_s0 + $0x4] ss:$8 sps:$4 sm:$0xff]   ;;  %v636_v36 = vld [vmem:[%s875_s1 + $0x13c] ss:$12 sps:$4 sm:$0xff]  }
   0xd   :  { %v650_v32 = vld [vmem:[%s875_s1 + $0x20] ss:$12 sps:$4 sm:$0xff]   ;;  %v655_v37 = vld [vmem:[%s875_s1 + $0x8] ss:$12 sps:$4 sm:$0xff]   ;;  %441 = vmatprep.mubr.bf16.mxu1 %v658_v35  ;;  %388 = vmatprep.mubr.bf16.mxu0 %v658_v35  ;;  %v639_v38 = vld [vmem:[%s875_s1 + $0x138] ss:$12 sps:$4 sm:$0xff]  }
   0xe   :  { %575 = vmatpush3.bf16.msra.mxu1 %v630_v16  ;;  %v641_v39 = vld [vmem:[%s875_s1 + $0x124] ss:$12 sps:$4 sm:$0xff]   ;;  %v656_v40 = vld [vmem:[%s876_s0] ss:$8 sps:$4 sm:$0xff]   ;;  %v665_v41 = vld [vmem:[%s876_s0 + $0x14] ss:$8 sps:$4 sm:$0xff]  }
   0xf   :  { %363 = vmatpush1.bf16.msra.mxu0 %v609_v8  ;;  %576 = vmatprep.subr.bf16.mxu1 %v633_v18  ;;  %v644_v42 = vld [vmem:[%s875_s1 + $0x120] ss:$12 sps:$4 sm:$0xff]   ;;  %v649_v44 = vld [vmem:[%s875_s1 + $0x108] ss:$12 sps:$4 sm:$0xff]   ;;  %v667_v46 = vld [vmem:[%s876_s0 + $0x10] ss:$8 sps:$4 sm:$0xff]  }
  0x10   :  { %364 = vmatprep.subr.bf16.mxu0 %v610_v10  ;;  %v646_v43 = vld [vmem:[%s875_s1 + $0x10c] ss:$12 sps:$4 sm:$0xff]   ;;  %v651_v45 = vld [vmem:[%s875_s1 + $0xf4] ss:$12 sps:$4 sm:$0xff]   ;;  %v654_v47 = vld [vmem:[%s875_s1 + $0xf0] ss:$12 sps:$4 sm:$0xff]  }
  0x11   :  { %v659_v48 = vld [vmem:[%s875_s1 + $0xdc] ss:$12 sps:$4 sm:$0xff]   ;;  %v661_v49 = vld [vmem:[%s875_s1 + $0xd8] ss:$12 sps:$4 sm:$0xff]   ;;  %v664_v51 = vld [vmem:[%s875_s1 + $0xc0] ss:$12 sps:$4 sm:$0xff]  }
  0x12   :  { %577 = vmatpush3.bf16.msra.mxu1 %v635_v20  ;;  %v662_v50 = vld [vmem:[%s875_s1 + $0xc4] ss:$12 sps:$4 sm:$0xff]  }
  0x13   :  { %365 = vmatpush1.bf16.msra.mxu0 %v612_v13  ;;  %578 = vmatprep.subr.bf16.mxu1 %v638_v22 }
  0x14   :  { %366 = vmatprep.subr.bf16.mxu0 %v613_v14 }
  0x16   :  { %579 = vmatpush3.bf16.msra.mxu1 %v640_v24 }
  0x17   :  { %367 = vmatpush1.bf16.msra.mxu0 %v615_v17  ;;  %580 = vmatprep.subr.bf16.mxu1 %v643_v25 }
  0x18   :  { %368 = vmatprep.subr.bf16.mxu0 %v616_v19 }
  0x1a   :  { %581 = vmatpush3.bf16.msra.mxu1 %v645_v28 }
  0x1b   :  { %369 = vmatpush1.bf16.msra.mxu0 %v619_v21  ;;  %582 = vmatprep.subr.bf16.mxu1 %v648_v29 }
  0x1c   :  { %370 = vmatprep.subr.bf16.mxu0 %v621_v23 }
  0x1e   :  { %583 = vmatpush3.bf16.msra.mxu1 %v650_v32 }
  0x1f   :  { %371 = vmatpush1.bf16.msra.mxu0 %v624_v26  ;;  %584 = vmatprep.subr.bf16.mxu1 %v653_v33 }
  0x20   :  { %372 = vmatprep.subr.bf16.mxu0 %v626_v27 }
  0x22   :  { %585 = vmatpush3.bf16.msra.mxu1 %v655_v37 }
  0x23   :  { %373 = vmatpush2.bf16.msra.mxu0 %v629_v30 }
  0x24   :  { %374 = vmatprep.subr.bf16.mxu0 %v631_v31 }
  0x25   :  { %442 = vmatmul.mubr.bf16.vlgmr.msra.gmra.mxu1 %v656_v40 }
  0x26   :  { %449 = vmatprep.mubr.bf16.mxu1 %v665_v41 }
  0x27   :  { %375 = vmatpush2.bf16.msra.mxu0 %v634_v34 }
  0x28   :  { %376 = vmatprep.subr.bf16.mxu0 %v636_v36 }
  0x2b   :  { %377 = vmatpush2.bf16.msra.mxu0 %v639_v38 }
  0x2c   :  { %378 = vmatprep.subr.bf16.mxu0 %v641_v39 }
  0x2d   :  { %450 = vmatmul.mubr.bf16.gmra.mxu1 %v667_v46 }
  0x2f   :  { %379 = vmatpush2.bf16.msra.mxu0 %v644_v42 }
  0x30   :  { %380 = vmatprep.subr.bf16.mxu0 %v646_v43 }
  0x33   :  { %381 = vmatpush2.bf16.msra.mxu0 %v649_v44 }
  0x34   :  { %382 = vmatprep.subr.bf16.mxu0 %v651_v45 }
  0x37   :  { %383 = vmatpush2.bf16.msra.mxu0 %v654_v47 }
  0x38   :  { %384 = vmatprep.subr.bf16.mxu0 %v659_v48 }
  0x3b   :  { %385 = vmatpush2.bf16.msra.mxu0 %v661_v49 }
  0x3c   :  { %386 = vmatprep.subr.bf16.mxu0 %v662_v50 }
  0x3f   :  { %387 = vmatpush2.bf16.msra.mxu0 %v664_v51 }
  0x42   :  { %389 = vmatmul.mubr.bf16.vlgmr.msra.gmra.mxu0 %v656_v40 }
  0x43   :  { %398 = vmatprep.mubr.bf16.mxu0 %v665_v41 }
  0x4a   :  { %399 = vmatmul.mubr.bf16.gmra.mxu0 %v667_v46 }
  0xe5   :  { %v586_v52 = vpop.f32.mrf.mxu1 }
  0xe7   :  { %v587_v53 = vpop.f32.mrf.mxu1 }
  0xe8   :  { %v588_v54 = vadd.f32 %v587_v53, %v586_v52 }
  0xe9   :  { %v589_v55 = vpop.f32.mrf.mxu1 }
  0xea   :  { %464 = vst [vmem:[%s877_s2 + $0x10] sm:$0xff] %v588_v54 }
  0xeb   :  { %v590_v56 = vpop.f32.mrf.mxu1 }
  0xec   :  { %v591_v57 = vadd.f32 %v590_v56, %v589_v55 }
  0xed   :  { %v592_v58 = vpop.f32.mrf.mxu1 }
  0xee   :  { %467 = vst [vmem:[%s877_s2 + $0x28] sm:$0xff] %v591_v57 }
  0xef   :  { %v593_v59 = vpop.f32.mrf.mxu1 }
  0xf0   :  { %v594_v60 = vadd.f32 %v593_v59, %v592_v58 }
  0xf1   :  { %v595_v61 = vpop.f32.mrf.mxu1 }
  0xf2   :  { %470 = vst [vmem:[%s877_s2 + $0x40] sm:$0xff] %v594_v60 }
  0xf3   :  { %v596_v62 = vpop.f32.mrf.mxu1 }
  0xf4   :  { %v597_v63 = vadd.f32 %v596_v62, %v595_v61 }
  0xf6   :  { %473 = vst [vmem:[%s877_s2 + $0x58] sm:$0xff] %v597_v63 }
 0x102   :  { %v390_v0 = vpop.f32.mrf.mxu0 }
 0x103   :  { %462 = vst [vmem:[%s877_s2] sm:$0xff] %v390_v0 }
 0x104   :  { %v392_v1 = vpop.f32.mrf.mxu0 }
 0x105   :  { %463 = vst [vmem:[%s877_s2 + $0x8] sm:$0xff] %v392_v1 }
 0x106   :  { %v394_v2 = vpop.f32.mrf.mxu0 }
 0x107   :  { %465 = vst [vmem:[%s877_s2 + $0x18] sm:$0xff] %v394_v2 }
 0x108   :  { %v396_v3 = vpop.f32.mrf.mxu0 }
 0x109   :  { %466 = vst [vmem:[%s877_s2 + $0x20] sm:$0xff] %v396_v3 }
 0x10a   :  { %v400_v4 = vpop.f32.mrf.mxu0 }
 0x10b   :  { %468 = vst [vmem:[%s877_s2 + $0x30] sm:$0xff] %v400_v4 }
 0x10c   :  { %v402_v5 = vpop.f32.mrf.mxu0 }
 0x10d   :  { %469 = vst [vmem:[%s877_s2 + $0x38] sm:$0xff] %v402_v5 }
 0x10e   :  { %v404_v6 = vpop.f32.mrf.mxu0 }
 0x10f   :  { %471 = vst [vmem:[%s877_s2 + $0x48] sm:$0xff] %v404_v6 }
 0x110   :  { %v406_v7 = vpop.f32.mrf.mxu0 }
 0x111   :  { %472 = vst [vmem:[%s877_s2 + $0x50] sm:$0xff] %v406_v7 }

</bundles_post_ra>
